<compile_context>
chip_gen: v7x
topology: tpu7x:2x2x1
jax: 0.10.0
libtpu: 0.0.40
codegen_flags: <defaults>
</compile_context>

<pallas_src>
import functools

import jax
import jax.numpy as jnp
from jax.experimental import pallas as pl
from jax.experimental.pallas import tpu as pltpu

_COMPUTE_DTYPE = jnp.bfloat16  # patches / weights / intermediate activations
_OUT_CHANNELS = 3              # the last generator block always produces RGB


# ---------------------------------------------------------------------------
# Pallas kernels
# ---------------------------------------------------------------------------

def _matmul_act_kernel(p_ref, w_ref, b_ref, o_ref, *, mode):
    """One M-tile: z = P @ W + b ; activation (relu | tanh)."""
    z = jnp.dot(p_ref[...], w_ref[...], preferred_element_type=jnp.float32)
    z = z + b_ref[...]                       # [TM, C] + [1, C]
    if mode == "relu":
        z = jnp.maximum(z, 0.0)
    elif mode == "tanh":
        z = jnp.tanh(z)
    else:
        raise ValueError(mode)
    o_ref[...] = z.astype(o_ref.dtype)


def _matmul_bn_relu_kernel(p_ref, w_ref, b_ref, g_ref, be_ref, o_ref,
                           *, eps, n_cout):
    """Whole layer in one block: z = P @ W + b ; BatchNorm(batch stats) ; ReLU.

    The output lanes are laid out as (parity_y, parity_x, channel); per-channel
    BN statistics therefore reduce over all rows AND the 4 parity groups.
    """
    z = jnp.dot(p_ref[...], w_ref[...], preferred_element_type=jnp.float32)
    z = z + b_ref[...]                                   # [M, 4*C] (f32)

    # One-pass sum / sum-of-squares (values are small and centered here, so
    # E[x^2] - E[x]^2 cancellation is benign; variance is clamped >= 0).
    s1 = jnp.sum(z, axis=0, keepdims=True)               # [1, 4*C]
    s2 = jnp.sum(z * z, axis=0, keepdims=True)           # [1, 4*C]

    c = n_cout
    s1c = s1[:, 0:c] + s1[:, c:2 * c] + s1[:, 2 * c:3 * c] + s1[:, 3 * c:4 * c]
    s2c = s2[:, 0:c] + s2[:, c:2 * c] + s2[:, 2 * c:3 * c] + s2[:, 3 * c:4 * c]

    count = 4.0 * z.shape[0]                             # N * OH * OW
    mu = s1c / count
    var = jnp.maximum(s2c / count - mu * mu, 0.0)
    scale = g_ref[...] * jax.lax.rsqrt(var + eps)        # [1, C]
    shift = be_ref[...] - mu * scale                     # [1, C]
    scale4 = jnp.concatenate([scale, scale, scale, scale], axis=1)  # [1, 4*C]
    shift4 = jnp.concatenate([shift, shift, shift, shift], axis=1)

    z = jnp.maximum(z * scale4 + shift4, 0.0)
    o_ref[...] = z.astype(o_ref.dtype)


# ---------------------------------------------------------------------------
# pallas_call wrappers
# ---------------------------------------------------------------------------

def _pick_tile(m, target=512):
    """Largest M tile <= target that divides M exactly (no OOB masking)."""
    if m <= target:
        return m
    for t in (512, 256, 128, 64, 32, 16, 8):
        if m % t == 0:
            return t
    return m


def _vmem_limit_bytes(*block_bytes):
    """Scoped-VMEM request: double-buffered blocks + slack, capped at 32 MiB
    (well below the smallest physical VMEM, v7x's 64 MiB per TensorCore)."""
    need = 2 * sum(block_bytes) + (4 << 20)
    return int(min(max(need, 8 << 20), 32 << 20))


def _matmul_act(patches, w, b, *, mode, out_dtype):
    """Tiled fused matmul + bias + activation; M split across a parallel grid."""
    m, k = patches.shape
    cout = w.shape[1]
    tm = _pick_tile(m)
    grid = (m // tm,)
    b_row = b.reshape(1, cout).astype(jnp.float32)
    kernel = functools.partial(_matmul_act_kernel, mode=mode)
    vmem = _vmem_limit_bytes(tm * k * patches.dtype.itemsize,
                             k * cout * w.dtype.itemsize,
                             cout * 4,
                             tm * cout * jnp.dtype(out_dtype).itemsize)
    return pl.pallas_call(
        kernel,
        out_shape=jax.ShapeDtypeStruct((m, cout), out_dtype),
        grid=grid,
        in_specs=[
            pl.BlockSpec((tm, k), lambda i: (i, 0)),
            pl.BlockSpec((k, cout), lambda i: (0, 0)),
            pl.BlockSpec((1, cout), lambda i: (0, 0)),
        ],
        out_specs=pl.BlockSpec((tm, cout), lambda i: (i, 0)),
        compiler_params=pltpu.CompilerParams(
            dimension_semantics=("parallel",),   # megacore split on v7x
            vmem_limit_bytes=vmem,
        ),
    )(patches, w, b_row)


def _matmul_bn_relu(patches, w, b, gamma, beta, *, out_dtype, eps=1e-5):
    """Single-block fused matmul + BatchNorm(batch stats) + ReLU.

    BN needs per-channel statistics over the whole batch, so the slab stays in
    one VMEM block (< 2 MiB at these layer sizes)."""
    m, k = patches.shape
    c4 = w.shape[1]
    c = c4 // 4
    kernel = functools.partial(_matmul_bn_relu_kernel, eps=eps, n_cout=c)
    vmem = _vmem_limit_bytes(m * k * patches.dtype.itemsize,
                             k * c4 * w.dtype.itemsize,
                             c4 * 4 + 2 * c * 4,
                             m * c4 * jnp.dtype(out_dtype).itemsize,
                             m * c4 * 4)          # f32 intermediate z
    return pl.pallas_call(
        kernel,
        out_shape=jax.ShapeDtypeStruct((m, c4), out_dtype),
        grid=(1,),
        in_specs=[
            pl.BlockSpec((m, k), lambda i: (0, 0)),
            pl.BlockSpec((k, c4), lambda i: (0, 0)),
            pl.BlockSpec((1, c4), lambda i: (0, 0)),
            pl.BlockSpec((1, c), lambda i: (0, 0)),
            pl.BlockSpec((1, c), lambda i: (0, 0)),
        ],
        out_specs=pl.BlockSpec((m, c4), lambda i: (0, 0)),
        compiler_params=pltpu.CompilerParams(
            dimension_semantics=("arbitrary",),
            vmem_limit_bytes=vmem,
        ),
    )(patches, w,
      b.reshape(1, c4).astype(jnp.float32),
      gamma.reshape(1, c).astype(jnp.float32),
      beta.reshape(1, c).astype(jnp.float32))


# ---------------------------------------------------------------------------
# JAX glue: patch extraction, sub-pixel interleave, weight preparation
# ---------------------------------------------------------------------------

def _im2col_3x3(x):
    """x: [N, H, W, C] -> 3x3/stride-1 patches of the 1-padded input, [N*H*W, 9*C]."""
    n, h, w, c = x.shape
    xp = jnp.pad(x, ((0, 0), (1, 1), (1, 1), (0, 0)))
    cols = [xp[:, ty:ty + h, tx:tx + w, :] for ty in range(3) for tx in range(3)]
    return jnp.concatenate(cols, axis=-1).reshape(n * h * w, 9 * c)


def _depth_to_space2(z, n, h, w, c):
    """z: [N*H*W, 4*C] with lane layout (py, px, co) -> [N, 2H, 2W, C]."""
    z = z.reshape(n, h, w, 2, 2, c)
    z = jnp.transpose(z, (0, 1, 3, 2, 4, 5))
    return z.reshape(n, 2 * h, 2 * w, c)


def _subpixel_weight(w_t, cout_pad):
    """Combined-parity weight for ConvTranspose2d(k=4, s=2, p=1).

    Returns Wc[9*Cin, 4*cout_pad] such that, with P the 3x3 im2col above,
      (P @ Wc)[(n,h,g), (py,px,co)] == transposed-conv output at (2h+py, 2g+px).
    Derivation: output row oy = 2*iy - 1 + kh with iy = h + ty - 1 gives
    kh = py + 3 - 2*ty (zero contribution when kh is out of [0, 4))."""
    cin, cout, k, _ = w_t.shape
    assert k == 4 and cout <= cout_pad
    wc = jnp.zeros((3, 3, cin, 2, 2, cout_pad), w_t.dtype)
    for py in range(2):
        for ty in range(3):
            kh = py + 3 - 2 * ty
            if not 0 <= kh < 4:
                continue
            for px in range(2):
                for tx in range(3):
                    kw = px + 3 - 2 * tx
                    if not 0 <= kw < 4:
                        continue
                    wc = wc.at[ty, tx, :, py, px, :cout].set(w_t[:, :, kh, kw])
    return wc.reshape(9 * cin, 4 * cout_pad)


def init_generator_params(key, noise_size=100, image_size=64):
    """Torch-layout params mirroring the PyTorch __init__ (N(0,0.02) conv
    weights, N(1,0.02) BN gamma, zero BN beta)."""
    default_hidden_size = 64
    hidden_size = int(default_hidden_size // (image_size // default_hidden_size))
    chans = [noise_size, hidden_size * 16, hidden_size * 8, hidden_size * 4,
             hidden_size * 2, 3]
    params = []
    for li, (cin, cout) in enumerate(zip(chans[:-1], chans[1:])):
        key, kw, kb, kg = jax.random.split(key, 4)
        w = 0.02 * jax.random.normal(kw, (cin, cout, 4, 4), jnp.float32)
        b = 0.02 * jax.random.normal(kb, (cout,), jnp.float32)
        if li in (1, 2, 3):  # only the middle blocks have BatchNorm
            gamma = 1.0 + 0.02 * jax.random.normal(kg, (cout,), jnp.float32)
        else:
            gamma = jnp.ones((cout,), jnp.float32)
        beta = jnp.zeros((cout,), jnp.float32)
        params.append(dict(w=w, b=b, gamma=gamma, beta=beta))
    return params


def prepare_generator_params(raw_params):
    """One-time conversion into matmul-ready bf16 matrices / tiled bias rows so
    the forward graph contains no per-call weight transposes."""
    prepared = []

    # Layer 0: ConvTranspose(k=4, s=1, p=0) on a 1x1 input == dense matmul
    # producing all 16 output pixels; lane layout (kh, kw, co).
    p = raw_params[0]
    cin, cout = p["w"].shape[0], p["w"].shape[1]
    w0 = jnp.transpose(p["w"], (0, 2, 3, 1)).reshape(cin, 16 * cout)
    prepared.append(dict(w=w0.astype(_COMPUTE_DTYPE),
                         b=jnp.tile(p["b"], 16).astype(jnp.float32)))

    # Layers 1..3: k=4, s=2, p=1 + BN + ReLU (sub-pixel combined-parity form).
    for p in raw_params[1:4]:
        cout = p["w"].shape[1]
        prepared.append(dict(
            w=_subpixel_weight(p["w"], cout).astype(_COMPUTE_DTYPE),
            b=jnp.tile(p["b"], 4).astype(jnp.float32),
            gamma=p["gamma"].astype(jnp.float32),
            beta=p["beta"].astype(jnp.float32)))

    # Layer 4: k=4, s=2, p=1 + Tanh; pad Cout 3 -> 32 so 4*32 = 128 lanes.
    p = raw_params[4]
    cout = p["w"].shape[1]
    cout_pad = 32
    b_pad = jnp.zeros((cout_pad,), jnp.float32).at[:cout].set(p["b"])
    prepared.append(dict(
        w=_subpixel_weight(p["w"], cout_pad).astype(_COMPUTE_DTYPE),
        b=jnp.tile(b_pad, 4)))
    return prepared


# ---------------------------------------------------------------------------
# Forward pass
# ---------------------------------------------------------------------------

def generator_forward(params, noise_nchw):
    """noise_nchw: [N, noise_size, 1, 1] (PyTorch convention). Returns NCHW."""
    assert noise_nchw.shape[2:] == (1, 1)
    n = noise_nchw.shape[0]
    x = noise_nchw.reshape(n, noise_nchw.shape[1]).astype(_COMPUTE_DTYPE)

    # input_conv: ConvTranspose2d(noise, C0, k=4, s=1) + ReLU == matmul + ReLU.
    p = params[0]
    c0 = p["w"].shape[1] // 16
    z = _matmul_act(x, p["w"], p["b"], mode="relu", out_dtype=_COMPUTE_DTYPE)
    x = z.reshape(n, 4, 4, c0)

    # convt2..convt4: ConvTranspose2d(k=4, s=2, p=1) + BatchNorm + ReLU.
    for p in params[1:4]:
        nb, h, w, _ = x.shape
        cout = p["gamma"].shape[0]
        patches = _im2col_3x3(x)
        z = _matmul_bn_relu(patches, p["w"], p["b"], p["gamma"], p["beta"],
                            out_dtype=_COMPUTE_DTYPE)
        x = _depth_to_space2(z, nb, h, w, cout)

    # convt5 + Tanh (channel-padded, lane-dense 128-wide stores).
    p = params[4]
    nb, h, w, _ = x.shape
    cpad = p["w"].shape[1] // 4
    patches = _im2col_3x3(x)
    z = _matmul_act(patches, p["w"], p["b"], mode="tanh", out_dtype=jnp.float32)
    x = _depth_to_space2(z, nb, h, w, cpad)[:, :, :, :_OUT_CHANNELS]

    return jnp.transpose(x, (0, 3, 1, 2))  # back to NCHW


# ---------------------------------------------------------------------------
# Pure-XLA reference (same dtypes) for a numerical sanity check
# ---------------------------------------------------------------------------

def _reference_forward(raw_params, noise_nchw):
    dn = ("NHWC", "HWIO", "NHWC")

    def convt(x, p, stride, padding):
        w = jnp.transpose(p["w"][:, :, ::-1, ::-1], (2, 3, 0, 1))  # HWIO
        pad = 4 - 1 - padding
        y = jax.lax.conv_general_dilated(
            x.astype(_COMPUTE_DTYPE), w.astype(_COMPUTE_DTYPE),
            window_strides=(1, 1), padding=[(pad, pad), (pad, pad)],
            lhs_dilation=(stride, stride), dimension_numbers=dn,
            preferred_element_type=jnp.float32)
        return y + p["b"]

    def bn_relu(y, p, eps=1e-5):
        mu = jnp.mean(y, axis=(0, 1, 2), keepdims=True)
        var = jnp.mean((y - mu) ** 2, axis=(0, 1, 2), keepdims=True)
        y = (y - mu) * jax.lax.rsqrt(var + eps) * p["gamma"] + p["beta"]
        return jnp.maximum(y, 0.0)

    x = jnp.transpose(noise_nchw, (0, 2, 3, 1))
    x = jnp.maximum(convt(x, raw_params[0], 1, 0), 0.0).astype(_COMPUTE_DTYPE)
    for p in raw_params[1:4]:
        x = bn_relu(convt(x, p, 2, 1), p).astype(_COMPUTE_DTYPE)
    x = jnp.tanh(convt(x, raw_params[4], 2, 1))
    return jnp.transpose(x, (0, 3, 1, 2))


if __name__ == "__main__":
    # Module-consistent small configuration:
    #   Generator(noise_size=32, image_size=512) -> hidden_size = 8
    #   channels 32 -> 128 -> 64 -> 32 -> 16 -> 3, spatial 1 -> 4 -> ... -> 64
    noise_size, image_size, batch = 32, 512, 2

    key = jax.random.PRNGKey(0)
    kp, kn = jax.random.split(key)
    raw_params = init_generator_params(kp, noise_size=noise_size,
                                       image_size=image_size)
    params = prepare_generator_params(raw_params)
    noise = jax.random.normal(kn, (batch, noise_size, 1, 1), jnp.float32)

    out = jax.block_until_ready(jax.jit(generator_forward)(params, noise))

    assert out.shape == (batch, 3, 64, 64), out.shape
    assert bool(jnp.all(jnp.isfinite(out)))
    assert bool(jnp.all(jnp.abs(out) <= 1.0))  # tanh range

    ref = jax.block_until_ready(jax.jit(_reference_forward)(raw_params, noise))
    err = float(jnp.max(jnp.abs(out - ref)))
    assert err < 2e-2, f"max abs err vs XLA reference: {err}"

    print("KERNEL_OK")
</pallas_src>

<mosaic_0001>
module attributes {stable_mosaic.version = 11 : i64} {
  func.func @_matmul_act_kernel(%arg0: i32, %arg1: memref<2x32xbf16, #tpu.memory_space<vmem>>, %arg2: memref<32x2048xbf16, #tpu.memory_space<vmem>>, %arg3: memref<1x2048xf32, #tpu.memory_space<vmem>>, %arg4: memref<2x2048xbf16, #tpu.memory_space<vmem>>) attributes {dimension_semantics = [#tpu.dimension_semantics<parallel>], iteration_bounds = array<i64: 1>, scalar_prefetch = 0 : i64, scratch_operands = 0 : i64, tpu.core_type = #tpu.core_type<tc>, window_params = [{transform_indices = @transform_0, window_bounds = array<i64: 2, 32>}, {pipeline_mode = #tpu.pipeline_mode<synchronous>, transform_indices = @transform_1, window_bounds = array<i64: 32, 2048>}, {pipeline_mode = #tpu.pipeline_mode<synchronous>, transform_indices = @transform_2, window_bounds = array<i64: 1, 2048>}, {transform_indices = @transform_3, window_bounds = array<i64: 2, 2048>}]} {
    %c0 = arith.constant 0 : index
    %c0_0 = arith.constant 0 : index
    %0 = vector.load %arg1[%c0, %c0_0] : memref<2x32xbf16, #tpu.memory_space<vmem>>, vector<2x32xbf16>
    %c0_1 = arith.constant 0 : index
    %c0_2 = arith.constant 0 : index
    %1 = vector.load %arg2[%c0_1, %c0_2] : memref<32x2048xbf16, #tpu.memory_space<vmem>>, vector<32x2048xbf16>
    %cst = arith.constant dense<0.000000e+00> : vector<2x2048xf32>
    %2 = tpu.matmul %0, %1, %cst {dimension_numbers = #tpu.dot_dimension_numbers<[1], [0], [0], [1], [0, 0, 1, 1], [], []>} : vector<2x32xbf16>, vector<32x2048xbf16>, vector<2x2048xf32> -> vector<2x2048xf32>
    %c0_3 = arith.constant 0 : index
    %c0_4 = arith.constant 0 : index
    %3 = vector.load %arg3[%c0_3, %c0_4] : memref<1x2048xf32, #tpu.memory_space<vmem>>, vector<1x2048xf32>
    %4 = vector.broadcast %3 : vector<1x2048xf32> to vector<2x2048xf32>
    %5 = arith.addf %2, %4 : vector<2x2048xf32>
    %cst_5 = arith.constant 0.000000e+00 : f32
    %6 = vector.broadcast %cst_5 : f32 to vector<2x2048xf32>
    %7 = arith.maximumf %5, %6 : vector<2x2048xf32>
    %8 = arith.truncf %7 : vector<2x2048xf32> to vector<2x2048xbf16>
    %c0_6 = arith.constant 0 : index
    %c0_7 = arith.constant 0 : index
    %9 = vector.load %arg4[%c0_6, %c0_7] : memref<2x2048xbf16, #tpu.memory_space<vmem>>, vector<2x2048xbf16>
    tpu.vector_store %arg4[%c0_6, %c0_7], %8 {strides = array<i32>} : memref<2x2048xbf16, #tpu.memory_space<vmem>>, vector<2x2048xbf16>,
    return
  }
  func.func @transform_0(%arg0: i32) -> (i32, i32) {
    %c0_i32 = arith.constant 0 : i32
    %c0_i32_0 = arith.constant 0 : i32
    return %arg0, %c0_i32 : i32, i32
  }
  func.func @transform_1(%arg0: i32) -> (i32, i32) {
    %c0_i32 = arith.constant 0 : i32
    %c0_i32_0 = arith.constant 0 : i32
    %c0_i32_1 = arith.constant 0 : i32
    return %c0_i32, %c0_i32_0 : i32, i32
  }
  func.func @transform_2(%arg0: i32) -> (i32, i32) {
    %c0_i32 = arith.constant 0 : i32
    %c0_i32_0 = arith.constant 0 : i32
    %c0_i32_1 = arith.constant 0 : i32
    return %c0_i32, %c0_i32_0 : i32, i32
  }
  func.func @transform_3(%arg0: i32) -> (i32, i32) {
    %c0_i32 = arith.constant 0 : i32
    %c0_i32_0 = arith.constant 0 : i32
    return %arg0, %c0_i32 : i32, i32
  }
}

module attributes {stable_mosaic.version = 11 : i64} {
  func.func @_matmul_bn_relu_kernel(%arg0: i32, %arg1: memref<32x1152xbf16, #tpu.memory_space<vmem>>, %arg2: memref<1152x256xbf16, #tpu.memory_space<vmem>>, %arg3: memref<1x256xf32, #tpu.memory_space<vmem>>, %arg4: memref<1x64xf32, #tpu.memory_space<vmem>>, %arg5: memref<1x64xf32, #tpu.memory_space<vmem>>, %arg6: memref<32x256xbf16, #tpu.memory_space<vmem>>) attributes {dimension_semantics = [#tpu.dimension_semantics<arbitrary>], iteration_bounds = array<i64: 1>, scalar_prefetch = 0 : i64, scratch_operands = 0 : i64, tpu.core_type = #tpu.core_type<tc>, window_params = [{pipeline_mode = #tpu.pipeline_mode<synchronous>, transform_indices = @transform_0, window_bounds = array<i64: 32, 1152>}, {pipeline_mode = #tpu.pipeline_mode<synchronous>, transform_indices = @transform_1, window_bounds = array<i64: 1152, 256>}, {pipeline_mode = #tpu.pipeline_mode<synchronous>, transform_indices = @transform_2, window_bounds = array<i64: 1, 256>}, {pipeline_mode = #tpu.pipeline_mode<synchronous>, transform_indices = @transform_3, window_bounds = array<i64: 1, 64>}, {pipeline_mode = #tpu.pipeline_mode<synchronous>, transform_indices = @transform_4, window_bounds = array<i64: 1, 64>}, {pipeline_mode = #tpu.pipeline_mode<synchronous>, transform_indices = @transform_5, window_bounds = array<i64: 32, 256>}]} {
    %c0 = arith.constant 0 : index
    %c0_0 = arith.constant 0 : index
    %0 = vector.load %arg1[%c0, %c0_0] : memref<32x1152xbf16, #tpu.memory_space<vmem>>, vector<32x1152xbf16>
    %c0_1 = arith.constant 0 : index
    %c0_2 = arith.constant 0 : index
    %1 = vector.load %arg2[%c0_1, %c0_2] : memref<1152x256xbf16, #tpu.memory_space<vmem>>, vector<1152x256xbf16>
    %cst = arith.constant dense<0.000000e+00> : vector<32x256xf32>
    %2 = tpu.matmul %0, %1, %cst {dimension_numbers = #tpu.dot_dimension_numbers<[1], [0], [0], [1], [0, 0, 1, 1], [], []>} : vector<32x1152xbf16>, vector<1152x256xbf16>, vector<32x256xf32> -> vector<32x256xf32>
    %c0_3 = arith.constant 0 : index
    %c0_4 = arith.constant 0 : index
    %3 = vector.load %arg3[%c0_3, %c0_4] : memref<1x256xf32, #tpu.memory_space<vmem>>, vector<1x256xf32>
    %4 = vector.broadcast %3 : vector<1x256xf32> to vector<32x256xf32>
    %5 = arith.addf %2, %4 : vector<32x256xf32>
    %cst_5 = arith.constant dense<0.000000e+00> : vector<256xf32>
    %6 = vector.multi_reduction <add>, %5, %cst_5 [0] : vector<32x256xf32> to vector<256xf32>
    %7 = vector.shape_cast %6 : vector<256xf32> to vector<1x256xf32>
    %8 = arith.mulf %5, %5 : vector<32x256xf32>
    %cst_6 = arith.constant dense<0.000000e+00> : vector<256xf32>
    %9 = vector.multi_reduction <add>, %8, %cst_6 [0] : vector<32x256xf32> to vector<256xf32>
    %10 = vector.shape_cast %9 : vector<256xf32> to vector<1x256xf32>
    %11 = vector.extract_strided_slice %7 {offsets = [0, 0], sizes = [1, 64], strides = [1, 1]} : vector<1x256xf32> to vector<1x64xf32>
    %12 = vector.extract_strided_slice %7 {offsets = [0, 64], sizes = [1, 64], strides = [1, 1]} : vector<1x256xf32> to vector<1x64xf32>
    %13 = arith.addf %11, %12 : vector<1x64xf32>
    %14 = vector.extract_strided_slice %7 {offsets = [0, 128], sizes = [1, 64], strides = [1, 1]} : vector<1x256xf32> to vector<1x64xf32>
    %15 = arith.addf %13, %14 : vector<1x64xf32>
    %16 = vector.extract_strided_slice %7 {offsets = [0, 192], sizes = [1, 64], strides = [1, 1]} : vector<1x256xf32> to vector<1x64xf32>
    %17 = arith.addf %15, %16 : vector<1x64xf32>
    %18 = vector.extract_strided_slice %10 {offsets = [0, 0], sizes = [1, 64], strides = [1, 1]} : vector<1x256xf32> to vector<1x64xf32>
    %19 = vector.extract_strided_slice %10 {offsets = [0, 64], sizes = [1, 64], strides = [1, 1]} : vector<1x256xf32> to vector<1x64xf32>
    %20 = arith.addf %18, %19 : vector<1x64xf32>
    %21 = vector.extract_strided_slice %10 {offsets = [0, 128], sizes = [1, 64], strides = [1, 1]} : vector<1x256xf32> to vector<1x64xf32>
    %22 = arith.addf %20, %21 : vector<1x64xf32>
    %23 = vector.extract_strided_slice %10 {offsets = [0, 192], sizes = [1, 64], strides = [1, 1]} : vector<1x256xf32> to vector<1x64xf32>
    %24 = arith.addf %22, %23 : vector<1x64xf32>
    %cst_7 = arith.constant 1.280000e+02 : f32
    %25 = vector.broadcast %cst_7 : f32 to vector<1x64xf32>
    %26 = arith.divf %17, %25 : vector<1x64xf32>
    %cst_8 = arith.constant 1.280000e+02 : f32
    %27 = vector.broadcast %cst_8 : f32 to vector<1x64xf32>
    %28 = arith.divf %24, %27 : vector<1x64xf32>
    %29 = arith.mulf %26, %26 : vector<1x64xf32>
    %30 = arith.subf %28, %29 : vector<1x64xf32>
    %cst_9 = arith.constant 0.000000e+00 : f32
    %31 = vector.broadcast %cst_9 : f32 to vector<1x64xf32>
    %32 = arith.maximumf %30, %31 : vector<1x64xf32>
    %c0_10 = arith.constant 0 : index
    %c0_11 = arith.constant 0 : index
    %33 = vector.load %arg4[%c0_10, %c0_11] : memref<1x64xf32, #tpu.memory_space<vmem>>, vector<1x64xf32>
    %cst_12 = arith.constant 9.99999974E-6 : f32
    %34 = vector.broadcast %cst_12 : f32 to vector<1x64xf32>
    %35 = arith.addf %32, %34 : vector<1x64xf32>
    %36 = math.rsqrt %35 : vector<1x64xf32>
    %37 = arith.mulf %33, %36 : vector<1x64xf32>
    %c0_13 = arith.constant 0 : index
    %c0_14 = arith.constant 0 : index
    %38 = vector.load %arg5[%c0_13, %c0_14] : memref<1x64xf32, #tpu.memory_space<vmem>>, vector<1x64xf32>
    %39 = arith.mulf %26, %37 : vector<1x64xf32>
    %40 = arith.subf %38, %39 : vector<1x64xf32>
    %41 = tpu.concatenate %37, %37, %37, %37 in 1 : vector<1x64xf32>, vector<1x64xf32>, vector<1x64xf32>, vector<1x64xf32> -> vector<1x256xf32>
    %42 = tpu.concatenate %40, %40, %40, %40 in 1 : vector<1x64xf32>, vector<1x64xf32>, vector<1x64xf32>, vector<1x64xf32> -> vector<1x256xf32>
    %43 = vector.broadcast %41 : vector<1x256xf32> to vector<32x256xf32>
    %44 = arith.mulf %5, %43 : vector<32x256xf32>
    %45 = vector.broadcast %42 : vector<1x256xf32> to vector<32x256xf32>
    %46 = arith.addf %44, %45 : vector<32x256xf32>
    %cst_15 = arith.constant 0.000000e+00 : f32
    %47 = vector.broadcast %cst_15 : f32 to vector<32x256xf32>
    %48 = arith.maximumf %46, %47 : vector<32x256xf32>
    %49 = arith.truncf %48 : vector<32x256xf32> to vector<32x256xbf16>
    %c0_16 = arith.constant 0 : index
    %c0_17 = arith.constant 0 : index
    %50 = vector.load %arg6[%c0_16, %c0_17] : memref<32x256xbf16, #tpu.memory_space<vmem>>, vector<32x256xbf16>
    tpu.vector_store %arg6[%c0_16, %c0_17], %49 {strides = array<i32>} : memref<32x256xbf16, #tpu.memory_space<vmem>>, vector<32x256xbf16>,
    return
  }
  func.func @transform_0(%arg0: i32) -> (i32, i32) {
    %c0_i32 = arith.constant 0 : i32
    %c0_i32_0 = arith.constant 0 : i32
    %c0_i32_1 = arith.constant 0 : i32
    return %c0_i32, %c0_i32_0 : i32, i32
  }
  func.func @transform_1(%arg0: i32) -> (i32, i32) {
    %c0_i32 = arith.constant 0 : i32
    %c0_i32_0 = arith.constant 0 : i32
    %c0_i32_1 = arith.constant 0 : i32
    return %c0_i32, %c0_i32_0 : i32, i32
  }
  func.func @transform_2(%arg0: i32) -> (i32, i32) {
    %c0_i32 = arith.constant 0 : i32
    %c0_i32_0 = arith.constant 0 : i32
    %c0_i32_1 = arith.constant 0 : i32
    return %c0_i32, %c0_i32_0 : i32, i32
  }
  func.func @transform_3(%arg0: i32) -> (i32, i32) {
    %c0_i32 = arith.constant 0 : i32
    %c0_i32_0 = arith.constant 0 : i32
    %c0_i32_1 = arith.constant 0 : i32
    return %c0_i32, %c0_i32_0 : i32, i32
  }
  func.func @transform_4(%arg0: i32) -> (i32, i32) {
    %c0_i32 = arith.constant 0 : i32
    %c0_i32_0 = arith.constant 0 : i32
    %c0_i32_1 = arith.constant 0 : i32
    return %c0_i32, %c0_i32_0 : i32, i32
  }
  func.func @transform_5(%arg0: i32) -> (i32, i32) {
    %c0_i32 = arith.constant 0 : i32
    %c0_i32_0 = arith.constant 0 : i32
    %c0_i32_1 = arith.constant 0 : i32
    return %c0_i32, %c0_i32_0 : i32, i32
  }
}

module attributes {stable_mosaic.version = 11 : i64} {
  func.func @_matmul_bn_relu_kernel(%arg0: i32, %arg1: memref<128x576xbf16, #tpu.memory_space<vmem>>, %arg2: memref<576x128xbf16, #tpu.memory_space<vmem>>, %arg3: memref<1x128xf32, #tpu.memory_space<vmem>>, %arg4: memref<1x32xf32, #tpu.memory_space<vmem>>, %arg5: memref<1x32xf32, #tpu.memory_space<vmem>>, %arg6: memref<128x128xbf16, #tpu.memory_space<vmem>>) attributes {dimension_semantics = [#tpu.dimension_semantics<arbitrary>], iteration_bounds = array<i64: 1>, scalar_prefetch = 0 : i64, scratch_operands = 0 : i64, tpu.core_type = #tpu.core_type<tc>, window_params = [{pipeline_mode = #tpu.pipeline_mode<synchronous>, transform_indices = @transform_0, window_bounds = array<i64: 128, 576>}, {pipeline_mode = #tpu.pipeline_mode<synchronous>, transform_indices = @transform_1, window_bounds = array<i64: 576, 128>}, {pipeline_mode = #tpu.pipeline_mode<synchronous>, transform_indices = @transform_2, window_bounds = array<i64: 1, 128>}, {pipeline_mode = #tpu.pipeline_mode<synchronous>, transform_indices = @transform_3, window_bounds = array<i64: 1, 32>}, {pipeline_mode = #tpu.pipeline_mode<synchronous>, transform_indices = @transform_4, window_bounds = array<i64: 1, 32>}, {pipeline_mode = #tpu.pipeline_mode<synchronous>, transform_indices = @transform_5, window_bounds = array<i64: 128, 128>}]} {
    %c0 = arith.constant 0 : index
    %c0_0 = arith.constant 0 : index
    %0 = vector.load %arg1[%c0, %c0_0] : memref<128x576xbf16, #tpu.memory_space<vmem>>, vector<128x576xbf16>
    %c0_1 = arith.constant 0 : index
    %c0_2 = arith.constant 0 : index
    %1 = vector.load %arg2[%c0_1, %c0_2] : memref<576x128xbf16, #tpu.memory_space<vmem>>, vector<576x128xbf16>
    %cst = arith.constant dense<0.000000e+00> : vector<128x128xf32>
    %2 = tpu.matmul %0, %1, %cst {dimension_numbers = #tpu.dot_dimension_numbers<[1], [0], [0], [1], [0, 0, 1, 1], [], []>} : vector<128x576xbf16>, vector<576x128xbf16>, vector<128x128xf32> -> vector<128x128xf32>
    %c0_3 = arith.constant 0 : index
    %c0_4 = arith.constant 0 : index
    %3 = vector.load %arg3[%c0_3, %c0_4] : memref<1x128xf32, #tpu.memory_space<vmem>>, vector<1x128xf32>
    %4 = vector.broadcast %3 : vector<1x128xf32> to vector<128x128xf32>
    %5 = arith.addf %2, %4 : vector<128x128xf32>
    %cst_5 = arith.constant dense<0.000000e+00> : vector<128xf32>
    %6 = vector.multi_reduction <add>, %5, %cst_5 [0] : vector<128x128xf32> to vector<128xf32>
    %7 = vector.shape_cast %6 : vector<128xf32> to vector<1x128xf32>
    %8 = arith.mulf %5, %5 : vector<128x128xf32>
    %cst_6 = arith.constant dense<0.000000e+00> : vector<128xf32>
    %9 = vector.multi_reduction <add>, %8, %cst_6 [0] : vector<128x128xf32> to vector<128xf32>
    %10 = vector.shape_cast %9 : vector<128xf32> to vector<1x128xf32>
    %11 = vector.extract_strided_slice %7 {offsets = [0, 0], sizes = [1, 32], strides = [1, 1]} : vector<1x128xf32> to vector<1x32xf32>
    %12 = vector.extract_strided_slice %7 {offsets = [0, 32], sizes = [1, 32], strides = [1, 1]} : vector<1x128xf32> to vector<1x32xf32>
    %13 = arith.addf %11, %12 : vector<1x32xf32>
    %14 = vector.extract_strided_slice %7 {offsets = [0, 64], sizes = [1, 32], strides = [1, 1]} : vector<1x128xf32> to vector<1x32xf32>
    %15 = arith.addf %13, %14 : vector<1x32xf32>
    %16 = vector.extract_strided_slice %7 {offsets = [0, 96], sizes = [1, 32], strides = [1, 1]} : vector<1x128xf32> to vector<1x32xf32>
    %17 = arith.addf %15, %16 : vector<1x32xf32>
    %18 = vector.extract_strided_slice %10 {offsets = [0, 0], sizes = [1, 32], strides = [1, 1]} : vector<1x128xf32> to vector<1x32xf32>
    %19 = vector.extract_strided_slice %10 {offsets = [0, 32], sizes = [1, 32], strides = [1, 1]} : vector<1x128xf32> to vector<1x32xf32>
    %20 = arith.addf %18, %19 : vector<1x32xf32>
    %21 = vector.extract_strided_slice %10 {offsets = [0, 64], sizes = [1, 32], strides = [1, 1]} : vector<1x128xf32> to vector<1x32xf32>
    %22 = arith.addf %20, %21 : vector<1x32xf32>
    %23 = vector.extract_strided_slice %10 {offsets = [0, 96], sizes = [1, 32], strides = [1, 1]} : vector<1x128xf32> to vector<1x32xf32>
    %24 = arith.addf %22, %23 : vector<1x32xf32>
    %cst_7 = arith.constant 5.120000e+02 : f32
    %25 = vector.broadcast %cst_7 : f32 to vector<1x32xf32>
    %26 = arith.divf %17, %25 : vector<1x32xf32>
    %cst_8 = arith.constant 5.120000e+02 : f32
    %27 = vector.broadcast %cst_8 : f32 to vector<1x32xf32>
    %28 = arith.divf %24, %27 : vector<1x32xf32>
    %29 = arith.mulf %26, %26 : vector<1x32xf32>
    %30 = arith.subf %28, %29 : vector<1x32xf32>
    %cst_9 = arith.constant 0.000000e+00 : f32
    %31 = vector.broadcast %cst_9 : f32 to vector<1x32xf32>
    %32 = arith.maximumf %30, %31 : vector<1x32xf32>
    %c0_10 = arith.constant 0 : index
    %c0_11 = arith.constant 0 : index
    %33 = vector.load %arg4[%c0_10, %c0_11] : memref<1x32xf32, #tpu.memory_space<vmem>>, vector<1x32xf32>
    %cst_12 = arith.constant 9.99999974E-6 : f32
    %34 = vector.broadcast %cst_12 : f32 to vector<1x32xf32>
    %35 = arith.addf %32, %34 : vector<1x32xf32>
    %36 = math.rsqrt %35 : vector<1x32xf32>
    %37 = arith.mulf %33, %36 : vector<1x32xf32>
    %c0_13 = arith.constant 0 : index
    %c0_14 = arith.constant 0 : index
    %38 = vector.load %arg5[%c0_13, %c0_14] : memref<1x32xf32, #tpu.memory_space<vmem>>, vector<1x32xf32>
    %39 = arith.mulf %26, %37 : vector<1x32xf32>
    %40 = arith.subf %38, %39 : vector<1x32xf32>
    %41 = tpu.concatenate %37, %37, %37, %37 in 1 : vector<1x32xf32>, vector<1x32xf32>, vector<1x32xf32>, vector<1x32xf32> -> vector<1x128xf32>
    %42 = tpu.concatenate %40, %40, %40, %40 in 1 : vector<1x32xf32>, vector<1x32xf32>, vector<1x32xf32>, vector<1x32xf32> -> vector<1x128xf32>
    %43 = vector.broadcast %41 : vector<1x128xf32> to vector<128x128xf32>
    %44 = arith.mulf %5, %43 : vector<128x128xf32>
    %45 = vector.broadcast %42 : vector<1x128xf32> to vector<128x128xf32>
    %46 = arith.addf %44, %45 : vector<128x128xf32>
    %cst_15 = arith.constant 0.000000e+00 : f32
    %47 = vector.broadcast %cst_15 : f32 to vector<128x128xf32>
    %48 = arith.maximumf %46, %47 : vector<128x128xf32>
    %49 = arith.truncf %48 : vector<128x128xf32> to vector<128x128xbf16>
    %c0_16 = arith.constant 0 : index
    %c0_17 = arith.constant 0 : index
    %50 = vector.load %arg6[%c0_16, %c0_17] : memref<128x128xbf16, #tpu.memory_space<vmem>>, vector<128x128xbf16>
    tpu.vector_store %arg6[%c0_16, %c0_17], %49 {strides = array<i32>} : memref<128x128xbf16, #tpu.memory_space<vmem>>, vector<128x128xbf16>,
    return
  }
  func.func @transform_0(%arg0: i32) -> (i32, i32) {
    %c0_i32 = arith.constant 0 : i32
    %c0_i32_0 = arith.constant 0 : i32
    %c0_i32_1 = arith.constant 0 : i32
    return %c0_i32, %c0_i32_0 : i32, i32
  }
  func.func @transform_1(%arg0: i32) -> (i32, i32) {
    %c0_i32 = arith.constant 0 : i32
    %c0_i32_0 = arith.constant 0 : i32
    %c0_i32_1 = arith.constant 0 : i32
    return %c0_i32, %c0_i32_0 : i32, i32
  }
  func.func @transform_2(%arg0: i32) -> (i32, i32) {
    %c0_i32 = arith.constant 0 : i32
    %c0_i32_0 = arith.constant 0 : i32
    %c0_i32_1 = arith.constant 0 : i32
    return %c0_i32, %c0_i32_0 : i32, i32
  }
  func.func @transform_3(%arg0: i32) -> (i32, i32) {
    %c0_i32 = arith.constant 0 : i32
    %c0_i32_0 = arith.constant 0 : i32
    %c0_i32_1 = arith.constant 0 : i32
    return %c0_i32, %c0_i32_0 : i32, i32
  }
  func.func @transform_4(%arg0: i32) -> (i32, i32) {
    %c0_i32 = arith.constant 0 : i32
    %c0_i32_0 = arith.constant 0 : i32
    %c0_i32_1 = arith.constant 0 : i32
    return %c0_i32, %c0_i32_0 : i32, i32
  }
  func.func @transform_5(%arg0: i32) -> (i32, i32) {
    %c0_i32 = arith.constant 0 : i32
    %c0_i32_0 = arith.constant 0 : i32
    %c0_i32_1 = arith.constant 0 : i32
    return %c0_i32, %c0_i32_0 : i32, i32
  }
}

module attributes {stable_mosaic.version = 11 : i64} {
  func.func @_matmul_bn_relu_kernel(%arg0: i32, %arg1: memref<512x288xbf16, #tpu.memory_space<vmem>>, %arg2: memref<288x64xbf16, #tpu.memory_space<vmem>>, %arg3: memref<1x64xf32, #tpu.memory_space<vmem>>, %arg4: memref<1x16xf32, #tpu.memory_space<vmem>>, %arg5: memref<1x16xf32, #tpu.memory_space<vmem>>, %arg6: memref<512x64xbf16, #tpu.memory_space<vmem>>) attributes {dimension_semantics = [#tpu.dimension_semantics<arbitrary>], iteration_bounds = array<i64: 1>, scalar_prefetch = 0 : i64, scratch_operands = 0 : i64, tpu.core_type = #tpu.core_type<tc>, window_params = [{pipeline_mode = #tpu.pipeline_mode<synchronous>, transform_indices = @transform_0, window_bounds = array<i64: 512, 288>}, {pipeline_mode = #tpu.pipeline_mode<synchronous>, transform_indices = @transform_1, window_bounds = array<i64: 288, 64>}, {pipeline_mode = #tpu.pipeline_mode<synchronous>, transform_indices = @transform_2, window_bounds = array<i64: 1, 64>}, {pipeline_mode = #tpu.pipeline_mode<synchronous>, transform_indices = @transform_3, window_bounds = array<i64: 1, 16>}, {pipeline_mode = #tpu.pipeline_mode<synchronous>, transform_indices = @transform_4, window_bounds = array<i64: 1, 16>}, {pipeline_mode = #tpu.pipeline_mode<synchronous>, transform_indices = @transform_5, window_bounds = array<i64: 512, 64>}]} {
    %c0 = arith.constant 0 : index
    %c0_0 = arith.constant 0 : index
    %0 = vector.load %arg1[%c0, %c0_0] : memref<512x288xbf16, #tpu.memory_space<vmem>>, vector<512x288xbf16>
    %c0_1 = arith.constant 0 : index
    %c0_2 = arith.constant 0 : index
    %1 = vector.load %arg2[%c0_1, %c0_2] : memref<288x64xbf16, #tpu.memory_space<vmem>>, vector<288x64xbf16>
    %cst = arith.constant dense<0.000000e+00> : vector<512x64xf32>
    %2 = tpu.matmul %0, %1, %cst {dimension_numbers = #tpu.dot_dimension_numbers<[1], [0], [0], [1], [0, 0, 1, 1], [], []>} : vector<512x288xbf16>, vector<288x64xbf16>, vector<512x64xf32> -> vector<512x64xf32>
    %c0_3 = arith.constant 0 : index
    %c0_4 = arith.constant 0 : index
    %3 = vector.load %arg3[%c0_3, %c0_4] : memref<1x64xf32, #tpu.memory_space<vmem>>, vector<1x64xf32>
    %4 = vector.broadcast %3 : vector<1x64xf32> to vector<512x64xf32>
    %5 = arith.addf %2, %4 : vector<512x64xf32>
    %cst_5 = arith.constant dense<0.000000e+00> : vector<64xf32>
    %6 = vector.multi_reduction <add>, %5, %cst_5 [0] : vector<512x64xf32> to vector<64xf32>
    %7 = vector.shape_cast %6 : vector<64xf32> to vector<1x64xf32>
    %8 = arith.mulf %5, %5 : vector<512x64xf32>
    %cst_6 = arith.constant dense<0.000000e+00> : vector<64xf32>
    %9 = vector.multi_reduction <add>, %8, %cst_6 [0] : vector<512x64xf32> to vector<64xf32>
    %10 = vector.shape_cast %9 : vector<64xf32> to vector<1x64xf32>
    %11 = vector.extract_strided_slice %7 {offsets = [0, 0], sizes = [1, 16], strides = [1, 1]} : vector<1x64xf32> to vector<1x16xf32>
    %12 = vector.extract_strided_slice %7 {offsets = [0, 16], sizes = [1, 16], strides = [1, 1]} : vector<1x64xf32> to vector<1x16xf32>
    %13 = arith.addf %11, %12 : vector<1x16xf32>
    %14 = vector.extract_strided_slice %7 {offsets = [0, 32], sizes = [1, 16], strides = [1, 1]} : vector<1x64xf32> to vector<1x16xf32>
    %15 = arith.addf %13, %14 : vector<1x16xf32>
    %16 = vector.extract_strided_slice %7 {offsets = [0, 48], sizes = [1, 16], strides = [1, 1]} : vector<1x64xf32> to vector<1x16xf32>
    %17 = arith.addf %15, %16 : vector<1x16xf32>
    %18 = vector.extract_strided_slice %10 {offsets = [0, 0], sizes = [1, 16], strides = [1, 1]} : vector<1x64xf32> to vector<1x16xf32>
    %19 = vector.extract_strided_slice %10 {offsets = [0, 16], sizes = [1, 16], strides = [1, 1]} : vector<1x64xf32> to vector<1x16xf32>
    %20 = arith.addf %18, %19 : vector<1x16xf32>
    %21 = vector.extract_strided_slice %10 {offsets = [0, 32], sizes = [1, 16], strides = [1, 1]} : vector<1x64xf32> to vector<1x16xf32>
    %22 = arith.addf %20, %21 : vector<1x16xf32>
    %23 = vector.extract_strided_slice %10 {offsets = [0, 48], sizes = [1, 16], strides = [1, 1]} : vector<1x64xf32> to vector<1x16xf32>
    %24 = arith.addf %22, %23 : vector<1x16xf32>
    %cst_7 = arith.constant 2.048000e+03 : f32
    %25 = vector.broadcast %cst_7 : f32 to vector<1x16xf32>
    %26 = arith.divf %17, %25 : vector<1x16xf32>
    %cst_8 = arith.constant 2.048000e+03 : f32
    %27 = vector.broadcast %cst_8 : f32 to vector<1x16xf32>
    %28 = arith.divf %24, %27 : vector<1x16xf32>
    %29 = arith.mulf %26, %26 : vector<1x16xf32>
    %30 = arith.subf %28, %29 : vector<1x16xf32>
    %cst_9 = arith.constant 0.000000e+00 : f32
    %31 = vector.broadcast %cst_9 : f32 to vector<1x16xf32>
    %32 = arith.maximumf %30, %31 : vector<1x16xf32>
    %c0_10 = arith.constant 0 : index
    %c0_11 = arith.constant 0 : index
    %33 = vector.load %arg4[%c0_10, %c0_11] : memref<1x16xf32, #tpu.memory_space<vmem>>, vector<1x16xf32>
    %cst_12 = arith.constant 9.99999974E-6 : f32
    %34 = vector.broadcast %cst_12 : f32 to vector<1x16xf32>
    %35 = arith.addf %32, %34 : vector<1x16xf32>
    %36 = math.rsqrt %35 : vector<1x16xf32>
    %37 = arith.mulf %33, %36 : vector<1x16xf32>
    %c0_13 = arith.constant 0 : index
    %c0_14 = arith.constant 0 : index
    %38 = vector.load %arg5[%c0_13, %c0_14] : memref<1x16xf32, #tpu.memory_space<vmem>>, vector<1x16xf32>
    %39 = arith.mulf %26, %37 : vector<1x16xf32>
    %40 = arith.subf %38, %39 : vector<1x16xf32>
    %41 = tpu.concatenate %37, %37, %37, %37 in 1 : vector<1x16xf32>, vector<1x16xf32>, vector<1x16xf32>, vector<1x16xf32> -> vector<1x64xf32>
    %42 = tpu.concatenate %40, %40, %40, %40 in 1 : vector<1x16xf32>, vector<1x16xf32>, vector<1x16xf32>, vector<1x16xf32> -> vector<1x64xf32>
    %43 = vector.broadcast %41 : vector<1x64xf32> to vector<512x64xf32>
    %44 = arith.mulf %5, %43 : vector<512x64xf32>
    %45 = vector.broadcast %42 : vector<1x64xf32> to vector<512x64xf32>
    %46 = arith.addf %44, %45 : vector<512x64xf32>
    %cst_15 = arith.constant 0.000000e+00 : f32
    %47 = vector.broadcast %cst_15 : f32 to vector<512x64xf32>
    %48 = arith.maximumf %46, %47 : vector<512x64xf32>
    %49 = arith.truncf %48 : vector<512x64xf32> to vector<512x64xbf16>
    %c0_16 = arith.constant 0 : index
    %c0_17 = arith.constant 0 : index
    %50 = vector.load %arg6[%c0_16, %c0_17] : memref<512x64xbf16, #tpu.memory_space<vmem>>, vector<512x64xbf16>
    tpu.vector_store %arg6[%c0_16, %c0_17], %49 {strides = array<i32>} : memref<512x64xbf16, #tpu.memory_space<vmem>>, vector<512x64xbf16>,
    return
  }
  func.func @transform_0(%arg0: i32) -> (i32, i32) {
    %c0_i32 = arith.constant 0 : i32
    %c0_i32_0 = arith.constant 0 : i32
    %c0_i32_1 = arith.constant 0 : i32
    return %c0_i32, %c0_i32_0 : i32, i32
  }
  func.func @transform_1(%arg0: i32) -> (i32, i32) {
    %c0_i32 = arith.constant 0 : i32
    %c0_i32_0 = arith.constant 0 : i32
    %c0_i32_1 = arith.constant 0 : i32
    return %c0_i32, %c0_i32_0 : i32, i32
  }
  func.func @transform_2(%arg0: i32) -> (i32, i32) {
    %c0_i32 = arith.constant 0 : i32
    %c0_i32_0 = arith.constant 0 : i32
    %c0_i32_1 = arith.constant 0 : i32
    return %c0_i32, %c0_i32_0 : i32, i32
  }
  func.func @transform_3(%arg0: i32) -> (i32, i32) {
    %c0_i32 = arith.constant 0 : i32
    %c0_i32_0 = arith.constant 0 : i32
    %c0_i32_1 = arith.constant 0 : i32
    return %c0_i32, %c0_i32_0 : i32, i32
  }
  func.func @transform_4(%arg0: i32) -> (i32, i32) {
    %c0_i32 = arith.constant 0 : i32
    %c0_i32_0 = arith.constant 0 : i32
    %c0_i32_1 = arith.constant 0 : i32
    return %c0_i32, %c0_i32_0 : i32, i32
  }
  func.func @transform_5(%arg0: i32) -> (i32, i32) {
    %c0_i32 = arith.constant 0 : i32
    %c0_i32_0 = arith.constant 0 : i32
    %c0_i32_1 = arith.constant 0 : i32
    return %c0_i32, %c0_i32_0 : i32, i32
  }
}

module attributes {stable_mosaic.version = 11 : i64} {
  func.func @_matmul_act_kernel(%arg0: i32, %arg1: memref<512x144xbf16, #tpu.memory_space<vmem>>, %arg2: memref<144x128xbf16, #tpu.memory_space<vmem>>, %arg3: memref<1x128xf32, #tpu.memory_space<vmem>>, %arg4: memref<512x128xf32, #tpu.memory_space<vmem>>) attributes {dimension_semantics = [#tpu.dimension_semantics<parallel>], iteration_bounds = array<i64: 4>, scalar_prefetch = 0 : i64, scratch_operands = 0 : i64, tpu.core_type = #tpu.core_type<tc>, window_params = [{transform_indices = @transform_0, window_bounds = array<i64: 512, 144>}, {pipeline_mode = #tpu.pipeline_mode<synchronous>, transform_indices = @transform_1, window_bounds = array<i64: 144, 128>}, {pipeline_mode = #tpu.pipeline_mode<synchronous>, transform_indices = @transform_2, window_bounds = array<i64: 1, 128>}, {transform_indices = @transform_3, window_bounds = array<i64: 512, 128>}]} {
    %c0 = arith.constant 0 : index
    %c0_0 = arith.constant 0 : index
    %0 = vector.load %arg1[%c0, %c0_0] : memref<512x144xbf16, #tpu.memory_space<vmem>>, vector<512x144xbf16>
    %c0_1 = arith.constant 0 : index
    %c0_2 = arith.constant 0 : index
    %1 = vector.load %arg2[%c0_1, %c0_2] : memref<144x128xbf16, #tpu.memory_space<vmem>>, vector<144x128xbf16>
    %cst = arith.constant dense<0.000000e+00> : vector<512x128xf32>
    %2 = tpu.matmul %0, %1, %cst {dimension_numbers = #tpu.dot_dimension_numbers<[1], [0], [0], [1], [0, 0, 1, 1], [], []>} : vector<512x144xbf16>, vector<144x128xbf16>, vector<512x128xf32> -> vector<512x128xf32>
    %c0_3 = arith.constant 0 : index
    %c0_4 = arith.constant 0 : index
    %3 = vector.load %arg3[%c0_3, %c0_4] : memref<1x128xf32, #tpu.memory_space<vmem>>, vector<1x128xf32>
    %4 = vector.broadcast %3 : vector<1x128xf32> to vector<512x128xf32>
    %5 = arith.addf %2, %4 : vector<512x128xf32>
    %6 = math.tanh %5 : vector<512x128xf32>
    %c0_5 = arith.constant 0 : index
    %c0_6 = arith.constant 0 : index
    %7 = vector.load %arg4[%c0_5, %c0_6] : memref<512x128xf32, #tpu.memory_space<vmem>>, vector<512x128xf32>
    tpu.vector_store %arg4[%c0_5, %c0_6], %6 {strides = array<i32>} : memref<512x128xf32, #tpu.memory_space<vmem>>, vector<512x128xf32>,
    return
  }
  func.func @transform_0(%arg0: i32) -> (i32, i32) {
    %c0_i32 = arith.constant 0 : i32
    %c0_i32_0 = arith.constant 0 : i32
    return %arg0, %c0_i32 : i32, i32
  }
  func.func @transform_1(%arg0: i32) -> (i32, i32) {
    %c0_i32 = arith.constant 0 : i32
    %c0_i32_0 = arith.constant 0 : i32
    %c0_i32_1 = arith.constant 0 : i32
    return %c0_i32, %c0_i32_0 : i32, i32
  }
  func.func @transform_2(%arg0: i32) -> (i32, i32) {
    %c0_i32 = arith.constant 0 : i32
    %c0_i32_0 = arith.constant 0 : i32
    %c0_i32_1 = arith.constant 0 : i32
    return %c0_i32, %c0_i32_0 : i32, i32
  }
  func.func @transform_3(%arg0: i32) -> (i32, i32) {
    %c0_i32 = arith.constant 0 : i32
    %c0_i32_0 = arith.constant 0 : i32
    return %arg0, %c0_i32 : i32, i32
  }
}

</mosaic_0001>

<bundles_post_ra>
// kernel: generator_forward.5
= control target key start
LH: loop header
LB: loop body
LE: loop exit
PB: predicated region body
PF: predicated region fallthrough
CT: control target
= control target key end

     0   :  { %8 = vsyncpa [#allocation3], 0  ;;  %s1034_s0 = inlined_call_operand.vmem [shape: bf16[2,32], index: 0, kind: input, shape index: {}]   ;;  %s1035_s1 = inlined_call_operand.hbm [shape: bf16[32,2048], index: 1, kind: input, shape index: {}]   ;;  %s1036_s2 = inlined_call_operand.hbm [shape: f32[1,2048], index: 2, kind: input, shape index: {}]   ;;  %s1037_s3 = inlined_call_operand.vmem [shape: bf16[2,2048], index: 3, kind: output, shape index: {}]  }
   0x1   :  { %9 = vsyncpa [#allocation5], 0  ;;  %s908_s12 = smov [#allocation2]   ;;  %s860_s16 = scalar_lea.hbm %s1035_s1, 4096 }
   0x2   :  { %s17_s13 = sshll.u32 %s908_s12, 4  ;;  %p861_p0 = scmp.ne.s32.totalorder %s1035_s1, %s860_s16  ;;  %s18_s13 = int_to_ptr.vmem [resolvable:$true] %s17_s13 }
   0x3   :  { %p864_p1 = scmp.lt.u32.totalorder %s860_s16, %s1035_s1 }
   0x5   :  { %p866_p2 = pnand %p864_p1, %p861_p0 }
   0x7   :  { %869 = shalt.err (!%p866_p2)
}
   0x8   :  { %s870_s21 = scalar_lea.vmem %s18_s13, 4096  ;;  %p875_p4 = scmp.lt.s32.totalorder %s18_s13, %s18_s13 }
   0x9   :  { %p871_p3 = scmp.ne.s32.totalorder %s18_s13, %s870_s21  ;;  %p876_p5 = scmp.lt.s32.totalorder %s870_s21, %s870_s21 }
   0xb   :  { %p877_p6 = por %p876_p5, %p875_p4 }
   0xd   :  { %p878_p7 = pnand %p877_p6, %p871_p3 }
   0xf   :  { %881 = shalt.err (!%p878_p7)
}
  0x10   :  { %s909_s22 = smov 1024   ;;  %s910_s23 = smov 64  }
  0x11   :  { %23 = dma.hbm_to_vmem [thread:$0]  %s1035_s1, 4096, %s18_s13, [#allocation3], %s909_s22, %s909_s22, %s910_s23  }
  0x12   :  { %s911_s26 = smov [#allocation4]   ;;  %s882_s30 = scalar_lea.hbm %s1036_s2, 256 }
  0x13   :  { %s30_s27 = sshll.u32 %s911_s26, 4  ;;  %p883_p8 = scmp.ne.s32.totalorder %s1036_s2, %s882_s30  ;;  %s31_s27 = int_to_ptr.vmem [resolvable:$true] %s30_s27 }
  0x14   :  { %p886_p9 = scmp.lt.u32.totalorder %s882_s30, %s1036_s2 }
  0x16   :  { %p888_p10 = pnand %p886_p9, %p883_p8 }
  0x18   :  { %891 = shalt.err (!%p888_p10)
}
  0x19   :  { %s892_s8 = scalar_lea.vmem %s31_s27, 256  ;;  %p897_p12 = scmp.lt.s32.totalorder %s31_s27, %s31_s27 }
  0x1a   :  { %p893_p11 = scmp.ne.s32.totalorder %s31_s27, %s892_s8  ;;  %p898_p13 = scmp.lt.s32.totalorder %s892_s8, %s892_s8 }
  0x1c   :  { %p899_p0 = por %p898_p13, %p897_p12 }
  0x1e   :  { %p900_p1 = pnand %p899_p0, %p893_p11 }
  0x20   :  { %903 = shalt.err (!%p900_p1)
}
  0x21   :  { %33 = dma.hbm_to_vmem [thread:$0]  %s1036_s2, 256, %s31_s27, [#allocation5]  }
  0x22   :  { %904 = dma.done.wait [#allocation3], 4096  }
  0x23   :  { %905 = vsyncadd [#allocation3], 4294963200 }
  0x24   :  { %906 = dma.done.wait [#allocation5], 256  }
  0x25   :  { %907 = vsyncadd [#allocation5], 4294967040  ;;  %v912_v0 = vmov 0   ;;  %v42_v1 = vld [vmem:[#allocation2] sm:$0xff]  ;;  %v43_v3 = vld [vmem:[#allocation2 + $0x8] sm:$0xff]  ;;  %vm318_vm0 = vcmask 261120  }
  0x26   :  { %354 = vmatprep.mubr.bf16.mxu0 %v912_v0  ;;  %395 = vmatprep.mubr.bf16.mxu1 %v912_v0  ;;  %v50_v2 = vld [vmem:[#allocation2 + $0x40] sm:$0xff]  ;;  %v51_v5 = vld [vmem:[#allocation2 + $0x48] sm:$0xff]  ;;  %v44_v15 = vld [vmem:[#allocation2 + $0x10] sm:$0xff] }
  0x27   :  { %v807_v4 = vcombine.high %v42_v1, %v50_v2  ;;  %v806_v6 = vcombine.low %v42_v1, %v50_v2  ;;  %v58_v7 = vld [vmem:[#allocation2 + $0x80] sm:$0xff]  ;;  %v809_v9 = vcombine.high %v43_v3, %v51_v5  ;;  %v808_v10 = vcombine.low %v43_v3, %v51_v5  ;;  %v59_v12 = vld [vmem:[#allocation2 + $0x88] sm:$0xff]  ;;  %v52_v16 = vld [vmem:[#allocation2 + $0x50] sm:$0xff] }
  0x28   :  { %v66_v8 = vld [vmem:[#allocation2 + $0xc0] sm:$0xff]  ;;  %v67_v13 = vld [vmem:[#allocation2 + $0xc8] sm:$0xff]  ;;  %v45_v17 = vld [vmem:[#allocation2 + $0x18] sm:$0xff]  ;;  %v811_v21 = vcombine.high %v44_v15, %v52_v16  ;;  %v810_v28 = vcombine.low %v44_v15, %v52_v16  ;;  %v78_v3 = vlaneseq }
  0x29   :  { %v823_v11 = vcombine.high %v58_v7, %v66_v8  ;;  %322 = vmatprep.subr.bf16.mxu0 %v807_v4  ;;  %v825_v14 = vcombine.high %v59_v12, %v67_v13  ;;  %363 = vmatprep.subr.bf16.mxu1 %v809_v9  ;;  %v822_v18 = vcombine.low %v58_v7, %v66_v8  ;;  %v53_v19 = vld [vmem:[#allocation2 + $0x58] sm:$0xff]  ;;  %v60_v23 = vld [vmem:[#allocation2 + $0x90] sm:$0xff]  ;;  %v963_v27 = vld [vmem:[%s1034_s0] sm:$0x1]  ;;  %v913_v9 = vmov 1966171168  }
  0x2a   :  { %323 = vmatpush1.bf16.msra.mxu0 %v806_v6  ;;  %364 = vmatpush1.bf16.msra.mxu1 %v808_v10  ;;  %v824_v20 = vcombine.low %v59_v12, %v67_v13  ;;  %v813_v22 = vcombine.high %v45_v17, %v53_v19  ;;  %v68_v24 = vld [vmem:[#allocation2 + $0xd0] sm:$0xff]  ;;  %v61_v25 = vld [vmem:[#allocation2 + $0x98] sm:$0xff]  ;;  %v812_v29 = vcombine.low %v45_v17, %v53_v19  ;;  %v46_v32 = vld [vmem:[#allocation2 + $0x20] sm:$0xff]  ;;  %v987_v4 = vshrl.u32 %v78_v3, 7 }
  0x2b   :  { %324 = vmatprep.subr.bf16.mxu0 %v823_v11  ;;  %365 = vmatprep.subr.bf16.mxu1 %v825_v14  ;;  %v69_v26 = vld [vmem:[#allocation2 + $0xd8] sm:$0xff]  ;;  %v827_v30 = vcombine.high %v60_v23, %v68_v24  ;;  %v54_v33 = vld [vmem:[#allocation2 + $0x60] sm:$0xff]  ;;  %v47_v34 = vld [vmem:[#allocation2 + $0x28] sm:$0xff]  ;;  %v826_v36 = vcombine.low %v60_v23, %v68_v24  ;;  %v703_v10 = vunpack.c.l.s4 %v913_v9 }
  0x2c   :  { %v829_v31 = vcombine.high %v61_v25, %v69_v26  ;;  %v55_v35 = vld [vmem:[#allocation2 + $0x68] sm:$0xff]  ;;  %v828_v37 = vcombine.low %v61_v25, %v69_v26  ;;  %v815_v38 = vcombine.high %v46_v32, %v54_v33  ;;  %v62_v40 = vld [vmem:[#allocation2 + $0xa0] sm:$0xff]  ;;  %v814_v44 = vcombine.low %v46_v32, %v54_v33  ;;  %v48_v48 = vld [vmem:[#allocation2 + $0x30] sm:$0xff] }
  0x2d   :  { %v817_v39 = vcombine.high %v47_v34, %v55_v35  ;;  %v70_v41 = vld [vmem:[#allocation2 + $0xe0] sm:$0xff]  ;;  %v63_v42 = vld [vmem:[#allocation2 + $0xa8] sm:$0xff]  ;;  %v816_v45 = vcombine.low %v47_v34, %v55_v35  ;;  %v56_v49 = vld [vmem:[#allocation2 + $0x70] sm:$0xff]  ;;  %v80_v5 = vsub.s32 0, %v987_v4  ;;  %v88_v7 = vsub.s32 2, %v987_v4 }
  0x2e   :  { %325 = vmatpush1.bf16.msra.mxu0 %v822_v18  ;;  %366 = vmatpush1.bf16.msra.mxu1 %v824_v20  ;;  %v71_v43 = vld [vmem:[#allocation2 + $0xe8] sm:$0xff]  ;;  %v831_v46 = vcombine.high %v62_v40, %v70_v41  ;;  %v49_v50 = vld [vmem:[#allocation2 + $0x38] sm:$0xff]  ;;  %v830_v52 = vcombine.low %v62_v40, %v70_v41  ;;  %v819_v54 = vcombine.high %v48_v48, %v56_v49  ;;  %v64_v56 = vld [vmem:[#allocation2 + $0xb0] sm:$0xff]  ;;  %v84_v8 = vsub.s32 1, %v987_v4 }
  0x2f   :  { %404 = vmatprep.subr.bf16.mxu0 %v811_v21  ;;  %445 = vmatprep.subr.bf16.mxu1 %v813_v22  ;;  %v833_v47 = vcombine.high %v63_v42, %v71_v43  ;;  %v57_v51 = vld [vmem:[#allocation2 + $0x78] sm:$0xff]  ;;  %v832_v53 = vcombine.low %v63_v42, %v71_v43  ;;  %v72_v57 = vld [vmem:[#allocation2 + $0xf0] sm:$0xff]  ;;  %v818_v60 = vcombine.low %v48_v48, %v56_v49  ;;  %v74_v6 = vld [vmem:[#allocation4] sm:$0xff]  ;;  %v704_v16 = vunpack.c.0.s8 %v703_v10 }
  0x30   :  { %v821_v55 = vcombine.high %v49_v50, %v57_v51  ;;  %v65_v58 = vld [vmem:[#allocation2 + $0xb8] sm:$0xff]  ;;  %v820_v61 = vcombine.low %v49_v50, %v57_v51  ;;  %v835_v62 = vcombine.high %v64_v56, %v72_v57  ;;  %v834_v1 = vcombine.low %v64_v56, %v72_v57 }
  0x31   :  { %838 = vmatmul.mubr.msk.bf16.vlgmr.msra.gmra.mrb[0].mxu0 %vm318_vm0, %v963_v27  ;;  %839 = vmatmul.mubr.msk.bf16.vlgmr.msra.gmra.mrb[0].mxu1 %vm318_vm0, %v963_v27  ;;  %v73_v59 = vld [vmem:[#allocation2 + $0xf8] sm:$0xff]  ;;  %v81_v11 = vrot.slane %v74_v6, %v80_v5  ;;  %v89_v12 = vrot.slane %v74_v6, %v88_v7  ;;  %v85_v13 = vrot.slane %v74_v6, %v84_v8  ;;  %v96_v20 = vsub.s32 4, %v987_v4 }
  0x32   :  { %405 = vmatpush1.bf16.msra.mxu0 %v810_v28  ;;  %446 = vmatpush1.bf16.msra.mxu1 %v812_v29  ;;  %v837_v63 = vcombine.high %v65_v58, %v73_v59  ;;  %v836_v2 = vcombine.low %v65_v58, %v73_v59  ;;  %v104_v25 = vsub.s32 6, %v987_v4  ;;  %v100_v26 = vsub.s32 5, %v987_v4 }
  0x33   :  { %406 = vmatprep.subr.bf16.mxu0 %v827_v30  ;;  %447 = vmatprep.subr.bf16.mxu1 %v829_v31  ;;  %v108_v31 = vsub.s32 7, %v987_v4  ;;  %v998_v34 = vsub.s32 %v704_v16, %v987_v4 }
  0x34   :  { %436 = vmatprep.mubr.bf16.mxu0 %v912_v0  ;;  %477 = vmatprep.mubr.bf16.mxu1 %v912_v0  ;;  %v101_v40 = vrot.slane %v74_v6, %v100_v26 }
  0x35   :  { %v109_v42 = vrot.slane %v74_v6, %v108_v31 }
  0x36   :  { %407 = vmatpush1.bf16.msra.mxu0 %v826_v36  ;;  %448 = vmatpush1.bf16.msra.mxu1 %v828_v37  ;;  %v97_v37 = vrot.slane %v74_v6, %v96_v20 }
  0x37   :  { %486 = vmatprep.subr.bf16.mxu0 %v815_v38  ;;  %527 = vmatprep.subr.bf16.mxu1 %v817_v39  ;;  %v105_v39 = vrot.slane %v74_v6, %v104_v25 }
  0x39   :  { %840 = vmatmul.mubr.msk.bf16.vlgmr.msra.gmra.mrb[4].mxu0 %vm318_vm0, %v963_v27  ;;  %841 = vmatmul.mubr.msk.bf16.vlgmr.msra.gmra.mrb[4].mxu1 %vm318_vm0, %v963_v27 }
  0x3a   :  { %487 = vmatpush1.bf16.msra.mxu0 %v814_v44  ;;  %528 = vmatpush1.bf16.msra.mxu1 %v816_v45 }
  0x3b   :  { %488 = vmatprep.subr.bf16.mxu0 %v831_v46  ;;  %529 = vmatprep.subr.bf16.mxu1 %v833_v47 }
  0x3c   :  { %518 = vmatprep.mubr.bf16.mxu0 %v912_v0  ;;  %559 = vmatprep.mubr.bf16.mxu1 %v912_v0 }
  0x3e   :  { %489 = vmatpush1.bf16.msra.mxu0 %v830_v52  ;;  %530 = vmatpush1.bf16.msra.mxu1 %v832_v53  ;;  %v75_v53 = vld [vmem:[#allocation4 + $0x8] sm:$0xff] }
  0x3f   :  { %568 = vmatprep.subr.bf16.mxu0 %v819_v54  ;;  %609 = vmatprep.subr.bf16.mxu1 %v821_v55  ;;  %v117_v3 = vrot.slane %v75_v53, %v84_v8 }
  0x41   :  { %842 = vmatmul.mubr.msk.bf16.vlgmr.msra.gmra.mrb[8].mxu0 %vm318_vm0, %v963_v27  ;;  %843 = vmatmul.mubr.msk.bf16.vlgmr.msra.gmra.mrb[8].mxu1 %vm318_vm0, %v963_v27 }
  0x42   :  { %569 = vmatpush1.bf16.msra.mxu0 %v818_v60  ;;  %610 = vmatpush1.bf16.msra.mxu1 %v820_v61 }
  0x43   :  { %570 = vmatprep.subr.bf16.mxu0 %v835_v62  ;;  %611 = vmatprep.subr.bf16.mxu1 %v837_v63  ;;  %v113_v63 = vrot.slane %v75_v53, %v80_v5 }
  0x44   :  { %600 = vmatprep.mubr.bf16.mxu0 %v912_v0  ;;  %641 = vmatprep.mubr.bf16.mxu1 %v912_v0  ;;  %v92_v0 = vsub.s32 3, %v987_v4 }
  0x46   :  { %571 = vmatpush1.bf16.msra.mxu0 %v834_v1  ;;  %612 = vmatpush1.bf16.msra.mxu1 %v836_v2  ;;  %v93_v14 = vrot.slane %v74_v6, %v92_v0  ;;  %v121_v2 = vrot.slane %v75_v53, %v88_v7  ;;  %v125_v9 = vrot.slane %v75_v53, %v92_v0 }
  0x49   :  { %844 = vmatmul.mubr.msk.bf16.vlgmr.msra.gmra.mrb[12].mxu0 %vm318_vm0, %v963_v27  ;;  %845 = vmatmul.mubr.msk.bf16.vlgmr.msra.gmra.mrb[12].mxu1 %vm318_vm0, %v963_v27 }
 0x104   :  { %v356_v15 = vpop.f32.mrb[0].mxu0  ;;  %v397_v18 = vpop.f32.mrb[0].mxu1 }
 0x105   :  { %v357_v17 = vadd.f32 %v356_v15, %v81_v11  ;;  %v358_v19 = vpop.f32.mrb[1].mxu0  ;;  %v398_v21 = vadd.f32 %v397_v18, %v89_v12  ;;  %v399_v23 = vpop.f32.mrb[1].mxu1 }
 0x106   :  { %v359_v22 = vadd.f32 %v358_v19, %v85_v13  ;;  %v360_v24 = vpop.f32.mrb[2].mxu0  ;;  %v400_v28 = vadd.f32 %v399_v23, %v93_v14  ;;  %v401_v29 = vpop.f32.mrb[2].mxu1 }
 0x107   :  { %v650_v27 = vmax.f32 %v357_v17, 0.0  ;;  %v361_v30 = vpop.f32.mrb[3].mxu0  ;;  %v652_v32 = vmax.f32 %v398_v21, 0.0  ;;  %v402_v35 = vpop.f32.mrb[3].mxu1 }
 0x108   :  { %v651_v33 = vmax.f32 %v359_v22, 0.0  ;;  %v653_v36 = vmax.f32 %v400_v28, 0.0  ;;  %v129_v30 = vrot.slane %v75_v53, %v96_v20  ;;  %v133_v35 = vrot.slane %v75_v53, %v100_v26 }
 0x10a   :  { %v846_v38 = vpack.c.bf16 %v651_v33, %v650_v27  ;;  %v847_v41 = vpack.c.bf16 %v653_v36, %v652_v32  ;;  %v137_v33 = vrot.slane %v75_v53, %v104_v25 }
 0x10c   :  { %v708_v43 = vrot.slane %v846_v38, %v998_v34  ;;  %v438_v44 = vpop.f32.mrb[4].mxu0  ;;  %v715_v45 = vrot.slane %v847_v41, %v998_v34  ;;  %v479_v47 = vpop.f32.mrb[4].mxu1  ;;  %v141_v38 = vrot.slane %v75_v53, %v108_v31 }
 0x10d   :  { %v439_v46 = vadd.f32 %v438_v44, %v97_v37  ;;  %v440_v48 = vpop.f32.mrb[5].mxu0  ;;  %v480_v49 = vadd.f32 %v479_v47, %v105_v39  ;;  %v481_v51 = vpop.f32.mrb[5].mxu1 }
 0x10e   :  { %v441_v50 = vadd.f32 %v440_v48, %v101_v40  ;;  %v442_v52 = vpop.f32.mrb[6].mxu0  ;;  %v730_v54 = vcombine.low %v708_v43, %v715_v45  ;;  %v482_v56 = vadd.f32 %v481_v51, %v109_v42  ;;  %v483_v57 = vpop.f32.mrb[6].mxu1 }
 0x10f   :  { %v654_v55 = vmax.f32 %v439_v46, 0.0  ;;  %v443_v58 = vpop.f32.mrb[7].mxu0  ;;  %v656_v59 = vmax.f32 %v480_v49, 0.0  ;;  %v484_v61 = vpop.f32.mrb[7].mxu1 }
 0x110   :  { %v655_v60 = vmax.f32 %v441_v50, 0.0  ;;  %v657_v62 = vmax.f32 %v482_v56, 0.0  ;;  %v738_v27 = vrot.slane %v730_v54, %v998_v34 }
 0x112   :  { %v848_v1 = vpack.c.bf16 %v655_v60, %v654_v55  ;;  %v849_v6 = vpack.c.bf16 %v657_v62, %v656_v59 }
 0x114   :  { %v722_v10 = vrot.slane %v848_v1, %v998_v34  ;;  %v520_v11 = vpop.f32.mrb[8].mxu0  ;;  %v729_v12 = vrot.slane %v849_v6, %v998_v34  ;;  %v561_v14 = vpop.f32.mrb[8].mxu1 }
 0x115   :  { %v521_v13 = vadd.f32 %v520_v11, %v113_v63  ;;  %v522_v15 = vpop.f32.mrb[9].mxu0  ;;  %v562_v16 = vadd.f32 %v561_v14, %v121_v2  ;;  %v563_v18 = vpop.f32.mrb[9].mxu1 }
 0x116   :  { %v523_v17 = vadd.f32 %v522_v15, %v117_v3  ;;  %v524_v19 = vpop.f32.mrb[10].mxu0  ;;  %v731_v21 = vcombine.low %v722_v10, %v729_v12  ;;  %v564_v5 = vadd.f32 %v563_v18, %v125_v9  ;;  %v565_v23 = vpop.f32.mrb[10].mxu1 }
 0x117   :  { %v658_v22 = vmax.f32 %v521_v13, 0.0  ;;  %v525_v7 = vpop.f32.mrb[11].mxu0  ;;  %v660_v8 = vmax.f32 %v562_v16, 0.0  ;;  %v566_v0 = vpop.f32.mrb[11].mxu1 }
 0x118   :  { %v659_v24 = vmax.f32 %v523_v17, 0.0  ;;  %v745_v28 = vrot.slane %v731_v21, %v998_v34  ;;  %v661_v29 = vmax.f32 %v564_v5, 0.0 }
 0x11a   :  { %v850_v32 = vpack.c.bf16 %v659_v24, %v658_v22  ;;  %v746_v36 = vcombine.low %v738_v27, %v745_v28  ;;  %v851_v37 = vpack.c.bf16 %v661_v29, %v660_v8 }
 0x11c   :  { %v757_v39 = vrot.slane %v850_v32, %v998_v34  ;;  %v602_v40 = vpop.f32.mrb[12].mxu0  ;;  %798 = vst [vmem:[%s1037_s3] sm:$0xff] %v746_v36  ;;  %v764_v20 = vrot.slane %v851_v37, %v998_v34  ;;  %v643_v42 = vpop.f32.mrb[12].mxu1 }
 0x11d   :  { %v603_v41 = vadd.f32 %v602_v40, %v129_v30  ;;  %v604_v25 = vpop.f32.mrb[13].mxu0  ;;  %v644_v43 = vadd.f32 %v643_v42, %v137_v33  ;;  %v645_v26 = vpop.f32.mrb[13].mxu1 }
 0x11e   :  { %v605_v44 = vadd.f32 %v604_v25, %v133_v35  ;;  %v606_v45 = vpop.f32.mrb[14].mxu0  ;;  %v779_v46 = vcombine.low %v757_v39, %v764_v20  ;;  %v646_v4 = vadd.f32 %v645_v26, %v141_v38  ;;  %v647_v31 = vpop.f32.mrb[14].mxu1 }
 0x11f   :  { %v662_v47 = vmax.f32 %v603_v41, 0.0  ;;  %v607_v48 = vpop.f32.mrb[15].mxu0  ;;  %v664_v49 = vmax.f32 %v644_v43, 0.0  ;;  %v648_v51 = vpop.f32.mrb[15].mxu1 }
 0x120   :  { %v663_v50 = vmax.f32 %v605_v44, 0.0  ;;  %v665_v52 = vmax.f32 %v646_v4, 0.0  ;;  %v787_v58 = vrot.slane %v779_v46, %v998_v34 }
 0x122   :  { %v852_v53 = vpack.c.bf16 %v663_v50, %v662_v47  ;;  %v853_v54 = vpack.c.bf16 %v665_v52, %v664_v49 }
 0x124   :  { %v771_v55 = vrot.slane %v852_v53, %v998_v34  ;;  %v778_v56 = vrot.slane %v853_v54, %v998_v34 }
 0x126   :  { %v780_v57 = vcombine.low %v771_v55, %v778_v56 }
 0x128   :  { %v794_v59 = vrot.slane %v780_v57, %v998_v34 }
 0x12a   :  { %v795_v60 = vcombine.low %v787_v58, %v794_v59 }
 0x12c   :  { %799 = vst [vmem:[%s1037_s3 + $0x8] sm:$0xff] %v795_v60 }
 0x12d   :  { %804 = vsyncpa [#allocation3], 1 }
 0x12e   :  { %805 = vsyncpa [#allocation5], 1 }

// kernel: generator_forward.6
= control target key start
LH: loop header
LB: loop body
LE: loop exit
PB: predicated region body
PF: predicated region fallthrough
CT: control target
= control target key end

     0   :  { %10 = vsyncpa [#allocation3], 0  ;;  %s2280_s0 = inlined_call_operand.vmem [shape: bf16[32,1152], index: 0, kind: input, shape index: {}]   ;;  %s2281_s1 = inlined_call_operand.hbm [shape: bf16[1152,256], index: 1, kind: input, shape index: {}]   ;;  %s2282_s2 = inlined_call_operand.hbm [shape: f32[1,256], index: 2, kind: input, shape index: {}]   ;;  %s2283_s3 = inlined_call_operand.hbm [shape: f32[1,64], index: 3, kind: input, shape index: {}]   ;;  %s2284_s4 = inlined_call_operand.hbm [shape: f32[1,64], index: 4, kind: input, shape index: {}]   ;;  %s2285_s5 = inlined_call_operand.vmem [shape: bf16[32,256], index: 5, kind: output, shape index: {}]  }
   0x1   :  { %11 = vsyncpa [#allocation5], 0 }
   0x2   :  { %12 = vsyncpa [#allocation8], 0  ;;  %s2060_s18 = smov [#allocation4]   ;;  %s2061_s20 = smov [#allocation2]  }
   0x3   :  { %s33_s19 = sshll.u32 %s2060_s18, 4  ;;  %s20_s21 = sshll.u32 %s2061_s20, 4  ;;  %s34_s19 = int_to_ptr.vmem [resolvable:$true] %s33_s19  ;;  %s2098_s21 = int_to_ptr.vmem [resolvable:$true] %s20_s21 }
   0x4   :  { %s1966_s24 = scalar_lea.hbm %s2282_s2, 32 }
   0x5   :  { %p1967_p0 = scmp.ne.s32.totalorder %s2282_s2, %s1966_s24  ;;  %p1970_p1 = scmp.lt.u32.totalorder %s1966_s24, %s2282_s2 }
   0x7   :  { %p1972_p2 = pnand %p1970_p1, %p1967_p0 }
   0x9   :  { %1975 = shalt.err (!%p1972_p2)
}
   0xa   :  { %s1976_s29 = scalar_lea.vmem %s34_s19, 32  ;;  %p1981_p4 = scmp.lt.s32.totalorder %s34_s19, %s34_s19 }
   0xb   :  { %p1977_p3 = scmp.ne.s32.totalorder %s34_s19, %s1976_s29  ;;  %p1982_p5 = scmp.lt.s32.totalorder %s1976_s29, %s1976_s29 }
   0xd   :  { %p1983_p6 = por %p1982_p5, %p1981_p4 }
   0xf   :  { %p1984_p7 = pnand %p1983_p6, %p1977_p3 }
  0x11   :  { %1987 = shalt.err (!%p1984_p7)
}
  0x12   :  { %36 = dma.hbm_to_vmem [thread:$0]  %s2282_s2, 32, %s34_s19, [#allocation5]  }
  0x13   :  { %s1988_s9 = scalar_lea.hbm %s2281_s1, 18432 }
  0x14   :  { %p1989_p8 = scmp.ne.s32.totalorder %s2281_s1, %s1988_s9  ;;  %p1992_p9 = scmp.lt.u32.totalorder %s1988_s9, %s2281_s1 }
  0x16   :  { %p1994_p10 = pnand %p1992_p9, %p1989_p8 }
  0x18   :  { %1997 = shalt.err (!%p1994_p10)
}
  0x19   :  { %s1998_s14 = scalar_lea.vmem %s2098_s21, 18432  ;;  %p2003_p12 = scmp.lt.s32.totalorder %s2098_s21, %s2098_s21 }
  0x1a   :  { %p1999_p11 = scmp.ne.s32.totalorder %s2098_s21, %s1998_s14  ;;  %p2004_p13 = scmp.lt.s32.totalorder %s1998_s14, %s1998_s14 }
  0x1c   :  { %p2005_p0 = por %p2004_p13, %p2003_p12 }
  0x1e   :  { %p2006_p1 = pnand %p2005_p0, %p1999_p11 }
  0x20   :  { %2009 = shalt.err (!%p2006_p1)
}
  0x21   :  { %s2062_s2 = smov 128   ;;  %s2063_s15 = smov 8  }
  0x22   :  { %26 = dma.hbm_to_vmem [thread:$0]  %s2281_s1, 18432, %s2098_s21, [#allocation3], %s2062_s2, %s2062_s2, %s2063_s15  }
  0x23   :  { %s2064_s18 = smov [#allocation6]   ;;  %s2065_s20 = smov [#allocation7]  }
  0x24   :  { %s43_s19 = sshll.u32 %s2064_s18, 4  ;;  %s53_s22 = sshll.u32 %s2065_s20, 4  ;;  %s44_s19 = int_to_ptr.vmem [resolvable:$true] %s43_s19  ;;  %s54_s22 = int_to_ptr.vmem [resolvable:$true] %s53_s22 }
  0x25   :  { %s2010_s25 = scalar_lea.hbm %s2283_s3, 16 }
  0x26   :  { %p2011_p2 = scmp.ne.s32.totalorder %s2283_s3, %s2010_s25  ;;  %p2014_p3 = scmp.lt.u32.totalorder %s2010_s25, %s2283_s3 }
  0x28   :  { %p2016_p4 = pnand %p2014_p3, %p2011_p2 }
  0x2a   :  { %2019 = shalt.err (!%p2016_p4)
}
  0x2b   :  { %s2020_s1 = scalar_lea.vmem %s44_s19, 16  ;;  %s2024_s21 = scalar_lea.vmem %s44_s19, 32 }
  0x2c   :  { %p2021_p5 = scmp.ne.s32.totalorder %s44_s19, %s2020_s1  ;;  %p2025_p6 = scmp.lt.s32.totalorder %s44_s19, %s44_s19 }
  0x2d   :  { %p2026_p7 = scmp.lt.s32.totalorder %s2024_s21, %s2020_s1 }
  0x2f   :  { %p2027_p8 = por %p2026_p7, %p2025_p6 }
  0x31   :  { %p2028_p9 = pnand %p2027_p8, %p2021_p5 }
  0x33   :  { %2031 = shalt.err (!%p2028_p9)
}
  0x34   :  { %46 = dma.hbm_to_vmem [thread:$0]  %s2283_s3, 16, %s44_s19, [#allocation5]  }
  0x35   :  { %s2032_s9 = scalar_lea.hbm %s2284_s4, 16 }
  0x36   :  { %p2033_p10 = scmp.ne.s32.totalorder %s2284_s4, %s2032_s9  ;;  %p2036_p11 = scmp.lt.u32.totalorder %s2032_s9, %s2284_s4 }
  0x38   :  { %p2038_p12 = pnand %p2036_p11, %p2033_p10 }
  0x3a   :  { %2041 = shalt.err (!%p2038_p12)
}
  0x3b   :  { %s2042_s14 = scalar_lea.vmem %s54_s22, 16  ;;  %s2046_s2 = scalar_lea.vmem %s54_s22, 32 }
  0x3c   :  { %p2043_p13 = scmp.ne.s32.totalorder %s54_s22, %s2042_s14  ;;  %p2047_p0 = scmp.lt.s32.totalorder %s54_s22, %s54_s22 }
  0x3d   :  { %p2048_p1 = scmp.lt.s32.totalorder %s2046_s2, %s2042_s14 }
  0x3f   :  { %p2049_p2 = por %p2048_p1, %p2047_p0 }
  0x41   :  { %p2050_p3 = pnand %p2049_p2, %p2043_p13 }
  0x43   :  { %2053 = shalt.err (!%p2050_p3)
}
  0x44   :  { %56 = dma.hbm_to_vmem [thread:$0]  %s2284_s4, 16, %s54_s22, [#allocation8]  }
  0x45   :  { %2054 = dma.done.wait [#allocation3], 18432  }
  0x46   :  { %2055 = vsyncadd [#allocation3], 4294948864 }
  0x47   :  { %2056 = dma.done.wait [#allocation5], 48  }
  0x48   :  { %2057 = vsyncadd [#allocation5], 4294967248 }
  0x49   :  { %2058 = dma.done.wait [#allocation8], 16  }
  0x4a   :  { %2059 = vsyncadd [#allocation8], 4294967280  ;;  %v1722_v0 = vld [vmem:[#allocation2 + $0x4] ss:$8 sps:$4 sm:$0xff]   ;;  %v1726_v2 = vld [vmem:[#allocation2] ss:$8 sps:$4 sm:$0xff]  }
  0x4b   :  { %v1724_v1 = vld [vmem:[#allocation2 + $0x204] ss:$8 sps:$4 sm:$0xff]   ;;  %1058 = vmatprep.subr.bf16.mxu1 %v1722_v0  ;;  %v1727_v3 = vld [vmem:[#allocation2 + $0x200] ss:$8 sps:$4 sm:$0xff]   ;;  %v1728_v4 = vld [vmem:[#allocation2 + $0x14] ss:$8 sps:$4 sm:$0xff]  }
  0x4c   :  { %1164 = vmatprep.subr.bf16.mxu0 %v1724_v1  ;;  %1059 = vmatpush1.bf16.msra.mxu1 %v1726_v2  ;;  %v1730_v5 = vld [vmem:[#allocation2 + $0x214] ss:$8 sps:$4 sm:$0xff]   ;;  %v1732_v6 = vld [vmem:[#allocation2 + $0x10] ss:$8 sps:$4 sm:$0xff]   ;;  %v1734_v8 = vld [vmem:[#allocation2 + $0x24] ss:$8 sps:$4 sm:$0xff]  }
  0x4d   :  { %1165 = vmatpush1.bf16.msra.mxu0 %v1727_v3  ;;  %1060 = vmatprep.subr.bf16.mxu1 %v1728_v4  ;;  %v1733_v7 = vld [vmem:[#allocation2 + $0x210] ss:$8 sps:$4 sm:$0xff]   ;;  %v1736_v9 = vld [vmem:[#allocation2 + $0x224] ss:$8 sps:$4 sm:$0xff]   ;;  %v1738_v10 = vld [vmem:[#allocation2 + $0x20] ss:$8 sps:$4 sm:$0xff]  }
  0x4e   :  { %1166 = vmatprep.subr.bf16.mxu0 %v1730_v5  ;;  %v1739_v11 = vld [vmem:[#allocation2 + $0x220] ss:$8 sps:$4 sm:$0xff]   ;;  %v1740_v12 = vld [vmem:[#allocation2 + $0x34] ss:$8 sps:$4 sm:$0xff]   ;;  %v1744_v14 = vld [vmem:[#allocation2 + $0x30] ss:$8 sps:$4 sm:$0xff]  }
  0x4f   :  { %v1742_v13 = vld [vmem:[#allocation2 + $0x234] ss:$8 sps:$4 sm:$0xff]   ;;  %v1745_v15 = vld [vmem:[#allocation2 + $0x230] ss:$8 sps:$4 sm:$0xff]   ;;  %v1746_v16 = vld [vmem:[#allocation2 + $0x44] ss:$8 sps:$4 sm:$0xff]  }
  0x50   :  { %1061 = vmatpush1.bf16.msra.mxu1 %v1732_v6  ;;  %v1748_v17 = vld [vmem:[#allocation2 + $0x244] ss:$8 sps:$4 sm:$0xff]   ;;  %v1750_v18 = vld [vmem:[#allocation2 + $0x40] ss:$8 sps:$4 sm:$0xff]   ;;  %v1752_v20 = vld [vmem:[#allocation2 + $0x54] ss:$8 sps:$4 sm:$0xff]  }
  0x51   :  { %1167 = vmatpush1.bf16.msra.mxu0 %v1733_v7  ;;  %1062 = vmatprep.subr.bf16.mxu1 %v1734_v8  ;;  %v1751_v19 = vld [vmem:[#allocation2 + $0x240] ss:$8 sps:$4 sm:$0xff]   ;;  %v1754_v21 = vld [vmem:[#allocation2 + $0x254] ss:$8 sps:$4 sm:$0xff]   ;;  %v1756_v22 = vld [vmem:[#allocation2 + $0x50] ss:$8 sps:$4 sm:$0xff]  }
  0x52   :  { %1168 = vmatprep.subr.bf16.mxu0 %v1736_v9  ;;  %v1757_v23 = vld [vmem:[#allocation2 + $0x250] ss:$8 sps:$4 sm:$0xff]   ;;  %v1758_v24 = vld [vmem:[#allocation2 + $0x64] ss:$8 sps:$4 sm:$0xff]   ;;  %v1762_v26 = vld [vmem:[#allocation2 + $0x60] ss:$8 sps:$4 sm:$0xff]  }
  0x53   :  { %v1760_v25 = vld [vmem:[#allocation2 + $0x264] ss:$8 sps:$4 sm:$0xff]   ;;  %v1763_v27 = vld [vmem:[#allocation2 + $0x260] ss:$8 sps:$4 sm:$0xff]   ;;  %v1764_v28 = vld [vmem:[#allocation2 + $0x74] ss:$8 sps:$4 sm:$0xff]  }
  0x54   :  { %1063 = vmatpush1.bf16.msra.mxu1 %v1738_v10  ;;  %v1766_v29 = vld [vmem:[#allocation2 + $0x274] ss:$8 sps:$4 sm:$0xff]   ;;  %v1768_v30 = vld [vmem:[#allocation2 + $0x70] ss:$8 sps:$4 sm:$0xff]   ;;  %v1770_v32 = vld [vmem:[#allocation2 + $0x84] ss:$8 sps:$4 sm:$0xff]  }
  0x55   :  { %1169 = vmatpush1.bf16.msra.mxu0 %v1739_v11  ;;  %1064 = vmatprep.subr.bf16.mxu1 %v1740_v12  ;;  %v1769_v31 = vld [vmem:[#allocation2 + $0x270] ss:$8 sps:$4 sm:$0xff]   ;;  %v1772_v33 = vld [vmem:[#allocation2 + $0x284] ss:$8 sps:$4 sm:$0xff]   ;;  %v1774_v34 = vld [vmem:[#allocation2 + $0x80] ss:$8 sps:$4 sm:$0xff]  }
  0x56   :  { %1170 = vmatprep.subr.bf16.mxu0 %v1742_v13  ;;  %v1775_v35 = vld [vmem:[#allocation2 + $0x280] ss:$8 sps:$4 sm:$0xff]   ;;  %v1776_v36 = vld [vmem:[#allocation2 + $0x94] ss:$8 sps:$4 sm:$0xff]   ;;  %v1780_v38 = vld [vmem:[#allocation2 + $0x90] ss:$8 sps:$4 sm:$0xff]  }
  0x57   :  { %v1778_v37 = vld [vmem:[#allocation2 + $0x294] ss:$8 sps:$4 sm:$0xff]   ;;  %v1781_v39 = vld [vmem:[#allocation2 + $0x290] ss:$8 sps:$4 sm:$0xff]   ;;  %v1782_v40 = vld [vmem:[#allocation2 + $0xa4] ss:$8 sps:$4 sm:$0xff]  }
  0x58   :  { %1065 = vmatpush1.bf16.msra.mxu1 %v1744_v14  ;;  %v1784_v41 = vld [vmem:[#allocation2 + $0x2a4] ss:$8 sps:$4 sm:$0xff]   ;;  %v1786_v42 = vld [vmem:[#allocation2 + $0xa0] ss:$8 sps:$4 sm:$0xff]   ;;  %v1788_v44 = vld [vmem:[#allocation2 + $0xb4] ss:$8 sps:$4 sm:$0xff]  }
  0x59   :  { %1171 = vmatpush1.bf16.msra.mxu0 %v1745_v15  ;;  %1066 = vmatprep.subr.bf16.mxu1 %v1746_v16  ;;  %v1787_v43 = vld [vmem:[#allocation2 + $0x2a0] ss:$8 sps:$4 sm:$0xff]   ;;  %v1790_v45 = vld [vmem:[#allocation2 + $0x2b4] ss:$8 sps:$4 sm:$0xff]   ;;  %v1792_v46 = vld [vmem:[#allocation2 + $0xb0] ss:$8 sps:$4 sm:$0xff]  }
  0x5a   :  { %1172 = vmatprep.subr.bf16.mxu0 %v1748_v17  ;;  %v1793_v47 = vld [vmem:[#allocation2 + $0x2b0] ss:$8 sps:$4 sm:$0xff]   ;;  %v1820_v48 = vld [vmem:[%s2280_s0 + $0x4] ss:$36 sps:$4 sm:$0xff]   ;;  %v1800_v54 = vld [vmem:[#allocation2 + $0xd4] ss:$8 sps:$4 sm:$0xff]  }
  0x5b   :  { %v1794_v49 = vld [vmem:[#allocation2 + $0xc4] ss:$8 sps:$4 sm:$0xff]   ;;  %1090 = vmatprep.mubr.bf16.mxu1 %v1820_v48  ;;  %v1826_v51 = vld [vmem:[%s2280_s0 + $0x14] ss:$36 sps:$4 sm:$0xff]   ;;  %v1798_v52 = vld [vmem:[#allocation2 + $0xc0] ss:$8 sps:$4 sm:$0xff]  }
  0x5c   :  { %1067 = vmatpush1.bf16.msra.mxu1 %v1750_v18  ;;  %v1796_v50 = vld [vmem:[#allocation2 + $0x2c4] ss:$8 sps:$4 sm:$0xff]   ;;  %v1799_v53 = vld [vmem:[#allocation2 + $0x2c0] ss:$8 sps:$4 sm:$0xff]   ;;  %v1802_v55 = vld [vmem:[#allocation2 + $0x2d4] ss:$8 sps:$4 sm:$0xff]   ;;  %1196 = vmatprep.mubr.bf16.mxu0 %v1826_v51 }
  0x5d   :  { %1173 = vmatpush1.bf16.msra.mxu0 %v1751_v19  ;;  %1068 = vmatprep.subr.bf16.mxu1 %v1752_v20  ;;  %v1804_v56 = vld [vmem:[#allocation2 + $0xd0] ss:$8 sps:$4 sm:$0xff]   ;;  %v1806_v58 = vld [vmem:[#allocation2 + $0xe4] ss:$8 sps:$4 sm:$0xff]   ;;  %v1810_v60 = vld [vmem:[#allocation2 + $0xe0] ss:$8 sps:$4 sm:$0xff]  }
  0x5e   :  { %1174 = vmatprep.subr.bf16.mxu0 %v1754_v21  ;;  %v1805_v57 = vld [vmem:[#allocation2 + $0x2d0] ss:$8 sps:$4 sm:$0xff]   ;;  %v1808_v59 = vld [vmem:[#allocation2 + $0x2e4] ss:$8 sps:$4 sm:$0xff]   ;;  %v1811_v61 = vld [vmem:[#allocation2 + $0x2e0] ss:$8 sps:$4 sm:$0xff]  }
  0x5f   :  { %v1812_v62 = vld [vmem:[#allocation2 + $0xf4] ss:$8 sps:$4 sm:$0xff]   ;;  %v1816_v0 = vld [vmem:[#allocation2 + $0xf0] ss:$8 sps:$4 sm:$0xff]   ;;  %v1823_v2 = vld [vmem:[#allocation2 + $0x104] ss:$8 sps:$4 sm:$0xff]  }
  0x60   :  { %1069 = vmatpush1.bf16.msra.mxu1 %v1756_v22  ;;  %v1814_v63 = vld [vmem:[#allocation2 + $0x2f4] ss:$8 sps:$4 sm:$0xff]   ;;  %v1817_v1 = vld [vmem:[#allocation2 + $0x2f0] ss:$8 sps:$4 sm:$0xff]   ;;  %v1829_v3 = vld [vmem:[#allocation2 + $0x304] ss:$8 sps:$4 sm:$0xff]  }
  0x61   :  { %1175 = vmatpush1.bf16.msra.mxu0 %v1757_v23  ;;  %1070 = vmatprep.subr.bf16.mxu1 %v1758_v24  ;;  %v1818_v4 = vld [vmem:[%s2280_s0] ss:$36 sps:$4 sm:$0xff]   ;;  %v1824_v6 = vld [vmem:[%s2280_s0 + $0x10] ss:$36 sps:$4 sm:$0xff]   ;;  %vm1410_vm0 = vcmask 523264  }
  0x62   :  { %1176 = vmatprep.subr.bf16.mxu0 %v1760_v25  ;;  %v1821_v5 = vld [vmem:[#allocation2 + $0x100] ss:$8 sps:$4 sm:$0xff]   ;;  %v1832_v8 = vld [vmem:[#allocation2 + $0x114] ss:$8 sps:$4 sm:$0xff]   ;;  %v1830_v10 = vld [vmem:[#allocation2 + $0x110] ss:$8 sps:$4 sm:$0xff]  }
  0x63   :  { %v1827_v7 = vld [vmem:[#allocation2 + $0x300] ss:$8 sps:$4 sm:$0xff]   ;;  %v1835_v9 = vld [vmem:[#allocation2 + $0x314] ss:$8 sps:$4 sm:$0xff]   ;;  %v1833_v11 = vld [vmem:[#allocation2 + $0x310] ss:$8 sps:$4 sm:$0xff]  }
  0x64   :  { %1071 = vmatpush1.bf16.msra.mxu1 %v1762_v26  ;;  %v1838_v12 = vld [vmem:[#allocation2 + $0x124] ss:$8 sps:$4 sm:$0xff]   ;;  %v1836_v14 = vld [vmem:[#allocation2 + $0x120] ss:$8 sps:$4 sm:$0xff]   ;;  %v1844_v16 = vld [vmem:[#allocation2 + $0x134] ss:$8 sps:$4 sm:$0xff]  }
  0x65   :  { %1177 = vmatpush1.bf16.msra.mxu0 %v1763_v27  ;;  %1072 = vmatprep.subr.bf16.mxu1 %v1764_v28  ;;  %v1841_v13 = vld [vmem:[#allocation2 + $0x324] ss:$8 sps:$4 sm:$0xff]   ;;  %v1839_v15 = vld [vmem:[#allocation2 + $0x320] ss:$8 sps:$4 sm:$0xff]   ;;  %v1847_v17 = vld [vmem:[#allocation2 + $0x334] ss:$8 sps:$4 sm:$0xff]  }
  0x66   :  { %1178 = vmatprep.subr.bf16.mxu0 %v1766_v29  ;;  %v1842_v18 = vld [vmem:[#allocation2 + $0x130] ss:$8 sps:$4 sm:$0xff]   ;;  %v1850_v20 = vld [vmem:[#allocation2 + $0x144] ss:$8 sps:$4 sm:$0xff]   ;;  %v1848_v22 = vld [vmem:[#allocation2 + $0x140] ss:$8 sps:$4 sm:$0xff]  }
  0x67   :  { %v1845_v19 = vld [vmem:[#allocation2 + $0x330] ss:$8 sps:$4 sm:$0xff]   ;;  %v1853_v21 = vld [vmem:[#allocation2 + $0x344] ss:$8 sps:$4 sm:$0xff]   ;;  %v1851_v23 = vld [vmem:[#allocation2 + $0x340] ss:$8 sps:$4 sm:$0xff]  }
  0x68   :  { %1073 = vmatpush1.bf16.msra.mxu1 %v1768_v30  ;;  %v1856_v24 = vld [vmem:[#allocation2 + $0x154] ss:$8 sps:$4 sm:$0xff]   ;;  %v1854_v26 = vld [vmem:[#allocation2 + $0x150] ss:$8 sps:$4 sm:$0xff]   ;;  %v1862_v28 = vld [vmem:[#allocation2 + $0x164] ss:$8 sps:$4 sm:$0xff]  }
  0x69   :  { %1179 = vmatpush1.bf16.msra.mxu0 %v1769_v31  ;;  %1074 = vmatprep.subr.bf16.mxu1 %v1770_v32  ;;  %v1859_v25 = vld [vmem:[#allocation2 + $0x354] ss:$8 sps:$4 sm:$0xff]   ;;  %v1857_v27 = vld [vmem:[#allocation2 + $0x350] ss:$8 sps:$4 sm:$0xff]   ;;  %v1912_v31 = vld [vmem:[%s2280_s0 + $0x48] ss:$36 sps:$4 sm:$0xff]  }
  0x6a   :  { %1180 = vmatprep.subr.bf16.mxu0 %v1772_v33  ;;  %v1908_v29 = vld [vmem:[%s2280_s0 + $0x4c] ss:$36 sps:$4 sm:$0xff]   ;;  %v1910_v30 = vld [vmem:[%s2280_s0 + $0x5c] ss:$36 sps:$4 sm:$0xff]  }
  0x6b   :  { %v1865_v32 = vld [vmem:[#allocation2 + $0x364] ss:$8 sps:$4 sm:$0xff]   ;;  %v1916_v33 = vld [vmem:[%s2280_s0 + $0x58] ss:$36 sps:$4 sm:$0xff]  }
  0x6c   :  { %1075 = vmatpush1.bf16.msra.mxu1 %v1774_v34  ;;  %v1860_v34 = vld [vmem:[#allocation2 + $0x160] ss:$8 sps:$4 sm:$0xff]   ;;  %v1878_v48 = vld [vmem:[#allocation2 + $0x190] ss:$8 sps:$4 sm:$0xff]   ;;  %v1889_v51 = vld [vmem:[#allocation2 + $0x3a4] ss:$8 sps:$4 sm:$0xff]  }
  0x6d   :  { %1181 = vmatpush1.bf16.msra.mxu0 %v1775_v35  ;;  %1076 = vmatprep.subr.bf16.mxu1 %v1776_v36  ;;  %v1863_v35 = vld [vmem:[#allocation2 + $0x360] ss:$8 sps:$4 sm:$0xff]   ;;  %v1868_v36 = vld [vmem:[#allocation2 + $0x174] ss:$8 sps:$4 sm:$0xff]  }
  0x6e   :  { %1182 = vmatprep.subr.bf16.mxu0 %v1778_v37  ;;  %v1871_v37 = vld [vmem:[#allocation2 + $0x374] ss:$8 sps:$4 sm:$0xff]  }
  0x70   :  { %1077 = vmatpush1.bf16.msra.mxu1 %v1780_v38  ;;  %v1866_v38 = vld [vmem:[#allocation2 + $0x170] ss:$8 sps:$4 sm:$0xff]  }
  0x71   :  { %1183 = vmatpush1.bf16.msra.mxu0 %v1781_v39  ;;  %1078 = vmatprep.subr.bf16.mxu1 %v1782_v40  ;;  %v1869_v39 = vld [vmem:[#allocation2 + $0x370] ss:$8 sps:$4 sm:$0xff]   ;;  %v1874_v40 = vld [vmem:[#allocation2 + $0x184] ss:$8 sps:$4 sm:$0xff]  }
  0x72   :  { %1184 = vmatprep.subr.bf16.mxu0 %v1784_v41  ;;  %v1928_v41 = vld [vmem:[%s2280_s0 + $0xc] ss:$36 sps:$4 sm:$0xff]  }
  0x74   :  { %1079 = vmatpush1.bf16.msra.mxu1 %v1786_v42  ;;  %v1877_v42 = vld [vmem:[#allocation2 + $0x384] ss:$8 sps:$4 sm:$0xff]  }
  0x75   :  { %1185 = vmatpush1.bf16.msra.mxu0 %v1787_v43  ;;  %1080 = vmatprep.subr.bf16.mxu1 %v1788_v44  ;;  %v1931_v43 = vld [vmem:[%s2280_s0 + $0x1c] ss:$36 sps:$4 sm:$0xff]  }
  0x76   :  { %1186 = vmatprep.subr.bf16.mxu0 %v1790_v45  ;;  %v1872_v44 = vld [vmem:[#allocation2 + $0x180] ss:$8 sps:$4 sm:$0xff]  }
  0x77   :  { %v1875_v45 = vld [vmem:[#allocation2 + $0x380] ss:$8 sps:$4 sm:$0xff]  }
  0x78   :  { %1081 = vmatpush1.bf16.msra.mxu1 %v1792_v46  ;;  %v1880_v46 = vld [vmem:[#allocation2 + $0x194] ss:$8 sps:$4 sm:$0xff]  }
  0x79   :  { %1187 = vmatpush1.bf16.msra.mxu0 %v1793_v47  ;;  %1082 = vmatprep.subr.bf16.mxu1 %v1794_v49  ;;  %v1883_v47 = vld [vmem:[#allocation2 + $0x394] ss:$8 sps:$4 sm:$0xff]   ;;  %v1881_v49 = vld [vmem:[#allocation2 + $0x390] ss:$8 sps:$4 sm:$0xff]  }
  0x7a   :  { %1188 = vmatprep.subr.bf16.mxu0 %v1796_v50  ;;  %v1886_v50 = vld [vmem:[#allocation2 + $0x1a4] ss:$8 sps:$4 sm:$0xff]  }
  0x7c   :  { %1083 = vmatpush1.bf16.msra.mxu1 %v1798_v52  ;;  %v1884_v52 = vld [vmem:[#allocation2 + $0x1a0] ss:$8 sps:$4 sm:$0xff]  }
  0x7d   :  { %1189 = vmatpush1.bf16.msra.mxu0 %v1799_v53  ;;  %1084 = vmatprep.subr.bf16.mxu1 %v1800_v54  ;;  %v1887_v53 = vld [vmem:[#allocation2 + $0x3a0] ss:$8 sps:$4 sm:$0xff]   ;;  %v1892_v54 = vld [vmem:[#allocation2 + $0x1b4] ss:$8 sps:$4 sm:$0xff]  }
  0x7e   :  { %1190 = vmatprep.subr.bf16.mxu0 %v1802_v55  ;;  %v1895_v55 = vld [vmem:[#allocation2 + $0x3b4] ss:$8 sps:$4 sm:$0xff]  }
  0x80   :  { %1085 = vmatpush1.bf16.msra.mxu1 %v1804_v56  ;;  %v1890_v56 = vld [vmem:[#allocation2 + $0x1b0] ss:$8 sps:$4 sm:$0xff]  }
  0x81   :  { %1191 = vmatpush1.bf16.msra.mxu0 %v1805_v57  ;;  %1086 = vmatprep.subr.bf16.mxu1 %v1806_v58  ;;  %v1893_v57 = vld [vmem:[#allocation2 + $0x3b0] ss:$8 sps:$4 sm:$0xff]   ;;  %v1898_v58 = vld [vmem:[#allocation2 + $0x1c4] ss:$8 sps:$4 sm:$0xff]  }
  0x82   :  { %1192 = vmatprep.subr.bf16.mxu0 %v1808_v59  ;;  %v1901_v59 = vld [vmem:[#allocation2 + $0x3c4] ss:$8 sps:$4 sm:$0xff]  }
  0x84   :  { %1087 = vmatpush1.bf16.msra.mxu1 %v1810_v60  ;;  %v1896_v60 = vld [vmem:[#allocation2 + $0x1c0] ss:$8 sps:$4 sm:$0xff]  }
  0x85   :  { %1193 = vmatpush1.bf16.msra.mxu0 %v1811_v61  ;;  %1088 = vmatprep.subr.bf16.mxu1 %v1812_v62  ;;  %v1899_v61 = vld [vmem:[#allocation2 + $0x3c0] ss:$8 sps:$4 sm:$0xff]   ;;  %v1904_v62 = vld [vmem:[#allocation2 + $0x1d4] ss:$8 sps:$4 sm:$0xff]  }
  0x86   :  { %1194 = vmatprep.subr.bf16.mxu0 %v1814_v63  ;;  %v1907_v63 = vld [vmem:[#allocation2 + $0x3d4] ss:$8 sps:$4 sm:$0xff]  }
  0x88   :  { %1089 = vmatpush1.bf16.msra.mxu1 %v1816_v0  ;;  %v1902_v0 = vld [vmem:[#allocation2 + $0x1d0] ss:$8 sps:$4 sm:$0xff]  }
  0x89   :  { %1195 = vmatpush1.bf16.msra.mxu0 %v1817_v1  ;;  %1111 = vmatprep.subr.bf16.mxu1 %v1823_v2  ;;  %v1905_v1 = vld [vmem:[#allocation2 + $0x3d0] ss:$8 sps:$4 sm:$0xff]   ;;  %v1915_v2 = vld [vmem:[#allocation2 + $0x1e4] ss:$8 sps:$4 sm:$0xff]  }
  0x8a   :  { %1217 = vmatprep.subr.bf16.mxu0 %v1829_v3  ;;  %v1919_v3 = vld [vmem:[#allocation2 + $0x3e4] ss:$8 sps:$4 sm:$0xff]  }
  0x8b   :  { %1091 = vmatmul.mubr.bf16.vlgmr.msra.gmra.mrb[0].mxu1 %v1818_v4  ;;  %v1913_v4 = vld [vmem:[#allocation2 + $0x1e0] ss:$8 sps:$4 sm:$0xff]  }
  0x8c   :  { %1197 = vmatmul.mubr.bf16.vlgmr.msra.gmra.mrb[0].mxu0 %v1824_v6  ;;  %1112 = vmatpush1.bf16.msra.mxu1 %v1821_v5  ;;  %v1917_v5 = vld [vmem:[#allocation2 + $0x3e0] ss:$8 sps:$4 sm:$0xff]   ;;  %v1922_v6 = vld [vmem:[#allocation2 + $0x1f4] ss:$8 sps:$4 sm:$0xff]  }
  0x8d   :  { %1218 = vmatpush1.bf16.msra.mxu0 %v1827_v7  ;;  %1113 = vmatprep.subr.bf16.mxu1 %v1832_v8  ;;  %v1925_v7 = vld [vmem:[#allocation2 + $0x3f4] ss:$8 sps:$4 sm:$0xff]   ;;  %v1920_v8 = vld [vmem:[#allocation2 + $0x1f0] ss:$8 sps:$4 sm:$0xff]  }
  0x8e   :  { %1219 = vmatprep.subr.bf16.mxu0 %v1835_v9  ;;  %1100 = vmatprep.mubr.bf16.mxu1 %v1908_v29  ;;  %v1923_v9 = vld [vmem:[#allocation2 + $0x3f0] ss:$8 sps:$4 sm:$0xff]   ;;  %v1958_v29 = vld [vmem:[#allocation2 + $0x464] ss:$8 sps:$4 sm:$0xff]  }
  0x8f   :  { %1206 = vmatprep.mubr.bf16.mxu0 %v1910_v30  ;;  %v1956_v30 = vld [vmem:[#allocation2 + $0x460] ss:$8 sps:$4 sm:$0xff]  }
  0x90   :  { %1114 = vmatpush1.bf16.msra.mxu1 %v1830_v10  ;;  %v1934_v10 = vld [vmem:[#allocation2 + $0x404] ss:$8 sps:$4 sm:$0xff]  }
  0x91   :  { %1220 = vmatpush1.bf16.msra.mxu0 %v1833_v11  ;;  %1115 = vmatprep.subr.bf16.mxu1 %v1838_v12  ;;  %v1926_v11 = vld [vmem:[%s2280_s0 + $0x8] ss:$36 sps:$4 sm:$0xff]   ;;  %v1929_v12 = vld [vmem:[%s2280_s0 + $0x18] ss:$36 sps:$4 sm:$0xff]  }
  0x92   :  { %1221 = vmatprep.subr.bf16.mxu0 %v1841_v13  ;;  %v1932_v13 = vld [vmem:[#allocation2 + $0x400] ss:$8 sps:$4 sm:$0xff]  }
  0x93   :  { %1101 = vmatmul.mubr.bf16.gmra.mrb[4].mxu1 %v1912_v31  ;;  %v1961_v31 = vld [vmem:[#allocation2 + $0x474] ss:$8 sps:$4 sm:$0xff]  }
  0x94   :  { %1116 = vmatpush1.bf16.msra.mxu1 %v1836_v14  ;;  %1207 = vmatmul.mubr.bf16.gmra.mrb[4].mxu0 %v1916_v33  ;;  %v1937_v14 = vld [vmem:[#allocation2 + $0x414] ss:$8 sps:$4 sm:$0xff]   ;;  %v1962_v33 = vld [vmem:[%s2280_s0 + $0x20] ss:$36 sps:$4 sm:$0xff]  }
  0x95   :  { %1222 = vmatpush1.bf16.msra.mxu0 %v1839_v15  ;;  %1117 = vmatprep.subr.bf16.mxu1 %v1844_v16  ;;  %v1938_v15 = vld [vmem:[%s2280_s0 + $0x54] ss:$36 sps:$4 sm:$0xff]   ;;  %v1940_v16 = vld [vmem:[%s2280_s0 + $0x64] ss:$36 sps:$4 sm:$0xff]  }
  0x96   :  { %1223 = vmatprep.subr.bf16.mxu0 %v1847_v17  ;;  %1143 = vmatprep.mubr.bf16.mxu1 %v1928_v41  ;;  %v1935_v17 = vld [vmem:[#allocation2 + $0x410] ss:$8 sps:$4 sm:$0xff]  }
  0x97   :  { %1249 = vmatprep.mubr.bf16.mxu0 %v1931_v43 }
  0x98   :  { %1118 = vmatpush1.bf16.msra.mxu1 %v1842_v18  ;;  %v1946_v18 = vld [vmem:[#allocation2 + $0x424] ss:$8 sps:$4 sm:$0xff]  }
  0x99   :  { %1224 = vmatpush1.bf16.msra.mxu0 %v1845_v19  ;;  %1119 = vmatprep.subr.bf16.mxu1 %v1850_v20  ;;  %v1942_v19 = vld [vmem:[%s2280_s0 + $0x50] ss:$36 sps:$4 sm:$0xff]   ;;  %v1943_v20 = vld [vmem:[%s2280_s0 + $0x60] ss:$36 sps:$4 sm:$0xff]  }
  0x9a   :  { %1225 = vmatprep.subr.bf16.mxu0 %v1853_v21  ;;  %v1944_v21 = vld [vmem:[#allocation2 + $0x420] ss:$8 sps:$4 sm:$0xff]  }
  0x9c   :  { %1120 = vmatpush1.bf16.msra.mxu1 %v1848_v22  ;;  %v1949_v22 = vld [vmem:[#allocation2 + $0x434] ss:$8 sps:$4 sm:$0xff]  }
  0x9d   :  { %1226 = vmatpush1.bf16.msra.mxu0 %v1851_v23  ;;  %1121 = vmatprep.subr.bf16.mxu1 %v1856_v24  ;;  %v1947_v23 = vld [vmem:[#allocation2 + $0x430] ss:$8 sps:$4 sm:$0xff]   ;;  %v1952_v24 = vld [vmem:[#allocation2 + $0x444] ss:$8 sps:$4 sm:$0xff]  }
  0x9e   :  { %1227 = vmatprep.subr.bf16.mxu0 %v1859_v25  ;;  %v2066_v25 = vmov 0  }
  0xa0   :  { %1122 = vmatpush1.bf16.msra.mxu1 %v1854_v26  ;;  %v1950_v26 = vld [vmem:[#allocation2 + $0x440] ss:$8 sps:$4 sm:$0xff]  }
  0xa1   :  { %1228 = vmatpush1.bf16.msra.mxu0 %v1857_v27  ;;  %1123 = vmatprep.subr.bf16.mxu1 %v1862_v28  ;;  %v1955_v27 = vld [vmem:[#allocation2 + $0x454] ss:$8 sps:$4 sm:$0xff]   ;;  %v1953_v28 = vld [vmem:[#allocation2 + $0x450] ss:$8 sps:$4 sm:$0xff]  }
  0xa2   :  { %1229 = vmatprep.subr.bf16.mxu0 %v1865_v32  ;;  %v1959_v32 = vld [vmem:[#allocation2 + $0x470] ss:$8 sps:$4 sm:$0xff]  }
  0xa4   :  { %1124 = vmatpush1.bf16.msra.mxu1 %v1860_v34  ;;  %v1963_v34 = vld [vmem:[%s2280_s0 + $0x68] ss:$36 sps:$4 sm:$0xff]   ;;  %s2067_s0 = smov 64  }
  0xa5   :  { %1230 = vmatpush1.bf16.msra.mxu0 %v1863_v35  ;;  %1125 = vmatprep.subr.bf16.mxu1 %v1868_v36  ;;  %v236_v35 = vlaneseq }
  0xa6   :  { %1231 = vmatprep.subr.bf16.mxu0 %v1871_v37 }
  0xa7   :  { %v237_v36 = vshrl.u32 %v236_v35, 7 }
  0xa8   :  { %1126 = vmatpush1.bf16.msra.mxu1 %v1866_v38 }
  0xa9   :  { %1232 = vmatpush1.bf16.msra.mxu0 %v1869_v39  ;;  %1127 = vmatprep.subr.bf16.mxu1 %v1874_v40  ;;  %v2207_v40 = vsub.s32 0, %v237_v36  ;;  %v242_v43 = vsub.s32 1, %v237_v36 }
  0xaa   :  { %1233 = vmatprep.subr.bf16.mxu0 %v1877_v42  ;;  %v234_v42 = vld [vmem:[#allocation4] sm:$0x3] }
  0xac   :  { %1128 = vmatpush1.bf16.msra.mxu1 %v1872_v44  ;;  %v239_v44 = vrot.slane %v234_v42, %v2207_v40 }
  0xad   :  { %1234 = vmatpush1.bf16.msra.mxu0 %v1875_v45  ;;  %1129 = vmatprep.subr.bf16.mxu1 %v1880_v46  ;;  %v243_v45 = vrot.slane %v234_v42, %v242_v43 }
  0xae   :  { %1235 = vmatprep.subr.bf16.mxu0 %v1883_v47 }
  0xb0   :  { %1130 = vmatpush1.bf16.msra.mxu1 %v1878_v48 }
  0xb1   :  { %1236 = vmatpush1.bf16.msra.mxu0 %v1881_v49  ;;  %1131 = vmatprep.subr.bf16.mxu1 %v1886_v50 }
  0xb2   :  { %1237 = vmatprep.subr.bf16.mxu0 %v1889_v51 }
  0xb4   :  { %1132 = vmatpush1.bf16.msra.mxu1 %v1884_v52 }
  0xb5   :  { %1238 = vmatpush1.bf16.msra.mxu0 %v1887_v53  ;;  %1133 = vmatprep.subr.bf16.mxu1 %v1892_v54 }
  0xb6   :  { %1239 = vmatprep.subr.bf16.mxu0 %v1895_v55 }
  0xb8   :  { %1134 = vmatpush1.bf16.msra.mxu1 %v1890_v56 }
  0xb9   :  { %1240 = vmatpush1.bf16.msra.mxu0 %v1893_v57  ;;  %1135 = vmatprep.subr.bf16.mxu1 %v1898_v58 }
  0xba   :  { %1241 = vmatprep.subr.bf16.mxu0 %v1901_v59 }
  0xbc   :  { %1136 = vmatpush1.bf16.msra.mxu1 %v1896_v60 }
  0xbd   :  { %1242 = vmatpush1.bf16.msra.mxu0 %v1899_v61  ;;  %1137 = vmatprep.subr.bf16.mxu1 %v1904_v62 }
  0xbe   :  { %1243 = vmatprep.subr.bf16.mxu0 %v1907_v63 }
  0xc0   :  { %1138 = vmatpush1.bf16.msra.mxu1 %v1902_v0 }
  0xc1   :  { %1244 = vmatpush1.bf16.msra.mxu0 %v1905_v1  ;;  %1139 = vmatprep.subr.bf16.mxu1 %v1915_v2 }
  0xc2   :  { %1245 = vmatprep.subr.bf16.mxu0 %v1919_v3 }
  0xc4   :  { %1140 = vmatpush1.bf16.msra.mxu1 %v1913_v4 }
  0xc5   :  { %1246 = vmatpush1.bf16.msra.mxu0 %v1917_v5  ;;  %1141 = vmatprep.subr.bf16.mxu1 %v1922_v6 }
  0xc6   :  { %1247 = vmatprep.subr.bf16.mxu0 %v1925_v7 }
  0xc8   :  { %1142 = vmatpush1.bf16.msra.mxu1 %v1920_v8 }
  0xc9   :  { %1248 = vmatpush1.bf16.msra.mxu0 %v1923_v9  ;;  %1658 = vmatprep.subr.bf16.mxu1 %v1934_v10 }
  0xca   :  { %1270 = vmatprep.subr.bf16.mxu0 %v1934_v10 }
  0xcb   :  { %1144 = vmatmul.mubr.bf16.vlgmr.msra.gmra.mrb[0].mxu1 %v1926_v11 }
  0xcc   :  { %1250 = vmatmul.mubr.bf16.vlgmr.msra.gmra.mrb[0].mxu0 %v1929_v12  ;;  %1666 = vmatpush1.bf16.msra.mxu1 %v1932_v13 }
  0xcd   :  { %1271 = vmatpush1.bf16.msra.mxu0 %v1932_v13  ;;  %1659 = vmatprep.subr.bf16.mxu1 %v1937_v14 }
  0xce   :  { %1272 = vmatprep.subr.bf16.mxu0 %v1937_v14  ;;  %1153 = vmatprep.mubr.bf16.mxu1 %v1938_v15 }
  0xcf   :  { %1259 = vmatprep.mubr.bf16.mxu0 %v1940_v16 }
  0xd0   :  { %1667 = vmatpush1.bf16.msra.mxu1 %v1935_v17 }
  0xd1   :  { %1273 = vmatpush1.bf16.msra.mxu0 %v1935_v17  ;;  %1660 = vmatprep.subr.bf16.mxu1 %v1946_v18 }
  0xd2   :  { %1274 = vmatprep.subr.bf16.mxu0 %v1946_v18 }
  0xd3   :  { %1154 = vmatmul.mubr.bf16.gmra.mrb[4].mxu1 %v1942_v19 }
  0xd4   :  { %1260 = vmatmul.mubr.bf16.gmra.mrb[4].mxu0 %v1943_v20  ;;  %1668 = vmatpush1.bf16.msra.mxu1 %v1944_v21 }
  0xd5   :  { %1275 = vmatpush1.bf16.msra.mxu0 %v1944_v21  ;;  %1661 = vmatprep.subr.bf16.mxu1 %v1949_v22 }
  0xd6   :  { %1276 = vmatprep.subr.bf16.mxu0 %v1949_v22  ;;  %1302 = vmatprep.mubr.bf16.mxu0 %v2066_v25 }
  0xd7   :  { %1312 = vmatprep.mubr.bf16.mxu1 %v2066_v25 }
  0xd8   :  { %1669 = vmatpush1.bf16.msra.mxu1 %v1947_v23 }
  0xd9   :  { %1277 = vmatpush1.bf16.msra.mxu0 %v1947_v23  ;;  %1662 = vmatprep.subr.bf16.mxu1 %v1952_v24 }
  0xda   :  { %1278 = vmatprep.subr.bf16.mxu0 %v1952_v24 }
  0xdc   :  { %1670 = vmatpush1.bf16.msra.mxu1 %v1950_v26 }
  0xdd   :  { %1279 = vmatpush1.bf16.msra.mxu0 %v1950_v26  ;;  %1663 = vmatprep.subr.bf16.mxu1 %v1955_v27 }
  0xde   :  { %1280 = vmatprep.subr.bf16.mxu0 %v1955_v27 }
  0xe0   :  { %1671 = vmatpush1.bf16.msra.mxu1 %v1953_v28 }
  0xe1   :  { %1281 = vmatpush1.bf16.msra.mxu0 %v1953_v28  ;;  %1664 = vmatprep.subr.bf16.mxu1 %v1958_v29 }
  0xe2   :  { %1282 = vmatprep.subr.bf16.mxu0 %v1958_v29 }
  0xe4   :  { %1672 = vmatpush1.bf16.msra.mxu1 %v1956_v30 }
  0xe5   :  { %1283 = vmatpush1.bf16.msra.mxu0 %v1956_v30  ;;  %1665 = vmatprep.subr.bf16.mxu1 %v1961_v31 }
  0xe6   :  { %1284 = vmatprep.subr.bf16.mxu0 %v1961_v31 }
  0xe8   :  { %1673 = vmatpush1.bf16.msra.mxu1 %v1959_v32 }
  0xe9   :  { %1285 = vmatpush1.bf16.msra.mxu0 %v1959_v32 }
  0xeb   :  { %1313 = vmatmul.mubr.bf16.vlgmr.msra.gmra.mrb[8].mxu1 %v1963_v34 }
  0xec   :  { %1303 = vmatmul.mubr.bf16.vlgmr.msra.gmra.mrb[0].mxu0 %v1962_v33 }
 0x19e   :  { %v1145_v37 = vpop.f32.mrb[0].mxu1 }
 0x19f   :  { %v1147_v38 = vpop.f32.mrb[1].mxu1  ;;  %v1674_v62 = vadd.f32 %v1145_v37, %v239_v44 }
 0x1a0   :  { %v1149_v39 = vpop.f32.mrb[2].mxu1  ;;  %v1676_v63 = vadd.f32 %v1147_v38, %v243_v45 }
 0x1a1   :  { %v1151_v41 = vpop.f32.mrb[3].mxu1  ;;  %v1678_v2 = vadd.f32 %v1149_v39, %v239_v44 }
 0x1a2   :  { %v1680_v7 = vadd.f32 %v1151_v41, %v243_v45 }
 0x1a6   :  { %v1155_v46 = vpop.f32.mrb[4].mxu1 }
 0x1a7   :  { %v1261_v47 = vpop.f32.mrb[4].mxu0  ;;  %v1682_v48 = vadd.f32 %v1155_v46, %v239_v44  ;;  %v1157_v49 = vpop.f32.mrb[5].mxu1 }
 0x1a8   :  { %v1263_v50 = vpop.f32.mrb[5].mxu0  ;;  %v1685_v51 = vadd.f32 %v1157_v49, %v243_v45  ;;  %v1159_v52 = vpop.f32.mrb[6].mxu1 }
 0x1a9   :  { %v1265_v53 = vpop.f32.mrb[6].mxu0  ;;  %v1683_v54 = vadd.f32 %v1682_v48, %v1261_v47  ;;  %v1688_v55 = vadd.f32 %v1159_v52, %v239_v44  ;;  %v1161_v56 = vpop.f32.mrb[7].mxu1 }
 0x1aa   :  { %v1267_v57 = vpop.f32.mrb[7].mxu0  ;;  %v1686_v58 = vadd.f32 %v1685_v51, %v1263_v50  ;;  %v1691_v59 = vadd.f32 %v1161_v56, %v243_v45 }
 0x1ab   :  { %v1689_v60 = vadd.f32 %v1688_v55, %v1265_v53 }
 0x1ac   :  { %v1692_v61 = vadd.f32 %v1691_v59, %v1267_v57 }
 0x1be   :  { %v1314_v1 = vpop.f32.mrb[8].mxu1 }
 0x1bf   :  { %v1304_v0 = vpop.f32.mrb[0].mxu0  ;;  %v2212_v4 = vadd.f32 %v1683_v54, %v1314_v1  ;;  %v1316_v6 = vpop.f32.mrb[9].mxu1 }
 0x1c0   :  { %v2210_v3 = vadd.f32 %v1674_v62, %v1304_v0  ;;  %v1306_v5 = vpop.f32.mrb[1].mxu0  ;;  %v2216_v9 = vadd.f32 %v1686_v58, %v1316_v6  ;;  %v1318_v11 = vpop.f32.mrb[10].mxu1 }
 0x1c1   :  { %v2214_v8 = vadd.f32 %v1676_v63, %v1306_v5  ;;  %v1308_v10 = vpop.f32.mrb[2].mxu0  ;;  %v2220_v13 = vadd.f32 %v1689_v60, %v1318_v11  ;;  %v1320_v15 = vpop.f32.mrb[11].mxu1  ;;  %v1345_v24 = vmul.f32 %v2212_v4, %v2212_v4 }
 0x1c2   :  { %v2218_v12 = vadd.f32 %v1678_v2, %v1308_v10  ;;  %v1310_v14 = vpop.f32.mrb[3].mxu0  ;;  %v2224_v17 = vadd.f32 %v1692_v61, %v1320_v15  ;;  %v1341_v18 = vmul.f32 %v2210_v3, %v2210_v3  ;;  %v1346_v27 = vmul.f32 %v2216_v9, %v2216_v9 }
 0x1c3   :  { %v2222_v16 = vadd.f32 %v1680_v7, %v1310_v14  ;;  %v1342_v21 = vmul.f32 %v2214_v8, %v2214_v8  ;;  %v1347_v31 = vmul.f32 %v2220_v13, %v2220_v13 }
 0x1c4   :  { %v1323_v19 = vadd.f32 %v2218_v12, %v2210_v3  ;;  %v1343_v20 = vmul.f32 %v2218_v12, %v2218_v12  ;;  %v1348_v34 = vmul.f32 %v2224_v17, %v2224_v17 }
 0x1c5   :  { %v1332_v22 = vadd.f32 %v2222_v16, %v2214_v8  ;;  %v1344_v23 = vmul.f32 %v2222_v16, %v2222_v16 }
 0x1c6   :  { %v1349_v25 = vadd.f32 %v1343_v20, %v1341_v18  ;;  %v1324_v26 = vadd.f32 %v2212_v4, %v1323_v19 }
 0x1c7   :  { %v1358_v28 = vadd.f32 %v1344_v23, %v1342_v21  ;;  %v1333_v29 = vadd.f32 %v2216_v9, %v1332_v22  ;;  %v1395_v23 = vld [vmem:[#allocation6] sm:$0x1] }
 0x1c8   :  { %v1325_v30 = vadd.f32 %v2220_v13, %v1324_v26  ;;  %v1350_v32 = vadd.f32 %v1349_v25, %v1345_v24  ;;  %v1399_v26 = vld [vmem:[#allocation7] sm:$0x1] }
 0x1c9   :  { %v1334_v33 = vadd.f32 %v2224_v17, %v1333_v29  ;;  %v1359_v35 = vadd.f32 %v1358_v28, %v1346_v27 }
 0x1ca   :  { %v1326_v36 = vrot.slane %v1325_v30, 4  ;;  %v1351_v37 = vadd.f32 %v1350_v32, %v1347_v31 }
 0x1cb   :  { %v1335_v38 = vrot.slane %v1334_v33, 4  ;;  %v1360_v39 = vadd.f32 %v1359_v35, %v1348_v34 }
 0x1cc   :  { %v1352_v41 = vrot.slane %v1351_v37, 4  ;;  %v1327_v42 = vadd.f32 %v1326_v36, %v1325_v30 }
 0x1cd   :  { %v1361_v43 = vrot.slane %v1360_v39, 4  ;;  %v1336_v44 = vadd.f32 %v1335_v38, %v1334_v33 }
 0x1ce   :  { %v1328_v45 = vrot.slane %v1327_v42, 2  ;;  %v1353_v46 = vadd.f32 %v1352_v41, %v1351_v37 }
 0x1cf   :  { %v1337_v47 = vrot.slane %v1336_v44, 2  ;;  %v1362_v48 = vadd.f32 %v1361_v43, %v1360_v39 }
 0x1d0   :  { %v1329_v49 = vadd.f32 %v1328_v45, %v1327_v42  ;;  %v1354_v50 = vrot.slane %v1353_v46, 2 }
 0x1d1   :  { %v1338_v51 = vadd.f32 %v1337_v47, %v1336_v44  ;;  %v1363_v52 = vrot.slane %v1362_v48, 2 }
 0x1d2   :  { %v1330_v53 = vrot.slane %v1329_v49, 1  ;;  %v1355_v54 = vadd.f32 %v1354_v50, %v1353_v46 }
 0x1d3   :  { %v1339_v55 = vrot.slane %v1338_v51, 1  ;;  %v1364_v56 = vadd.f32 %v1363_v52, %v1362_v48 }
 0x1d4   :  { %v1331_v57 = vadd.f32 %v1330_v53, %v1329_v49  ;;  %v1356_v58 = vrot.slane %v1355_v54, 1 }
 0x1d5   :  { %v1340_v59 = vadd.f32 %v1339_v55, %v1338_v51  ;;  %v1365_v60 = vrot.slane %v1364_v56, 1 }
 0x1d6   :  { %1368 = vrot.lane.b32.xlu0 %v1331_v57, %s2067_s0  ;;  %v1357_v61 = vadd.f32 %v1356_v58, %v1355_v54 }
 0x1d7   :  { %1374 = vrot.lane.b32.xlu1 %v1340_v59, %s2067_s0  ;;  %v1366_v62 = vadd.f32 %v1365_v60, %v1364_v56 }
 0x1da   :  { %1379 = vrot.lane.b32.xlu0 %v1357_v61, %s2067_s0 }
 0x1db   :  { %1385 = vrot.lane.b32.xlu1 %v1366_v62, %s2067_s0 }
 0x248   :  { %v1369_v63 = vpop.permute.xlu0 %1368 }
 0x249   :  { %v1371_v0 = vadd.f32 %v1369_v63, %v1331_v57  ;;  %v1375_v1 = vpop.permute.xlu1 %1374 }
 0x24b   :  { %v1372_v2 = vadd.f32 %v1371_v0, %v1340_v59 }
 0x24c   :  { %v1380_v5 = vpop.permute.xlu0 %1379 }
 0x24d   :  { %v1377_v6 = vadd.f32 %v1375_v1, %v1372_v2  ;;  %v1382_v7 = vadd.f32 %v1380_v5, %v1357_v61  ;;  %v1386_v14 = vpop.permute.xlu1 %1385 }
 0x24f   :  { %v1390_v10 = vmul.f32 0.0078125, %v1377_v6  ;;  %v1383_v11 = vadd.f32 %v1382_v7, %v1366_v62 }
 0x251   :  { %v1388_v15 = vadd.f32 %v1386_v14, %v1383_v11  ;;  %v1392_v18 = vmul.f32 %v1390_v10, %v1390_v10 }
 0x253   :  { %v1391_v19 = vmul.f32 0.0078125, %v1388_v15 }
 0x255   :  { %v1393_v20 = vsub.f32 %v1391_v19, %v1392_v18 }
 0x257   :  { %v1394_v21 = vmax.f32 %v1393_v20, 0.0 }
 0x259   :  { %v1396_v22 = vadd.f32 1e-05, %v1394_v21 }
 0x25b   :  { %1964 = vrsqrt.f32 %v1396_v22 }
 0x265   :  { %v1965_v24 = vpop.eup %1964 }
 0x266   :  { %v1398_v25 = vmul.f32 %v1965_v24, %v1395_v23 }
 0x268   :  { %v1406_v27 = vrot.slane %v1398_v25, %v2207_v40  ;;  %v1400_v28 = vmul.f32 %v1398_v25, %v1390_v10 }
 0x26a   :  { %1407 = vrot.lane.b32.xlu0 %v1406_v27, %s2067_s0  ;;  %v1401_v29 = vsub.f32 %v1399_v26, %v1400_v28 }
 0x26c   :  { %v1416_v30 = vrot.slane %v1401_v29, %v2207_v40 }
 0x26e   :  { %1417 = vrot.lane.b32.xlu1 %v1416_v30, %s2067_s0 }
 0x2dc   :  { %v1408_v31 = vpop.permute.xlu0 %1407 }
 0x2dd   :  { %v1411_v32 = vsel %vm1410_vm0, %v1398_v25, %v1408_v31 }
 0x2de   :  { %v1424_v33 = vrot.slane %v1411_v32, %v2207_v40 }
 0x2e0   :  { %v1418_v34 = vpop.permute.xlu1 %1417  ;;  %v1425_v35 = vmul.f32 %v2210_v3, %v1424_v33  ;;  %v1426_v37 = vmul.f32 %v2214_v8, %v1424_v33  ;;  %v1427_v38 = vmul.f32 %v2218_v12, %v1424_v33  ;;  %v1428_v39 = vmul.f32 %v2222_v16, %v1424_v33 }
 0x2e1   :  { %v1420_v36 = vsel %vm1410_vm0, %v1401_v29, %v1418_v34  ;;  %v1429_v42 = vmul.f32 %v2212_v4, %v1424_v33  ;;  %v1430_v43 = vmul.f32 %v2216_v9, %v1424_v33  ;;  %v1431_v44 = vmul.f32 %v2220_v13, %v1424_v33 }
 0x2e2   :  { %v1436_v41 = vrot.slane %v1420_v36, %v2207_v40  ;;  %v1432_v45 = vmul.f32 %v2224_v17, %v1424_v33 }
 0x2e4   :  { %v1437_v46 = vadd.f32 %v1436_v41, %v1425_v35  ;;  %v1438_v47 = vadd.f32 %v1436_v41, %v1426_v37  ;;  %v1439_v3 = vadd.f32 %v1436_v41, %v1427_v38  ;;  %v1440_v48 = vadd.f32 %v1436_v41, %v1428_v39 }
 0x2e5   :  { %v1441_v49 = vadd.f32 %v1436_v41, %v1429_v42  ;;  %v1442_v8 = vadd.f32 %v1436_v41, %v1430_v43  ;;  %v1443_v50 = vadd.f32 %v1436_v41, %v1431_v44  ;;  %v1444_v12 = vadd.f32 %v1436_v41, %v1432_v45 }
 0x2e6   :  { %v1445_v51 = vmax.f32 %v1437_v46, 0.0  ;;  %v1446_v16 = vmax.f32 %v1438_v47, 0.0  ;;  %v1447_v52 = vmax.f32 %v1439_v3, 0.0  ;;  %v1448_v40 = vmax.f32 %v1440_v48, 0.0 }
 0x2e7   :  { %v1449_v53 = vmax.f32 %v1441_v49, 0.0  ;;  %v1450_v4 = vmax.f32 %v1442_v8, 0.0  ;;  %v1451_v54 = vmax.f32 %v1443_v50, 0.0  ;;  %v1452_v9 = vmax.f32 %v1444_v12, 0.0 }
 0x2e8   :  { %v1654_v55 = vpack.c.bf16 %v1446_v16, %v1445_v51  ;;  %v1655_v13 = vpack.c.bf16 %v1448_v40, %v1447_v52 }
 0x2e9   :  { %v1656_v56 = vpack.c.bf16 %v1450_v4, %v1449_v53  ;;  %v1657_v17 = vpack.c.bf16 %v1452_v9, %v1451_v54 }
 0x2ea   :  { %1477 = vst [vmem:[%s2285_s5] sm:$0xff] %v1654_v55  ;;  %1478 = vst [vmem:[%s2285_s5 + $0x8] sm:$0xff] %v1655_v13 }
 0x2eb   :  { %1479 = vst [vmem:[%s2285_s5 + $0x10] sm:$0xff] %v1656_v56  ;;  %1480 = vst [vmem:[%s2285_s5 + $0x18] sm:$0xff] %v1657_v17 }
 0x2ec   :  { %1485 = vsyncpa [#allocation3], 1 }
 0x2ed   :  { %1486 = vsyncpa [#allocation5], 1 }
 0x2ee   :  { %1487 = vsyncpa [#allocation8], 1 }

// kernel: generator_forward.7
= control target key start
LH: loop header
LB: loop body
LE: loop exit
PB: predicated region body
PF: predicated region fallthrough
CT: control target
= control target key end

     0   :  { %10 = vsyncpa [#allocation3], 0  ;;  %s2141_s0 = inlined_call_operand.vmem [shape: bf16[128,576], index: 0, kind: input, shape index: {}]   ;;  %s2142_s1 = inlined_call_operand.hbm [shape: bf16[576,128], index: 1, kind: input, shape index: {}]   ;;  %s2143_s2 = inlined_call_operand.hbm [shape: f32[1,128], index: 2, kind: input, shape index: {}]   ;;  %s2144_s3 = inlined_call_operand.hbm [shape: f32[1,32], index: 3, kind: input, shape index: {}]   ;;  %s2145_s4 = inlined_call_operand.hbm [shape: f32[1,32], index: 4, kind: input, shape index: {}]   ;;  %s2146_s5 = inlined_call_operand.vmem [shape: bf16[128,128], index: 5, kind: output, shape index: {}]  }
   0x1   :  { %11 = vsyncpa [#allocation5], 0 }
   0x2   :  { %12 = vsyncpa [#allocation8], 0  ;;  %s1737_s18 = smov [#allocation4]   ;;  %s1738_s20 = smov [#allocation2]  }
   0x3   :  { %s33_s19 = sshll.u32 %s1737_s18, 4  ;;  %s20_s21 = sshll.u32 %s1738_s20, 4  ;;  %s34_s19 = int_to_ptr.vmem [resolvable:$true] %s33_s19  ;;  %s1775_s21 = int_to_ptr.vmem [resolvable:$true] %s20_s21 }
   0x4   :  { %s1643_s24 = scalar_lea.hbm %s2143_s2, 16 }
   0x5   :  { %p1644_p0 = scmp.ne.s32.totalorder %s2143_s2, %s1643_s24  ;;  %p1647_p1 = scmp.lt.u32.totalorder %s1643_s24, %s2143_s2 }
   0x7   :  { %p1649_p2 = pnand %p1647_p1, %p1644_p0 }
   0x9   :  { %1652 = shalt.err (!%p1649_p2)
}
   0xa   :  { %s1653_s29 = scalar_lea.vmem %s34_s19, 16  ;;  %s1657_s30 = scalar_lea.vmem %s34_s19, 32 }
   0xb   :  { %p1654_p3 = scmp.ne.s32.totalorder %s34_s19, %s1653_s29  ;;  %p1658_p4 = scmp.lt.s32.totalorder %s34_s19, %s34_s19 }
   0xc   :  { %p1659_p5 = scmp.lt.s32.totalorder %s1657_s30, %s1653_s29 }
   0xe   :  { %p1660_p6 = por %p1659_p5, %p1658_p4 }
  0x10   :  { %p1661_p7 = pnand %p1660_p6, %p1654_p3 }
  0x12   :  { %1664 = shalt.err (!%p1661_p7)
}
  0x13   :  { %36 = dma.hbm_to_vmem [thread:$0]  %s2143_s2, 16, %s34_s19, [#allocation5]  }
  0x14   :  { %s1665_s10 = scalar_lea.hbm %s2142_s1, 4608 }
  0x15   :  { %p1666_p8 = scmp.ne.s32.totalorder %s2142_s1, %s1665_s10  ;;  %p1669_p9 = scmp.lt.u32.totalorder %s1665_s10, %s2142_s1 }
  0x17   :  { %p1671_p10 = pnand %p1669_p9, %p1666_p8 }
  0x19   :  { %1674 = shalt.err (!%p1671_p10)
}
  0x1a   :  { %s1675_s15 = scalar_lea.vmem %s1775_s21, 4608  ;;  %p1680_p12 = scmp.lt.s32.totalorder %s1775_s21, %s1775_s21 }
  0x1b   :  { %p1676_p11 = scmp.ne.s32.totalorder %s1775_s21, %s1675_s15  ;;  %p1681_p13 = scmp.lt.s32.totalorder %s1675_s15, %s1675_s15 }
  0x1d   :  { %p1682_p0 = por %p1681_p13, %p1680_p12 }
  0x1f   :  { %p1683_p1 = pnand %p1682_p0, %p1676_p11 }
  0x21   :  { %1686 = shalt.err (!%p1683_p1)
}
  0x22   :  { %s1739_s2 = smov 64   ;;  %s1740_s16 = smov 4  }
  0x23   :  { %26 = dma.hbm_to_vmem [thread:$0]  %s2142_s1, 4608, %s1775_s21, [#allocation3], %s1739_s2, %s1739_s2, %s1740_s16  }
  0x24   :  { %s1741_s19 = smov [#allocation6]   ;;  %s1742_s22 = smov [#allocation7]  }
  0x25   :  { %s43_s20 = sshll.u32 %s1741_s19, 4  ;;  %s53_s23 = sshll.u32 %s1742_s22, 4  ;;  %s44_s20 = int_to_ptr.vmem [resolvable:$true] %s43_s20  ;;  %s54_s23 = int_to_ptr.vmem [resolvable:$true] %s53_s23 }
  0x26   :  { %s1687_s26 = scalar_lea.hbm %s2144_s3, 16 }
  0x27   :  { %p1688_p2 = scmp.ne.s32.totalorder %s2144_s3, %s1687_s26  ;;  %p1691_p3 = scmp.lt.u32.totalorder %s1687_s26, %s2144_s3 }
  0x29   :  { %p1693_p4 = pnand %p1691_p3, %p1688_p2 }
  0x2b   :  { %1696 = shalt.err (!%p1693_p4)
}
  0x2c   :  { %s1697_s1 = scalar_lea.vmem %s44_s20, 16  ;;  %s1701_s21 = scalar_lea.vmem %s44_s20, 32 }
  0x2d   :  { %p1698_p5 = scmp.ne.s32.totalorder %s44_s20, %s1697_s1  ;;  %p1702_p6 = scmp.lt.s32.totalorder %s44_s20, %s44_s20 }
  0x2e   :  { %p1703_p7 = scmp.lt.s32.totalorder %s1701_s21, %s1697_s1 }
  0x30   :  { %p1704_p8 = por %p1703_p7, %p1702_p6 }
  0x32   :  { %p1705_p9 = pnand %p1704_p8, %p1698_p5 }
  0x34   :  { %1708 = shalt.err (!%p1705_p9)
}
  0x35   :  { %46 = dma.hbm_to_vmem [thread:$0]  %s2144_s3, 16, %s44_s20, [#allocation5]  }
  0x36   :  { %s1709_s10 = scalar_lea.hbm %s2145_s4, 16 }
  0x37   :  { %p1710_p10 = scmp.ne.s32.totalorder %s2145_s4, %s1709_s10  ;;  %p1713_p11 = scmp.lt.u32.totalorder %s1709_s10, %s2145_s4 }
  0x39   :  { %p1715_p12 = pnand %p1713_p11, %p1710_p10 }
  0x3b   :  { %1718 = shalt.err (!%p1715_p12)
}
  0x3c   :  { %s1719_s15 = scalar_lea.vmem %s54_s23, 16  ;;  %s1723_s16 = scalar_lea.vmem %s54_s23, 32 }
  0x3d   :  { %p1720_p13 = scmp.ne.s32.totalorder %s54_s23, %s1719_s15  ;;  %p1724_p0 = scmp.lt.s32.totalorder %s54_s23, %s54_s23 }
  0x3e   :  { %p1725_p1 = scmp.lt.s32.totalorder %s1723_s16, %s1719_s15 }
  0x40   :  { %p1726_p2 = por %p1725_p1, %p1724_p0 }
  0x42   :  { %p1727_p3 = pnand %p1726_p2, %p1720_p13 }
  0x44   :  { %1730 = shalt.err (!%p1727_p3)
}
  0x45   :  { %56 = dma.hbm_to_vmem [thread:$0]  %s2145_s4, 16, %s54_s23, [#allocation8]  }
  0x46   :  { %1731 = dma.done.wait [#allocation3], 4608  }
  0x47   :  { %1732 = vsyncadd [#allocation3], 4294962688 }
  0x48   :  { %1733 = dma.done.wait [#allocation5], 32  }
  0x49   :  { %1734 = vsyncadd [#allocation5], 4294967264 }
  0x4a   :  { %1735 = dma.done.wait [#allocation8], 16  }
  0x4b   :  { %1736 = vsyncadd [#allocation8], 4294967280  ;;  %v1549_v0 = vld [vmem:[#allocation2 + $0x40] sm:$0xff]   ;;  %v1553_v4 = vld [vmem:[#allocation2 + $0x48] sm:$0xff]   ;;  %vm613_vm0 = vcmask 523264   ;;  %s1744_s15 = smov 96  }
  0x4c   :  { %v1550_v1 = vld [vmem:[#allocation2 + $0xc0] sm:$0xff]   ;;  %1369 = vmatprep.subr.bf16.mxu0 %v1549_v0  ;;  %v1554_v5 = vld [vmem:[#allocation2 + $0xc8] sm:$0xff]   ;;  %v1557_v8 = vld [vmem:[#allocation2 + $0x50] sm:$0xff]   ;;  %vm1040_vm1 = vcmask 261120   ;;  %vm1043_vm2 = vcmask 785408  }
  0x4d   :  { %v1551_v2 = vld [vmem:[#allocation2] sm:$0xff]   ;;  %1433 = vmatprep.subr.bf16.mxu1 %v1550_v1  ;;  %v1555_v6 = vld [vmem:[#allocation2 + $0x8] sm:$0xff]   ;;  %v1558_v9 = vld [vmem:[#allocation2 + $0xd0] sm:$0xff]  }
  0x4e   :  { %v1552_v3 = vld [vmem:[#allocation2 + $0x80] sm:$0xff]   ;;  %1370 = vmatpush3.bf16.msra.mxu0 %v1551_v2  ;;  %v1556_v7 = vld [vmem:[#allocation2 + $0x88] sm:$0xff]   ;;  %v1559_v10 = vld [vmem:[#allocation2 + $0x10] sm:$0xff]  }
  0x4f   :  { %1434 = vmatpush3.bf16.msra.mxu1 %v1552_v3  ;;  %1371 = vmatprep.subr.bf16.mxu0 %v1553_v4  ;;  %v1560_v11 = vld [vmem:[#allocation2 + $0x90] sm:$0xff]   ;;  %v1561_v12 = vld [vmem:[#allocation2 + $0x58] sm:$0xff]   ;;  %v1565_v16 = vld [vmem:[#allocation2 + $0x60] sm:$0xff]  }
  0x50   :  { %1435 = vmatprep.subr.bf16.mxu1 %v1554_v5  ;;  %v1562_v13 = vld [vmem:[#allocation2 + $0xd8] sm:$0xff]   ;;  %v1566_v17 = vld [vmem:[#allocation2 + $0xe0] sm:$0xff]   ;;  %v1569_v20 = vld [vmem:[#allocation2 + $0x68] sm:$0xff]  }
  0x51   :  { %v1563_v14 = vld [vmem:[#allocation2 + $0x18] sm:$0xff]   ;;  %v1567_v18 = vld [vmem:[#allocation2 + $0x20] sm:$0xff]   ;;  %v1570_v21 = vld [vmem:[#allocation2 + $0xe8] sm:$0xff]  }
  0x52   :  { %1372 = vmatpush3.bf16.msra.mxu0 %v1555_v6  ;;  %v1564_v15 = vld [vmem:[#allocation2 + $0x98] sm:$0xff]   ;;  %v1568_v19 = vld [vmem:[#allocation2 + $0xa0] sm:$0xff]   ;;  %v1571_v22 = vld [vmem:[#allocation2 + $0x28] sm:$0xff]  }
  0x53   :  { %1436 = vmatpush3.bf16.msra.mxu1 %v1556_v7  ;;  %1373 = vmatprep.subr.bf16.mxu0 %v1557_v8  ;;  %v1572_v23 = vld [vmem:[#allocation2 + $0xa8] sm:$0xff]   ;;  %v1573_v24 = vld [vmem:[#allocation2 + $0x70] sm:$0xff]   ;;  %v1577_v28 = vld [vmem:[#allocation2 + $0x78] sm:$0xff]  }
  0x54   :  { %1437 = vmatprep.subr.bf16.mxu1 %v1558_v9  ;;  %v1574_v25 = vld [vmem:[#allocation2 + $0xf0] sm:$0xff]   ;;  %v1578_v29 = vld [vmem:[#allocation2 + $0xf8] sm:$0xff]   ;;  %v1586_v35 = vld [vmem:[%s2141_s0 + $0xc] ss:$20 sps:$4 sm:$0xff]  }
  0x55   :  { %v1575_v26 = vld [vmem:[#allocation2 + $0x30] sm:$0xff]   ;;  %v1579_v30 = vld [vmem:[#allocation2 + $0x38] sm:$0xff]   ;;  %v1587_v36 = vld [vmem:[#allocation2 + $0x100] sm:$0xff]   ;;  %767 = vmatprep.mubr.bf16.mxu1 %v1586_v35 }
  0x56   :  { %1374 = vmatpush3.bf16.msra.mxu0 %v1559_v10  ;;  %v1576_v27 = vld [vmem:[#allocation2 + $0xb0] sm:$0xff]   ;;  %v1580_v31 = vld [vmem:[#allocation2 + $0xb8] sm:$0xff]   ;;  %v1588_v37 = vld [vmem:[%s2141_s0 + $0x2c] ss:$20 sps:$4 sm:$0xff]  }
  0x57   :  { %1438 = vmatpush3.bf16.msra.mxu1 %v1560_v11  ;;  %1375 = vmatprep.subr.bf16.mxu0 %v1561_v12  ;;  %v1581_v32 = vld [vmem:[%s2141_s0] ss:$20 sps:$4 sm:$0xff]   ;;  %v1583_v33 = vld [vmem:[%s2141_s0 + $0x4] ss:$20 sps:$4 sm:$0xff]   ;;  %v1584_v34 = vld [vmem:[%s2141_s0 + $0x8] ss:$20 sps:$4 sm:$0xff]  }
  0x58   :  { %1439 = vmatprep.subr.bf16.mxu1 %v1562_v13  ;;  %670 = vmatprep.mubr.bf16.mxu0 %v1583_v33  ;;  %v1590_v38 = vld [vmem:[%s2141_s0 + $0x34] ss:$20 sps:$4 sm:$0xff]   ;;  %v1593_v40 = vld [vmem:[%s2141_s0 + $0x30] ss:$20 sps:$4 sm:$0xff]   ;;  %v1599_v45 = vld [vmem:[%s2141_s0 + $0x58] ss:$20 sps:$4 sm:$0xff]  }
  0x59   :  { %v1592_v39 = vld [vmem:[%s2141_s0 + $0x28] ss:$20 sps:$4 sm:$0xff]   ;;  %v1598_v44 = vld [vmem:[%s2141_s0 + $0x50] ss:$20 sps:$4 sm:$0xff]   ;;  %v1605_v50 = vld [vmem:[%s2141_s0 + $0x78] ss:$20 sps:$4 sm:$0xff]  }
  0x5a   :  { %1376 = vmatpush3.bf16.msra.mxu0 %v1563_v14  ;;  %v1594_v41 = vld [vmem:[%s2141_s0 + $0x54] ss:$20 sps:$4 sm:$0xff]   ;;  %v1596_v43 = vld [vmem:[%s2141_s0 + $0x5c] ss:$20 sps:$4 sm:$0xff]   ;;  %v1603_v48 = vld [vmem:[%s2141_s0 + $0x84] ss:$20 sps:$4 sm:$0xff]  }
  0x5b   :  { %1440 = vmatpush3.bf16.msra.mxu1 %v1564_v15  ;;  %1377 = vmatprep.subr.bf16.mxu0 %v1565_v16  ;;  %v1600_v42 = vld [vmem:[#allocation2 + $0x108] sm:$0xff]   ;;  %v1613_v46 = vld [vmem:[#allocation2 + $0x110] sm:$0xff]   ;;  %v1626_v49 = vld [vmem:[#allocation2 + $0x118] sm:$0xff]  }
  0x5c   :  { %1441 = vmatprep.subr.bf16.mxu1 %v1566_v17  ;;  %v1601_v47 = vld [vmem:[%s2141_s0 + $0x7c] ss:$20 sps:$4 sm:$0xff]   ;;  %v1606_v51 = vld [vmem:[%s2141_s0 + $0x80] ss:$20 sps:$4 sm:$0xff]   ;;  %v1607_v52 = vld [vmem:[%s2141_s0 + $0xa4] ss:$20 sps:$4 sm:$0xff]  }
  0x5d   :  { %v1609_v53 = vld [vmem:[%s2141_s0 + $0xac] ss:$20 sps:$4 sm:$0xff]   ;;  %v1612_v55 = vld [vmem:[%s2141_s0 + $0xa8] ss:$20 sps:$4 sm:$0xff]   ;;  %v1619_v59 = vld [vmem:[%s2141_s0 + $0xd0] ss:$20 sps:$4 sm:$0xff]  }
  0x5e   :  { %1378 = vmatpush3.bf16.msra.mxu0 %v1567_v18  ;;  %v1611_v54 = vld [vmem:[%s2141_s0 + $0xa0] ss:$20 sps:$4 sm:$0xff]   ;;  %v1618_v58 = vld [vmem:[%s2141_s0 + $0xc8] ss:$20 sps:$4 sm:$0xff]   ;;  %v1624_v62 = vld [vmem:[%s2141_s0 + $0xf0] ss:$20 sps:$4 sm:$0xff]  }
  0x5f   :  { %1442 = vmatpush3.bf16.msra.mxu1 %v1568_v19  ;;  %1379 = vmatprep.subr.bf16.mxu0 %v1569_v20  ;;  %v1614_v56 = vld [vmem:[%s2141_s0 + $0xcc] ss:$20 sps:$4 sm:$0xff]   ;;  %v1616_v57 = vld [vmem:[%s2141_s0 + $0xd4] ss:$20 sps:$4 sm:$0xff]   ;;  %v1622_v61 = vld [vmem:[%s2141_s0 + $0xfc] ss:$20 sps:$4 sm:$0xff]  }
  0x60   :  { %1443 = vmatprep.subr.bf16.mxu1 %v1570_v21  ;;  %v1620_v60 = vld [vmem:[%s2141_s0 + $0xf4] ss:$20 sps:$4 sm:$0xff]   ;;  %v1625_v63 = vld [vmem:[%s2141_s0 + $0xf8] ss:$20 sps:$4 sm:$0xff]   ;;  %v1627_v0 = vld [vmem:[%s2141_s0 + $0x11c] ss:$20 sps:$4 sm:$0xff]  }
  0x61   :  { %v1629_v1 = vld [vmem:[%s2141_s0 + $0x124] ss:$20 sps:$4 sm:$0xff]   ;;  %v1632_v3 = vld [vmem:[%s2141_s0 + $0x120] ss:$20 sps:$4 sm:$0xff]   ;;  %v1639_v10 = vld [vmem:[%s2141_s0 + $0x88] ss:$20 sps:$4 sm:$0xff]  }
  0x62   :  { %1380 = vmatpush3.bf16.msra.mxu0 %v1571_v22  ;;  %v1631_v2 = vld [vmem:[%s2141_s0 + $0x118] ss:$20 sps:$4 sm:$0xff]   ;;  %v1633_v4 = vld [vmem:[%s2141_s0 + $0x10] ss:$20 sps:$4 sm:$0xff]   ;;  %v1637_v8 = vld [vmem:[%s2141_s0 + $0x60] ss:$20 sps:$4 sm:$0xff]  }
  0x63   :  { %1444 = vmatpush3.bf16.msra.mxu1 %v1572_v23  ;;  %1381 = vmatprep.subr.bf16.mxu0 %v1573_v24  ;;  %v1634_v5 = vld [vmem:[%s2141_s0 + $0xb0] ss:$20 sps:$4 sm:$0xff]   ;;  %v1635_v6 = vld [vmem:[%s2141_s0 + $0x38] ss:$20 sps:$4 sm:$0xff]   ;;  %v1638_v9 = vld [vmem:[%s2141_s0 + $0x100] ss:$20 sps:$4 sm:$0xff]  }
  0x64   :  { %1445 = vmatprep.subr.bf16.mxu1 %v1574_v25  ;;  %v1636_v7 = vld [vmem:[%s2141_s0 + $0xd8] ss:$20 sps:$4 sm:$0xff]   ;;  %v1640_v11 = vld [vmem:[%s2141_s0 + $0x128] ss:$20 sps:$4 sm:$0xff]   ;;  %v1960_v13 = vld [vmem:[#allocation4] ss:$0 sm:$0xff] }
  0x65   :  { %s1743_s0 = smov 32  }
  0x66   :  { %1382 = vmatpush3.bf16.msra.mxu0 %v1575_v26 }
  0x67   :  { %1446 = vmatpush3.bf16.msra.mxu1 %v1576_v27  ;;  %1383 = vmatprep.subr.bf16.mxu0 %v1577_v28 }
  0x68   :  { %1447 = vmatprep.subr.bf16.mxu1 %v1578_v29 }
  0x6a   :  { %1384 = vmatpush3.bf16.msra.mxu0 %v1579_v30 }
  0x6b   :  { %1448 = vmatpush3.bf16.msra.mxu1 %v1580_v31  ;;  %1509 = vmatprep.subr.bf16.mxu0 %v1587_v36 }
  0x6c   :  { %1533 = vmatprep.subr.bf16.mxu1 %v1587_v36 }
  0x6d   :  { %671 = vmatmul.mubr.bf16.vlgmr.msra.gmra.mrb[0].mxu0 %v1581_v32 }
  0x6e   :  { %768 = vmatmul.mubr.bf16.vlgmr.msra.gmra.mrb[0].mxu1 %v1584_v34  ;;  %1510 = vmatpush3.bf16.msra.mxu0 %v1587_v36 }
  0x6f   :  { %678 = vmatprep.mubr.bf16.mxu0 %v1588_v37  ;;  %775 = vmatprep.mubr.bf16.mxu1 %v1590_v38 }
  0x70   :  { %1537 = vmatpush3.bf16.msra.mxu1 %v1587_v36  ;;  %1511 = vmatprep.subr.bf16.mxu0 %v1600_v42 }
  0x71   :  { %1534 = vmatprep.subr.bf16.mxu1 %v1600_v42 }
  0x72   :  { %1512 = vmatpush3.bf16.msra.mxu0 %v1600_v42 }
  0x73   :  { %1513 = vmatprep.subr.bf16.mxu0 %v1613_v46 }
  0x74   :  { %1538 = vmatpush3.bf16.msra.mxu1 %v1600_v42 }
  0x75   :  { %679 = vmatmul.mubr.bf16.gmra.mrb[4].mxu0 %v1592_v39  ;;  %1535 = vmatprep.subr.bf16.mxu1 %v1613_v46 }
  0x76   :  { %776 = vmatmul.mubr.bf16.gmra.mrb[4].mxu1 %v1593_v40  ;;  %686 = vmatprep.mubr.bf16.mxu0 %v1594_v41 }
  0x77   :  { %783 = vmatprep.mubr.bf16.mxu1 %v1596_v43  ;;  %1514 = vmatpush3.bf16.msra.mxu0 %v1613_v46 }
  0x78   :  { %1539 = vmatpush3.bf16.msra.mxu1 %v1613_v46  ;;  %1515 = vmatprep.subr.bf16.mxu0 %v1626_v49 }
  0x79   :  { %1536 = vmatprep.subr.bf16.mxu1 %v1626_v49 }
  0x7b   :  { %1516 = vmatpush3.bf16.msra.mxu0 %v1626_v49 }
  0x7c   :  { %1540 = vmatpush3.bf16.msra.mxu1 %v1626_v49 }
  0x7d   :  { %687 = vmatmul.mubr.bf16.gmra.mrb[8].mxu0 %v1598_v44 }
  0x7e   :  { %784 = vmatmul.mubr.bf16.gmra.mrb[8].mxu1 %v1599_v45  ;;  %694 = vmatprep.mubr.bf16.mxu0 %v1601_v47 }
  0x7f   :  { %791 = vmatprep.mubr.bf16.mxu1 %v1603_v48 }
  0x85   :  { %695 = vmatmul.mubr.bf16.gmra.mrb[12].mxu0 %v1605_v50 }
  0x86   :  { %792 = vmatmul.mubr.bf16.gmra.mrb[12].mxu1 %v1606_v51  ;;  %702 = vmatprep.mubr.bf16.mxu0 %v1607_v52 }
  0x87   :  { %799 = vmatprep.mubr.bf16.mxu1 %v1609_v53 }
  0x8d   :  { %703 = vmatmul.mubr.bf16.gmra.mrb[16].mxu0 %v1611_v54 }
  0x8e   :  { %800 = vmatmul.mubr.bf16.gmra.mrb[16].mxu1 %v1612_v55  ;;  %710 = vmatprep.mubr.bf16.mxu0 %v1614_v56 }
  0x8f   :  { %807 = vmatprep.mubr.bf16.mxu1 %v1616_v57 }
  0x95   :  { %711 = vmatmul.mubr.bf16.gmra.mrb[20].mxu0 %v1618_v58 }
  0x96   :  { %808 = vmatmul.mubr.bf16.gmra.mrb[20].mxu1 %v1619_v59  ;;  %718 = vmatprep.mubr.bf16.mxu0 %v1620_v60 }
  0x97   :  { %815 = vmatprep.mubr.bf16.mxu1 %v1622_v61 }
  0x9d   :  { %719 = vmatmul.mubr.bf16.gmra.mrb[24].mxu0 %v1624_v62 }
  0x9e   :  { %816 = vmatmul.mubr.bf16.gmra.mrb[24].mxu1 %v1625_v63  ;;  %726 = vmatprep.mubr.bf16.mxu0 %v1627_v0 }
  0x9f   :  { %823 = vmatprep.mubr.bf16.mxu1 %v1629_v1 }
  0xa5   :  { %727 = vmatmul.mubr.bf16.gmra.mrb[28].mxu0 %v1631_v2 }
  0xa6   :  { %824 = vmatmul.mubr.bf16.gmra.mrb[28].mxu1 %v1632_v3  ;;  %1517 = vmatprep.mubr.msk.bf16.mxu0 %vm613_vm0, %v1633_v4 }
  0xa7   :  { %1525 = vmatprep.mubr.msk.bf16.mxu1 %vm613_vm0, %v1634_v5 }
  0xad   :  { %1518 = vmatmul.mubr.msk.bf16.vlgmr.msra.gmra.mrb[32].mxu0 %vm613_vm0, %v1635_v6 }
  0xae   :  { %1526 = vmatmul.mubr.msk.bf16.vlgmr.msra.gmra.mrb[32].mxu1 %vm613_vm0, %v1636_v7  ;;  %1521 = vmatprep.mubr.msk.bf16.mxu0 %vm613_vm0, %v1637_v8 }
  0xaf   :  { %1529 = vmatprep.mubr.msk.bf16.mxu1 %vm613_vm0, %v1638_v9 }
  0xb5   :  { %1522 = vmatmul.mubr.msk.bf16.gmra.mrb[36].mxu0 %vm613_vm0, %v1639_v10 }
  0xb6   :  { %1530 = vmatmul.mubr.msk.bf16.gmra.mrb[36].mxu1 %vm613_vm0, %v1640_v11 }
 0x140   :  { %v1385_v12 = vpop.f32.mrb[0].mxu0 }
 0x141   :  { %v1386_v14 = vpop.f32.mrb[1].mxu0  ;;  %v1449_v15 = vpop.f32.mrb[0].mxu1 }
 0x142   :  { %v1387_v16 = vadd.f32 %v1386_v14, %v1385_v12  ;;  %v1388_v17 = vpop.f32.mrb[2].mxu0  ;;  %v1450_v18 = vpop.f32.mrb[1].mxu1 }
 0x143   :  { %v1389_v19 = vpop.f32.mrb[3].mxu0  ;;  %v1451_v20 = vadd.f32 %v1450_v18, %v1449_v15  ;;  %v1452_v21 = vpop.f32.mrb[2].mxu1 }
 0x144   :  { %v673_v22 = vadd.f32 %v1387_v16, %v1960_v13  ;;  %v1390_v23 = vadd.f32 %v1389_v19, %v1388_v17  ;;  %v1453_v24 = vpop.f32.mrb[3].mxu1 }
 0x145   :  { %v1454_v25 = vadd.f32 %v1453_v24, %v1452_v21 }
 0x146   :  { %v676_v26 = vadd.f32 %v1390_v23, %v1960_v13  ;;  %v1964_v27 = vadd.f32 %v1451_v20, %v673_v22 }
 0x148   :  { %v1391_v28 = vpop.f32.mrb[4].mxu0  ;;  %v1966_v29 = vadd.f32 %v1454_v25, %v676_v26 }
 0x149   :  { %v1392_v30 = vpop.f32.mrb[5].mxu0  ;;  %v1455_v31 = vpop.f32.mrb[4].mxu1 }
 0x14a   :  { %v1393_v32 = vadd.f32 %v1392_v30, %v1391_v28  ;;  %v1394_v33 = vpop.f32.mrb[6].mxu0  ;;  %v1456_v34 = vpop.f32.mrb[5].mxu1 }
 0x14b   :  { %v1395_v35 = vpop.f32.mrb[7].mxu0  ;;  %v1457_v36 = vadd.f32 %v1456_v34, %v1455_v31  ;;  %v1458_v37 = vpop.f32.mrb[6].mxu1 }
 0x14c   :  { %v681_v38 = vadd.f32 %v1393_v32, %v1960_v13  ;;  %v1396_v39 = vadd.f32 %v1395_v35, %v1394_v33  ;;  %v1459_v40 = vpop.f32.mrb[7].mxu1 }
 0x14d   :  { %v1460_v41 = vadd.f32 %v1459_v40, %v1458_v37 }
 0x14e   :  { %v684_v42 = vadd.f32 %v1396_v39, %v1960_v13  ;;  %v1970_v43 = vadd.f32 %v1457_v36, %v681_v38 }
 0x150   :  { %v1397_v44 = vpop.f32.mrb[8].mxu0  ;;  %v1972_v45 = vadd.f32 %v1460_v41, %v684_v42 }
 0x151   :  { %v1398_v46 = vpop.f32.mrb[9].mxu0  ;;  %v1461_v47 = vpop.f32.mrb[8].mxu1 }
 0x152   :  { %v1399_v48 = vadd.f32 %v1398_v46, %v1397_v44  ;;  %v1400_v49 = vpop.f32.mrb[10].mxu0  ;;  %v1462_v50 = vpop.f32.mrb[9].mxu1 }
 0x153   :  { %v1401_v51 = vpop.f32.mrb[11].mxu0  ;;  %v1463_v52 = vadd.f32 %v1462_v50, %v1461_v47  ;;  %v1464_v53 = vpop.f32.mrb[10].mxu1 }
 0x154   :  { %v689_v54 = vadd.f32 %v1399_v48, %v1960_v13  ;;  %v1402_v55 = vadd.f32 %v1401_v51, %v1400_v49  ;;  %v1465_v56 = vpop.f32.mrb[11].mxu1 }
 0x155   :  { %v1466_v57 = vadd.f32 %v1465_v56, %v1464_v53 }
 0x156   :  { %v692_v58 = vadd.f32 %v1402_v55, %v1960_v13  ;;  %v1976_v59 = vadd.f32 %v1463_v52, %v689_v54 }
 0x158   :  { %v1403_v60 = vpop.f32.mrb[12].mxu0  ;;  %v1978_v61 = vadd.f32 %v1466_v57, %v692_v58 }
 0x159   :  { %v1404_v62 = vpop.f32.mrb[13].mxu0  ;;  %v1467_v63 = vpop.f32.mrb[12].mxu1 }
 0x15a   :  { %v1405_v0 = vadd.f32 %v1404_v62, %v1403_v60  ;;  %v1406_v1 = vpop.f32.mrb[14].mxu0  ;;  %v1468_v2 = vpop.f32.mrb[13].mxu1 }
 0x15b   :  { %v1407_v3 = vpop.f32.mrb[15].mxu0  ;;  %v1469_v4 = vadd.f32 %v1468_v2, %v1467_v63  ;;  %v1470_v5 = vpop.f32.mrb[14].mxu1 }
 0x15c   :  { %v697_v6 = vadd.f32 %v1405_v0, %v1960_v13  ;;  %v1408_v7 = vadd.f32 %v1407_v3, %v1406_v1  ;;  %v1471_v8 = vpop.f32.mrb[15].mxu1 }
 0x15d   :  { %v1472_v9 = vadd.f32 %v1471_v8, %v1470_v5 }
 0x15e   :  { %v700_v10 = vadd.f32 %v1408_v7, %v1960_v13  ;;  %v1982_v11 = vadd.f32 %v1469_v4, %v697_v6 }
 0x160   :  { %v1409_v12 = vpop.f32.mrb[16].mxu0  ;;  %v1984_v14 = vadd.f32 %v1472_v9, %v700_v10 }
 0x161   :  { %v1410_v15 = vpop.f32.mrb[17].mxu0  ;;  %v1473_v16 = vpop.f32.mrb[16].mxu1 }
 0x162   :  { %v1411_v17 = vadd.f32 %v1410_v15, %v1409_v12  ;;  %v1412_v18 = vpop.f32.mrb[18].mxu0  ;;  %v1474_v19 = vpop.f32.mrb[17].mxu1 }
 0x163   :  { %v1413_v20 = vpop.f32.mrb[19].mxu0  ;;  %v1475_v21 = vadd.f32 %v1474_v19, %v1473_v16  ;;  %v1476_v22 = vpop.f32.mrb[18].mxu1 }
 0x164   :  { %v705_v23 = vadd.f32 %v1411_v17, %v1960_v13  ;;  %v1414_v24 = vadd.f32 %v1413_v20, %v1412_v18  ;;  %v1477_v25 = vpop.f32.mrb[19].mxu1 }
 0x165   :  { %v1478_v26 = vadd.f32 %v1477_v25, %v1476_v22 }
 0x166   :  { %v708_v28 = vadd.f32 %v1414_v24, %v1960_v13  ;;  %v802_v30 = vadd.f32 %v1475_v21, %v705_v23 }
 0x168   :  { %v1415_v31 = vpop.f32.mrb[20].mxu0  ;;  %v1988_v32 = vadd.f32 %v1478_v26, %v708_v28 }
 0x169   :  { %v1416_v33 = vpop.f32.mrb[21].mxu0  ;;  %v1479_v34 = vpop.f32.mrb[20].mxu1 }
 0x16a   :  { %v1417_v35 = vadd.f32 %v1416_v33, %v1415_v31  ;;  %v1418_v36 = vpop.f32.mrb[22].mxu0  ;;  %v1480_v37 = vpop.f32.mrb[21].mxu1 }
 0x16b   :  { %v1419_v38 = vpop.f32.mrb[23].mxu0  ;;  %v1481_v39 = vadd.f32 %v1480_v37, %v1479_v34  ;;  %v1482_v40 = vpop.f32.mrb[22].mxu1 }
 0x16c   :  { %v713_v41 = vadd.f32 %v1417_v35, %v1960_v13  ;;  %v1420_v42 = vadd.f32 %v1419_v38, %v1418_v36  ;;  %v1483_v44 = vpop.f32.mrb[23].mxu1 }
 0x16d   :  { %v1484_v46 = vadd.f32 %v1483_v44, %v1482_v40 }
 0x16e   :  { %v716_v47 = vadd.f32 %v1420_v42, %v1960_v13  ;;  %v810_v48 = vadd.f32 %v1481_v39, %v713_v41 }
 0x170   :  { %v1421_v49 = vpop.f32.mrb[24].mxu0  ;;  %v813_v50 = vadd.f32 %v1484_v46, %v716_v47 }
 0x171   :  { %v1422_v51 = vpop.f32.mrb[25].mxu0  ;;  %v1485_v52 = vpop.f32.mrb[24].mxu1 }
 0x172   :  { %v1423_v53 = vadd.f32 %v1422_v51, %v1421_v49  ;;  %v1424_v54 = vpop.f32.mrb[26].mxu0  ;;  %v1486_v55 = vpop.f32.mrb[25].mxu1 }
 0x173   :  { %v1425_v56 = vpop.f32.mrb[27].mxu0  ;;  %v1487_v57 = vadd.f32 %v1486_v55, %v1485_v52  ;;  %v1488_v58 = vpop.f32.mrb[26].mxu1 }
 0x174   :  { %v721_v60 = vadd.f32 %v1423_v53, %v1960_v13  ;;  %v1426_v62 = vadd.f32 %v1425_v56, %v1424_v54  ;;  %v1489_v63 = vpop.f32.mrb[27].mxu1 }
 0x175   :  { %v1490_v0 = vadd.f32 %v1489_v63, %v1488_v58 }
 0x176   :  { %v724_v1 = vadd.f32 %v1426_v62, %v1960_v13  ;;  %v818_v2 = vadd.f32 %v1487_v57, %v721_v60 }
 0x178   :  { %v1427_v3 = vpop.f32.mrb[28].mxu0  ;;  %v821_v4 = vadd.f32 %v1490_v0, %v724_v1 }
 0x179   :  { %v1428_v5 = vpop.f32.mrb[29].mxu0  ;;  %v1491_v6 = vpop.f32.mrb[28].mxu1 }
 0x17a   :  { %v1429_v7 = vadd.f32 %v1428_v5, %v1427_v3  ;;  %v1430_v8 = vpop.f32.mrb[30].mxu0  ;;  %v1492_v9 = vpop.f32.mrb[29].mxu1 }
 0x17b   :  { %v1431_v10 = vpop.f32.mrb[31].mxu0  ;;  %v1493_v12 = vadd.f32 %v1492_v9, %v1491_v6  ;;  %v1494_v15 = vpop.f32.mrb[30].mxu1 }
 0x17c   :  { %v729_v16 = vadd.f32 %v1429_v7, %v1960_v13  ;;  %v1432_v17 = vadd.f32 %v1431_v10, %v1430_v8  ;;  %v1495_v18 = vpop.f32.mrb[31].mxu1 }
 0x17d   :  { %v1496_v19 = vadd.f32 %v1495_v18, %v1494_v15 }
 0x17e   :  { %v732_v20 = vadd.f32 %v1432_v17, %v1960_v13  ;;  %v826_v21 = vadd.f32 %v1493_v12, %v729_v16 }
 0x180   :  { %v1519_v22 = vpop.f32.mrb[32].mxu0  ;;  %v829_v23 = vadd.f32 %v1496_v19, %v732_v20 }
 0x181   :  { %v1997_v24 = vadd.f32 %v1519_v22, %v1970_v43  ;;  %v1527_v25 = vpop.f32.mrb[32].mxu1  ;;  %v866_v26 = vpop.f32.mrb[33].mxu0 }
 0x182   :  { %v1999_v28 = vadd.f32 %v1527_v25, %v810_v48  ;;  %v2002_v31 = vadd.f32 %v866_v26, %v1964_v27  ;;  %v898_v33 = vpop.f32.mrb[33].mxu1  ;;  %v1520_v34 = vpop.f32.mrb[34].mxu0 }
 0x183   :  { %v2004_v35 = vadd.f32 %v898_v33, %v802_v30  ;;  %v2007_v36 = vadd.f32 %v1520_v34, %v1972_v45  ;;  %v1528_v13 = vpop.f32.mrb[34].mxu1  ;;  %v869_v37 = vpop.f32.mrb[35].mxu0  ;;  %v952_v41 = vmul.f32 %v1997_v24, %v1997_v24 }
 0x184   :  { %v2009_v38 = vadd.f32 %v1528_v13, %v813_v50  ;;  %v2012_v43 = vadd.f32 %v869_v37, %v1966_v29  ;;  %v901_v39 = vpop.f32.mrb[35].mxu1  ;;  %v950_v27 = vmul.f32 %v2002_v31, %v2002_v31  ;;  %v960_v18 = vmul.f32 %v1999_v28, %v1999_v28 }
 0x185   :  { %v2015_v40 = vadd.f32 %v901_v39, %v1988_v32  ;;  %v953_v32 = vmul.f32 %v2007_v36, %v2007_v36 }
 0x186   :  { %v929_v30 = vadd.f32 %v2012_v43, %v2002_v31  ;;  %v951_v45 = vmul.f32 %v2012_v43, %v2012_v43 }
 0x187   :  { %v959_v15 = vmul.f32 %v2015_v40, %v2015_v40 }
 0x188   :  { %v930_v42 = vadd.f32 %v929_v30, %v1997_v24  ;;  %v966_v29 = vadd.f32 %v951_v45, %v950_v27  ;;  %v1523_v44 = vpop.f32.mrb[36].mxu0 }
 0x189   :  { %v2029_v46 = vadd.f32 %v1523_v44, %v1982_v11  ;;  %v1531_v47 = vpop.f32.mrb[36].mxu1  ;;  %v882_v48 = vpop.f32.mrb[37].mxu0 }
 0x18a   :  { %v967_v49 = vadd.f32 %v966_v29, %v952_v41  ;;  %v2031_v50 = vadd.f32 %v1531_v47, %v826_v21  ;;  %v2034_v51 = vadd.f32 %v882_v48, %v1976_v59  ;;  %v931_v52 = vadd.f32 %v930_v42, %v2007_v36  ;;  %v914_v53 = vpop.f32.mrb[37].mxu1  ;;  %v1524_v54 = vpop.f32.mrb[38].mxu0 }
 0x18b   :  { %v2037_v55 = vadd.f32 %v914_v53, %v818_v2  ;;  %v2040_v56 = vadd.f32 %v1524_v54, %v1984_v14  ;;  %v1532_v57 = vpop.f32.mrb[38].mxu1  ;;  %v885_v11 = vpop.f32.mrb[39].mxu0  ;;  %v956_v5 = vmul.f32 %v2029_v46, %v2029_v46  ;;  %v961_v21 = vmul.f32 %v2009_v38, %v2009_v38 }
 0x18c   :  { %v932_v58 = vadd.f32 %v931_v52, %v2034_v51  ;;  %v954_v60 = vmul.f32 %v2034_v51, %v2034_v51  ;;  %v968_v62 = vadd.f32 %v967_v49, %v953_v32  ;;  %v917_v63 = vpop.f32.mrb[39].mxu1  ;;  %v2045_v59 = vadd.f32 %v1532_v57, %v829_v23 }
 0x18d   :  { %v2048_v0 = vadd.f32 %v885_v11, %v1978_v61  ;;  %v2050_v2 = vadd.f32 %v917_v63, %v821_v4  ;;  %v957_v8 = vmul.f32 %v2040_v56, %v2040_v56  ;;  %v958_v4 = vmul.f32 %v2004_v35, %v2004_v35 }
 0x18e   :  { %v969_v1 = vadd.f32 %v968_v62, %v954_v60  ;;  %v962_v25 = vmul.f32 %v2037_v55, %v2037_v55  ;;  %v964_v39 = vmul.f32 %v2031_v50, %v2031_v50  ;;  %v965_v45 = vmul.f32 %v2045_v59, %v2045_v59 }
 0x18f   :  { %v933_v14 = vadd.f32 %v932_v58, %v2048_v0  ;;  %v955_v3 = vmul.f32 %v2048_v0, %v2048_v0  ;;  %v963_v13 = vmul.f32 %v2050_v2, %v2050_v2 }
 0x191   :  { %v934_v6 = vadd.f32 %v933_v14, %v2029_v46  ;;  %v970_v7 = vadd.f32 %v969_v1, %v955_v3 }
 0x193   :  { %v935_v61 = vadd.f32 %v934_v6, %v2040_v56  ;;  %v971_v9 = vadd.f32 %v970_v7, %v956_v5 }
 0x195   :  { %v936_v10 = vadd.f32 %v935_v61, %v2004_v35  ;;  %v972_v12 = vadd.f32 %v971_v9, %v957_v8 }
 0x197   :  { %v973_v16 = vadd.f32 %v972_v12, %v958_v4  ;;  %v937_v17 = vadd.f32 %v936_v10, %v2015_v40 }
 0x199   :  { %v938_v19 = vadd.f32 %v937_v17, %v1999_v28  ;;  %v974_v20 = vadd.f32 %v973_v16, %v959_v15 }
 0x19b   :  { %v939_v22 = vadd.f32 %v938_v19, %v2009_v38  ;;  %v975_v23 = vadd.f32 %v974_v20, %v960_v18  ;;  %v1027_v19 = vlaneseq }
 0x19d   :  { %v940_v26 = vadd.f32 %v939_v22, %v2037_v55  ;;  %v976_v33 = vadd.f32 %v975_v23, %v961_v21  ;;  %v1028_v20 = vshrl.u32 %v1027_v19, 7  ;;  %v1019_v21 = vld [vmem:[#allocation6] sm:$0x1] }
 0x19f   :  { %v941_v34 = vadd.f32 %v940_v26, %v2050_v2  ;;  %v977_v37 = vadd.f32 %v976_v33, %v962_v25  ;;  %v1029_v22 = vsub.s32 0, %v1028_v20  ;;  %v1023_v26 = vld [vmem:[#allocation7] sm:$0x1] }
 0x1a1   :  { %v942_v27 = vadd.f32 %v941_v34, %v2031_v50  ;;  %v978_v30 = vadd.f32 %v977_v37, %v963_v13 }
 0x1a3   :  { %v943_v41 = vadd.f32 %v942_v27, %v2045_v59  ;;  %v979_v42 = vadd.f32 %v978_v30, %v964_v39 }
 0x1a5   :  { %v944_v29 = vrot.slane %v943_v41, 4  ;;  %v980_v44 = vadd.f32 %v979_v42, %v965_v45 }
 0x1a7   :  { %v945_v32 = vadd.f32 %v944_v29, %v943_v41  ;;  %v981_v47 = vrot.slane %v980_v44, 4 }
 0x1a9   :  { %v946_v48 = vrot.slane %v945_v32, 2  ;;  %v982_v49 = vadd.f32 %v981_v47, %v980_v44 }
 0x1ab   :  { %v947_v52 = vadd.f32 %v946_v48, %v945_v32  ;;  %v983_v53 = vrot.slane %v982_v49, 2 }
 0x1ad   :  { %v948_v54 = vrot.slane %v947_v52, 1  ;;  %v984_v57 = vadd.f32 %v983_v53, %v982_v49 }
 0x1af   :  { %v949_v11 = vadd.f32 %v948_v54, %v947_v52  ;;  %v985_v58 = vrot.slane %v984_v57, 1 }
 0x1b1   :  { %996 = vrot.lane.b32.xlu1 %v949_v11, %s1743_s0  ;;  %988 = vrot.lane.b32.xlu0 %v949_v11, %s1744_s15  ;;  %v986_v60 = vadd.f32 %v985_v58, %v984_v57 }
 0x1b5   :  { %1001 = vrot.lane.b32.xlu1 %v986_v60, %s1744_s15  ;;  %992 = vrot.lane.b32.xlu0 %v949_v11, %s1739_s2 }
 0x1b9   :  { %1009 = vrot.lane.b32.xlu1 %v986_v60, %s1743_s0  ;;  %1005 = vrot.lane.b32.xlu0 %v986_v60, %s1739_s2 }
 0x223   :  { %v997_v62 = vpop.permute.xlu1 %996  ;;  %v989_v63 = vpop.permute.xlu0 %988 }
 0x224   :  { %v991_v1 = vadd.f32 %v989_v63, %v949_v11 }
 0x227   :  { %v1002_v14 = vpop.permute.xlu1 %1001  ;;  %v993_v3 = vpop.permute.xlu0 %992 }
 0x228   :  { %v995_v5 = vadd.f32 %v993_v3, %v991_v1  ;;  %v1004_v6 = vadd.f32 %v1002_v14, %v986_v60 }
 0x22a   :  { %v999_v7 = vadd.f32 %v997_v62, %v995_v5 }
 0x22b   :  { %v1006_v8 = vpop.permute.xlu0 %1005  ;;  %v1010_v4 = vpop.permute.xlu1 %1009 }
 0x22c   :  { %v1014_v61 = vmul.f32 0.001953125, %v999_v7  ;;  %v1008_v9 = vadd.f32 %v1006_v8, %v1004_v6 }
 0x22e   :  { %v1012_v10 = vadd.f32 %v1010_v4, %v1008_v9  ;;  %v1016_v12 = vmul.f32 %v1014_v61, %v1014_v61 }
 0x230   :  { %v1015_v15 = vmul.f32 0.001953125, %v1012_v10 }
 0x232   :  { %v1017_v16 = vsub.f32 %v1015_v15, %v1016_v12 }
 0x234   :  { %v1018_v17 = vmax.f32 %v1017_v16, 0.0 }
 0x236   :  { %v1020_v18 = vadd.f32 1e-05, %v1018_v17 }
 0x238   :  { %1641 = vrsqrt.f32 %v1020_v18 }
 0x242   :  { %v1642_v23 = vpop.eup %1641 }
 0x243   :  { %v1022_v25 = vmul.f32 %v1642_v23, %v1019_v21 }
 0x245   :  { %v1030_v33 = vrot.slane %v1022_v25, %v1029_v22  ;;  %v1024_v34 = vmul.f32 %v1022_v25, %v1014_v61 }
 0x247   :  { %1034 = vrot.lane.b32.xlu1 %v1030_v33, %s1739_s2  ;;  %1031 = vrot.lane.b32.xlu0 %v1030_v33, %s1743_s0  ;;  %v1025_v13 = vsub.f32 %v1023_v26, %v1024_v34 }
 0x249   :  { %v1049_v37 = vrot.slane %v1025_v13, %v1029_v22 }
 0x24b   :  { %1037 = vrot.lane.b32.xlu0 %v1030_v33, %s1744_s15  ;;  %1050 = vrot.lane.b32.xlu1 %v1049_v37, %s1743_s0 }
 0x24f   :  { %1053 = vrot.lane.b32.xlu0 %v1049_v37, %s1739_s2  ;;  %1056 = vrot.lane.b32.xlu1 %v1049_v37, %s1744_s15 }
 0x2b9   :  { %v1035_v39 = vpop.permute.xlu1 %1034  ;;  %v1032_v27 = vpop.permute.xlu0 %1031 }
 0x2ba   :  { %v1041_v30 = vsel %vm1040_vm1, %v1022_v25, %v1032_v27 }
 0x2bb   :  { %v1042_v45 = vsel %vm613_vm0, %v1041_v30, %v1035_v39 }
 0x2bd   :  { %v1038_v41 = vpop.permute.xlu0 %1037  ;;  %v1051_v42 = vpop.permute.xlu1 %1050 }
 0x2be   :  { %v1044_v29 = vsel %vm1043_vm2, %v1042_v45, %v1038_v41  ;;  %v1059_v53 = vsel %vm1040_vm1, %v1025_v13, %v1051_v42 }
 0x2bf   :  { %v1065_v44 = vrot.slane %v1044_v29, %v1029_v22 }
 0x2c1   :  { %v1054_v32 = vpop.permute.xlu0 %1053  ;;  %v1057_v47 = vpop.permute.xlu1 %1056  ;;  %v1066_v48 = vmul.f32 %v1065_v44, %v2002_v31  ;;  %v1067_v49 = vmul.f32 %v1065_v44, %v2012_v43  ;;  %v1068_v52 = vmul.f32 %v1065_v44, %v1997_v24  ;;  %v1069_v54 = vmul.f32 %v1065_v44, %v2007_v36 }
 0x2c2   :  { %v1070_v57 = vmul.f32 %v1065_v44, %v2034_v51  ;;  %v1071_v11 = vmul.f32 %v1065_v44, %v2048_v0  ;;  %v1060_v58 = vsel %vm613_vm0, %v1059_v53, %v1054_v32  ;;  %v1072_v60 = vmul.f32 %v1065_v44, %v2029_v46 }
 0x2c3   :  { %v1073_v62 = vmul.f32 %v1065_v44, %v2040_v56  ;;  %v1074_v63 = vmul.f32 %v1065_v44, %v2004_v35  ;;  %v1061_v31 = vsel %vm1043_vm2, %v1060_v58, %v1057_v47  ;;  %v1075_v43 = vmul.f32 %v1065_v44, %v2015_v40 }
 0x2c4   :  { %v1076_v24 = vmul.f32 %v1065_v44, %v1999_v28  ;;  %v1077_v36 = vmul.f32 %v1065_v44, %v2009_v38  ;;  %v1085_v1 = vrot.slane %v1061_v31, %v1029_v22  ;;  %v1078_v51 = vmul.f32 %v1065_v44, %v2037_v55 }
 0x2c5   :  { %v1079_v0 = vmul.f32 %v1065_v44, %v2050_v2  ;;  %v1080_v14 = vmul.f32 %v1065_v44, %v2031_v50  ;;  %v1081_v46 = vmul.f32 %v1065_v44, %v2045_v59 }
 0x2c6   :  { %v1086_v56 = vadd.f32 %v1085_v1, %v1066_v48  ;;  %v1087_v3 = vadd.f32 %v1085_v1, %v1067_v49  ;;  %v1088_v35 = vadd.f32 %v1085_v1, %v1068_v52  ;;  %v1089_v5 = vadd.f32 %v1085_v1, %v1069_v54 }
 0x2c7   :  { %v1090_v6 = vadd.f32 %v1085_v1, %v1070_v57  ;;  %v1091_v7 = vadd.f32 %v1085_v1, %v1071_v11  ;;  %v1092_v40 = vadd.f32 %v1085_v1, %v1072_v60  ;;  %v1093_v8 = vadd.f32 %v1085_v1, %v1073_v62 }
 0x2c8   :  { %v1094_v28 = vadd.f32 %v1085_v1, %v1074_v63  ;;  %v1095_v61 = vadd.f32 %v1085_v1, %v1075_v43  ;;  %v1096_v38 = vadd.f32 %v1085_v1, %v1076_v24  ;;  %v1097_v9 = vadd.f32 %v1085_v1, %v1077_v36 }
 0x2c9   :  { %v1098_v4 = vadd.f32 %v1085_v1, %v1078_v51  ;;  %v1099_v55 = vadd.f32 %v1085_v1, %v1079_v0  ;;  %v1100_v10 = vadd.f32 %v1085_v1, %v1080_v14  ;;  %v1101_v2 = vadd.f32 %v1085_v1, %v1081_v46 }
 0x2ca   :  { %v1102_v12 = vmax.f32 %v1086_v56, 0.0  ;;  %v1103_v50 = vmax.f32 %v1087_v3, 0.0  ;;  %v1104_v15 = vmax.f32 %v1088_v35, 0.0  ;;  %v1105_v59 = vmax.f32 %v1089_v5, 0.0 }
 0x2cb   :  { %v1106_v16 = vmax.f32 %v1090_v6, 0.0  ;;  %v1107_v17 = vmax.f32 %v1091_v7, 0.0  ;;  %v1108_v18 = vmax.f32 %v1092_v40, 0.0  ;;  %v1109_v19 = vmax.f32 %v1093_v8, 0.0 }
 0x2cc   :  { %v1110_v20 = vmax.f32 %v1094_v28, 0.0  ;;  %v1111_v21 = vmax.f32 %v1095_v61, 0.0  ;;  %v1112_v22 = vmax.f32 %v1096_v38, 0.0  ;;  %v1113_v23 = vmax.f32 %v1097_v9, 0.0 }
 0x2cd   :  { %v1114_v25 = vmax.f32 %v1098_v4, 0.0  ;;  %v1115_v26 = vmax.f32 %v1099_v55, 0.0  ;;  %v1116_v33 = vmax.f32 %v1100_v10, 0.0  ;;  %v1117_v34 = vmax.f32 %v1101_v2, 0.0 }
 0x2ce   :  { %v1325_v13 = vpack.c.bf16 %v1103_v50, %v1102_v12  ;;  %v1330_v37 = vpack.c.bf16 %v1105_v59, %v1104_v15  ;;  %v1335_v39 = vpack.c.bf16 %v1107_v17, %v1106_v16  ;;  %v1340_v27 = vpack.c.bf16 %v1109_v19, %v1108_v18 }
 0x2cf   :  { %v1345_v30 = vpack.c.bf16 %v1111_v21, %v1110_v20  ;;  %v1350_v45 = vpack.c.bf16 %v1113_v23, %v1112_v22  ;;  %v1355_v41 = vpack.c.bf16 %v1115_v26, %v1114_v25  ;;  %v1360_v42 = vpack.c.bf16 %v1117_v34, %v1116_v33 }
 0x2d0   :  { %1326 = vst [vmem:[%s2146_s5] sm:$0xff] %v1325_v13   ;;  %1362 = vst [vmem:[%s2146_s5 + $0x8] sm:$0xff] %v1330_v37  }
 0x2d1   :  { %1363 = vst [vmem:[%s2146_s5 + $0x10] sm:$0xff] %v1335_v39   ;;  %1364 = vst [vmem:[%s2146_s5 + $0x18] sm:$0xff] %v1340_v27  }
 0x2d2   :  { %1365 = vst [vmem:[%s2146_s5 + $0x20] sm:$0xff] %v1345_v30   ;;  %1366 = vst [vmem:[%s2146_s5 + $0x28] sm:$0xff] %v1350_v45  }
 0x2d3   :  { %1367 = vst [vmem:[%s2146_s5 + $0x30] sm:$0xff] %v1355_v41   ;;  %1368 = vst [vmem:[%s2146_s5 + $0x38] sm:$0xff] %v1360_v42  }
 0x2d4   :  { %1202 = vsyncpa [#allocation3], 1 }
 0x2d5   :  { %1203 = vsyncpa [#allocation5], 1 }
 0x2d6   :  { %1204 = vsyncpa [#allocation8], 1 }

// kernel: generator_forward.8
= control target key start
LH: loop header
LB: loop body
LE: loop exit
PB: predicated region body
PF: predicated region fallthrough
CT: control target
= control target key end

     0   :  { %v2950_v0 = vmov 0   ;;  %vm780_vm0 = vcmask 261120   ;;  %vm1455_vm1 = vcmask 523264   ;;  %s2952_s15 = smov 112   ;;  %s2953_s16 = smov 96   ;;  %vm1839_vm2 = vcmask 130048   ;;  %s5089_s1 = inlined_call_operand.vmem [shape: bf16[288,64], index: 1, kind: input, shape index: {}]   ;;  %s5090_s0 = inlined_call_operand.vmem [shape: bf16[512,288], index: 0, kind: input, shape index: {}]   ;;  %s5091_s2 = inlined_call_operand.vmem [shape: f32[1,64], index: 2, kind: input, shape index: {}]   ;;  %s5092_s3 = inlined_call_operand.vmem [shape: f32[1,16], index: 3, kind: input, shape index: {}]   ;;  %s5093_s4 = inlined_call_operand.vmem [shape: f32[1,16], index: 4, kind: input, shape index: {}]   ;;  %s5094_s5 = inlined_call_operand.vmem [shape: bf16[512,64], index: 5, kind: output, shape index: {}]  }
   0x1   :  { %877 = vmatprep.subr.bf16.mxu0 %v2950_v0  ;;  %2763 = vmatprep.subr.bf16.mxu1 %v2950_v0  ;;  %v2802_v1 = vld [vmem:[%s5089_s1] sm:$0xff]   ;;  %v2803_v2 = vld [vmem:[%s5089_s1 + $0x8] sm:$0xff]   ;;  %v2804_v3 = vld [vmem:[%s5089_s1 + $0x10] sm:$0xff]   ;;  %s2954_s21 = smov 32   ;;  %s2955_s22 = smov 16   ;;  %vm1842_vm3 = vcmask 392192  }
   0x2   :  { %878 = vmatpush1.bf16.msra.mxu0 %v2802_v1  ;;  %2779 = vmatpush1.bf16.msra.mxu1 %v2802_v1  ;;  %v2805_v4 = vld [vmem:[%s5089_s1 + $0x18] sm:$0xff]   ;;  %v2806_v5 = vld [vmem:[%s5089_s1 + $0x20] sm:$0xff]   ;;  %v2807_v7 = vld [vmem:[%s5089_s1 + $0x28] sm:$0xff]   ;;  %vm2317_vm4 = vcmask 519168  }
   0x3   :  { %879 = vmatprep.subr.bf16.mxu0 %v2950_v0  ;;  %2764 = vmatprep.subr.bf16.mxu1 %v2950_v0  ;;  %v2820_v6 = vld [vmem:[%s5090_s0 + $0x4] ss:$12 sps:$4 sm:$0xff]   ;;  %v2809_v10 = vld [vmem:[%s5089_s1 + $0x38] sm:$0xff]   ;;  %v2811_v12 = vld [vmem:[%s5089_s1 + $0x48] sm:$0xff]  }
   0x4   :  { %v2823_v8 = vld [vmem:[%s5090_s0 + $0x244] ss:$12 sps:$4 sm:$0xff]   ;;  %909 = vmatprep.mubr.bf16.mxu0 %v2820_v6  ;;  %v2813_v14 = vld [vmem:[%s5089_s1 + $0x58] sm:$0xff]   ;;  %v2815_v16 = vld [vmem:[%s5089_s1 + $0x68] sm:$0xff]  }
   0x5   :  { %1101 = vmatprep.mubr.bf16.mxu1 %v2823_v8  ;;  %v2808_v9 = vld [vmem:[%s5089_s1 + $0x30] sm:$0xff]   ;;  %v2810_v11 = vld [vmem:[%s5089_s1 + $0x40] sm:$0xff]   ;;  %v2817_v18 = vld [vmem:[%s5089_s1 + $0x78] sm:$0xff]  }
   0x6   :  { %880 = vmatpush1.bf16.msra.mxu0 %v2803_v2  ;;  %2780 = vmatpush1.bf16.msra.mxu1 %v2803_v2  ;;  %v2812_v13 = vld [vmem:[%s5089_s1 + $0x50] sm:$0xff]   ;;  %v2814_v15 = vld [vmem:[%s5089_s1 + $0x60] sm:$0xff]   ;;  %v2824_v22 = vld [vmem:[%s5090_s0 + $0x1c] ss:$12 sps:$4 sm:$0xff]  }
   0x7   :  { %881 = vmatprep.subr.bf16.mxu0 %v2950_v0  ;;  %2765 = vmatprep.subr.bf16.mxu1 %v2950_v0  ;;  %v2816_v17 = vld [vmem:[%s5089_s1 + $0x70] sm:$0xff]   ;;  %v2842_v19 = vld [vmem:[%s5089_s1 + $0x80] sm:$0xff]   ;;  %v2826_v23 = vld [vmem:[%s5090_s0 + $0x25c] ss:$12 sps:$4 sm:$0xff]  }
   0x8   :  { %v2818_v20 = vld [vmem:[%s5090_s0] ss:$12 sps:$4 sm:$0xff]   ;;  %v2828_v25 = vld [vmem:[%s5090_s0 + $0x18] ss:$12 sps:$4 sm:$0xff]   ;;  %v2834_v29 = vld [vmem:[%s5090_s0 + $0x30] ss:$12 sps:$4 sm:$0xff]  }
   0x9   :  { %v2821_v21 = vld [vmem:[%s5090_s0 + $0x240] ss:$12 sps:$4 sm:$0xff]   ;;  %v2829_v26 = vld [vmem:[%s5090_s0 + $0x258] ss:$12 sps:$4 sm:$0xff]   ;;  %v2835_v30 = vld [vmem:[%s5090_s0 + $0x270] ss:$12 sps:$4 sm:$0xff]  }
   0xa   :  { %882 = vmatpush1.bf16.msra.mxu0 %v2804_v3  ;;  %2781 = vmatpush1.bf16.msra.mxu1 %v2804_v3  ;;  %v2867_v24 = vld [vmem:[%s5089_s1 + $0x88] sm:$0xff]   ;;  %v2830_v27 = vld [vmem:[%s5090_s0 + $0x34] ss:$12 sps:$4 sm:$0xff]   ;;  %v2843_v35 = vld [vmem:[%s5090_s0 + $0x64] ss:$12 sps:$4 sm:$0xff]   ;;  %s2956_s1 = smov 48  }
   0xb   :  { %883 = vmatprep.subr.bf16.mxu0 %v2950_v0  ;;  %2766 = vmatprep.subr.bf16.mxu1 %v2950_v0  ;;  %v2832_v28 = vld [vmem:[%s5090_s0 + $0x274] ss:$12 sps:$4 sm:$0xff]   ;;  %v2836_v31 = vld [vmem:[%s5090_s0 + $0x4c] ss:$12 sps:$4 sm:$0xff]   ;;  %v2845_v36 = vld [vmem:[%s5090_s0 + $0x2a4] ss:$12 sps:$4 sm:$0xff]  }
   0xc   :  { %v2838_v32 = vld [vmem:[%s5090_s0 + $0x28c] ss:$12 sps:$4 sm:$0xff]   ;;  %v2840_v33 = vld [vmem:[%s5090_s0 + $0x48] ss:$12 sps:$4 sm:$0xff]   ;;  %v2859_v45 = vld [vmem:[%s5090_s0 + $0x90] ss:$12 sps:$4 sm:$0xff]  }
   0xd   :  { %v2841_v34 = vld [vmem:[%s5090_s0 + $0x288] ss:$12 sps:$4 sm:$0xff]   ;;  %v2847_v37 = vld [vmem:[%s5090_s0 + $0x60] ss:$12 sps:$4 sm:$0xff]   ;;  %v2853_v41 = vld [vmem:[%s5090_s0 + $0x78] ss:$12 sps:$4 sm:$0xff]  }
   0xe   :  { %884 = vmatpush1.bf16.msra.mxu0 %v2805_v4  ;;  %2782 = vmatpush1.bf16.msra.mxu1 %v2805_v4  ;;  %v2848_v38 = vld [vmem:[%s5090_s0 + $0x2a0] ss:$12 sps:$4 sm:$0xff]   ;;  %v2849_v39 = vld [vmem:[%s5090_s0 + $0x7c] ss:$12 sps:$4 sm:$0xff]   ;;  %v2854_v42 = vld [vmem:[%s5090_s0 + $0x2b8] ss:$12 sps:$4 sm:$0xff]  }
   0xf   :  { %885 = vmatprep.subr.bf16.mxu0 %v2950_v0  ;;  %2767 = vmatprep.subr.bf16.mxu1 %v2950_v0  ;;  %v2851_v40 = vld [vmem:[%s5090_s0 + $0x2bc] ss:$12 sps:$4 sm:$0xff]   ;;  %v2855_v43 = vld [vmem:[%s5090_s0 + $0x94] ss:$12 sps:$4 sm:$0xff]   ;;  %v2861_v47 = vld [vmem:[%s5090_s0 + $0xac] ss:$12 sps:$4 sm:$0xff]  }
  0x10   :  { %v2857_v44 = vld [vmem:[%s5090_s0 + $0x2d4] ss:$12 sps:$4 sm:$0xff]   ;;  %v2860_v46 = vld [vmem:[%s5090_s0 + $0x2d0] ss:$12 sps:$4 sm:$0xff]   ;;  %v2863_v48 = vld [vmem:[%s5090_s0 + $0x2ec] ss:$12 sps:$4 sm:$0xff]  }
  0x11   :  { %v2865_v49 = vld [vmem:[%s5090_s0 + $0xa8] ss:$12 sps:$4 sm:$0xff]   ;;  %v2868_v51 = vld [vmem:[%s5090_s0 + $0xc4] ss:$12 sps:$4 sm:$0xff]   ;;  %v2871_v53 = vld [vmem:[%s5090_s0 + $0xc0] ss:$12 sps:$4 sm:$0xff]  }
  0x12   :  { %886 = vmatpush1.bf16.msra.mxu0 %v2806_v5  ;;  %2783 = vmatpush1.bf16.msra.mxu1 %v2806_v5  ;;  %v2866_v50 = vld [vmem:[%s5090_s0 + $0x2e8] ss:$12 sps:$4 sm:$0xff]   ;;  %v2872_v54 = vld [vmem:[%s5090_s0 + $0x20] ss:$12 sps:$4 sm:$0xff]   ;;  %v2875_v56 = vld [vmem:[%s5090_s0 + $0x38] ss:$12 sps:$4 sm:$0xff]  }
  0x13   :  { %887 = vmatprep.subr.bf16.mxu0 %v2950_v0  ;;  %2768 = vmatprep.subr.bf16.mxu1 %v2950_v0  ;;  %v2870_v52 = vld [vmem:[%s5090_s0 + $0x8] ss:$12 sps:$4 sm:$0xff]   ;;  %v2876_v57 = vld [vmem:[%s5090_s0 + $0xd8] ss:$12 sps:$4 sm:$0xff]   ;;  %v2877_v58 = vld [vmem:[%s5090_s0 + $0x50] ss:$12 sps:$4 sm:$0xff]  }
  0x14   :  { %v2873_v55 = vld [vmem:[%s5090_s0 + $0xdc] ss:$12 sps:$4 sm:$0xff]   ;;  %v2878_v59 = vld [vmem:[%s5090_s0 + $0xf4] ss:$12 sps:$4 sm:$0xff]   ;;  %v2883_v63 = vld [vmem:[%s5090_s0 + $0x10c] ss:$12 sps:$4 sm:$0xff]  }
  0x15   :  { %v2880_v60 = vld [vmem:[%s5090_s0 + $0x68] ss:$12 sps:$4 sm:$0xff]   ;;  %v2881_v61 = vld [vmem:[%s5090_s0 + $0xf0] ss:$12 sps:$4 sm:$0xff]   ;;  %v2882_v62 = vld [vmem:[%s5090_s0 + $0x80] ss:$12 sps:$4 sm:$0xff]  }
  0x16   :  { %888 = vmatpush1.bf16.msra.mxu0 %v2807_v7  ;;  %2784 = vmatpush1.bf16.msra.mxu1 %v2807_v7  ;;  %v2886_v1 = vld [vmem:[%s5090_s0 + $0x108] ss:$12 sps:$4 sm:$0xff]   ;;  %v2887_v2 = vld [vmem:[%s5090_s0 + $0xb0] ss:$12 sps:$4 sm:$0xff]   ;;  %v2891_v5 = vld [vmem:[%s5090_s0 + $0x120] ss:$12 sps:$4 sm:$0xff]  }
  0x17   :  { %889 = vmatprep.subr.bf16.mxu0 %v2950_v0  ;;  %2769 = vmatprep.subr.bf16.mxu1 %v2950_v0  ;;  %v2888_v3 = vld [vmem:[%s5090_s0 + $0x124] ss:$12 sps:$4 sm:$0xff]   ;;  %v2890_v4 = vld [vmem:[%s5090_s0 + $0xc8] ss:$12 sps:$4 sm:$0xff]   ;;  %v2892_v6 = vld [vmem:[%s5090_s0 + $0xe0] ss:$12 sps:$4 sm:$0xff]  }
  0x18   :  { %v2893_v7 = vld [vmem:[%s5090_s0 + $0x13c] ss:$12 sps:$4 sm:$0xff]   ;;  %v2895_v8 = vld [vmem:[%s5090_s0 + $0xf8] ss:$12 sps:$4 sm:$0xff]  }
  0x1a   :  { %890 = vmatpush1.bf16.msra.mxu0 %v2808_v9  ;;  %2785 = vmatpush1.bf16.msra.mxu1 %v2808_v9  ;;  %v2896_v9 = vld [vmem:[%s5090_s0 + $0x138] ss:$12 sps:$4 sm:$0xff]  }
  0x1b   :  { %891 = vmatprep.subr.bf16.mxu0 %v2950_v0  ;;  %2770 = vmatprep.subr.bf16.mxu1 %v2950_v0 }
  0x1e   :  { %892 = vmatpush1.bf16.msra.mxu0 %v2809_v10  ;;  %2786 = vmatpush1.bf16.msra.mxu1 %v2809_v10  ;;  %v2897_v10 = vld [vmem:[%s5090_s0 + $0x110] ss:$12 sps:$4 sm:$0xff]  }
  0x1f   :  { %893 = vmatprep.subr.bf16.mxu0 %v2950_v0  ;;  %2771 = vmatprep.subr.bf16.mxu1 %v2950_v0 }
  0x22   :  { %894 = vmatpush1.bf16.msra.mxu0 %v2810_v11  ;;  %2787 = vmatpush1.bf16.msra.mxu1 %v2810_v11  ;;  %v2898_v11 = vld [vmem:[%s5090_s0 + $0x154] ss:$12 sps:$4 sm:$0xff]  }
  0x23   :  { %895 = vmatprep.subr.bf16.mxu0 %v2950_v0  ;;  %2772 = vmatprep.subr.bf16.mxu1 %v2950_v0 }
  0x26   :  { %896 = vmatpush1.bf16.msra.mxu0 %v2811_v12  ;;  %2788 = vmatpush1.bf16.msra.mxu1 %v2811_v12  ;;  %v2900_v12 = vld [vmem:[%s5090_s0 + $0x128] ss:$12 sps:$4 sm:$0xff]  }
  0x27   :  { %897 = vmatprep.subr.bf16.mxu0 %v2950_v0  ;;  %2773 = vmatprep.subr.bf16.mxu1 %v2950_v0 }
  0x2a   :  { %898 = vmatpush1.bf16.msra.mxu0 %v2812_v13  ;;  %2789 = vmatpush1.bf16.msra.mxu1 %v2812_v13  ;;  %v2901_v13 = vld [vmem:[%s5090_s0 + $0x150] ss:$12 sps:$4 sm:$0xff]  }
  0x2b   :  { %899 = vmatprep.subr.bf16.mxu0 %v2950_v0  ;;  %2774 = vmatprep.subr.bf16.mxu1 %v2950_v0 }
  0x2e   :  { %900 = vmatpush1.bf16.msra.mxu0 %v2813_v14  ;;  %2790 = vmatpush1.bf16.msra.mxu1 %v2813_v14  ;;  %v2902_v14 = vld [vmem:[%s5090_s0 + $0x140] ss:$12 sps:$4 sm:$0xff]  }
  0x2f   :  { %901 = vmatprep.subr.bf16.mxu0 %v2950_v0  ;;  %2775 = vmatprep.subr.bf16.mxu1 %v2950_v0 }
  0x32   :  { %902 = vmatpush1.bf16.msra.mxu0 %v2814_v15  ;;  %2791 = vmatpush1.bf16.msra.mxu1 %v2814_v15  ;;  %v2903_v15 = vld [vmem:[%s5090_s0 + $0x16c] ss:$12 sps:$4 sm:$0xff]  }
  0x33   :  { %903 = vmatprep.subr.bf16.mxu0 %v2950_v0  ;;  %2776 = vmatprep.subr.bf16.mxu1 %v2950_v0 }
  0x36   :  { %904 = vmatpush1.bf16.msra.mxu0 %v2815_v16  ;;  %2792 = vmatpush1.bf16.msra.mxu1 %v2815_v16  ;;  %v2905_v16 = vld [vmem:[%s5090_s0 + $0x158] ss:$12 sps:$4 sm:$0xff]  }
  0x37   :  { %905 = vmatprep.subr.bf16.mxu0 %v2950_v0  ;;  %2777 = vmatprep.subr.bf16.mxu1 %v2950_v0 }
  0x3a   :  { %906 = vmatpush1.bf16.msra.mxu0 %v2816_v17  ;;  %2793 = vmatpush1.bf16.msra.mxu1 %v2816_v17  ;;  %v2906_v17 = vld [vmem:[%s5090_s0 + $0x168] ss:$12 sps:$4 sm:$0xff]  }
  0x3b   :  { %907 = vmatprep.subr.bf16.mxu0 %v2950_v0  ;;  %2778 = vmatprep.subr.bf16.mxu1 %v2950_v0  ;;  %v2885_v0 = vld [vmem:[%s5090_s0 + $0x98] ss:$12 sps:$4 sm:$0xff]  }
  0x3e   :  { %908 = vmatpush1.bf16.msra.mxu0 %v2817_v18  ;;  %2794 = vmatpush1.bf16.msra.mxu1 %v2817_v18  ;;  %v2907_v18 = vld [vmem:[%s5090_s0 + $0x170] ss:$12 sps:$4 sm:$0xff]  }
  0x3f   :  { %2695 = vmatprep.subr.bf16.mxu1 %v2842_v19 }
  0x41   :  { %910 = vmatmul.mubr.bf16.vlgmr.msra.gmra.mrb[0].mxu0 %v2818_v20  ;;  %1102 = vmatmul.mubr.bf16.vlgmr.msra.gmra.mrb[0].mxu1 %v2821_v21  ;;  %v2910_v20 = vld [vmem:[%s5090_s0 + $0x188] ss:$12 sps:$4 sm:$0xff]   ;;  %v2911_v21 = vld [vmem:[%s5090_s0 + $0x180] ss:$12 sps:$4 sm:$0xff]  }
  0x42   :  { %917 = vmatprep.mubr.bf16.mxu0 %v2824_v22  ;;  %1109 = vmatprep.mubr.bf16.mxu1 %v2826_v23  ;;  %v2912_v22 = vld [vmem:[%s5090_s0 + $0x1a0] ss:$12 sps:$4 sm:$0xff]   ;;  %v2913_v23 = vld [vmem:[%s5090_s0 + $0x19c] ss:$12 sps:$4 sm:$0xff]  }
  0x43   :  { %2696 = vmatpush3.bf16.msra.mxu1 %v2842_v19  ;;  %v2908_v19 = vld [vmem:[%s5090_s0 + $0x184] ss:$12 sps:$4 sm:$0xff]  }
  0x44   :  { %2697 = vmatprep.subr.bf16.mxu1 %v2867_v24 }
  0x47   :  { %2698 = vmatpush3.bf16.msra.mxu1 %v2867_v24  ;;  %v2915_v24 = vld [vmem:[%s5090_s0 + $0x1b8] ss:$12 sps:$4 sm:$0xff]  }
  0x49   :  { %918 = vmatmul.mubr.bf16.gmra.mrb[4].mxu0 %v2828_v25  ;;  %1110 = vmatmul.mubr.bf16.gmra.mrb[4].mxu1 %v2829_v26  ;;  %v2916_v25 = vld [vmem:[%s5090_s0 + $0x198] ss:$12 sps:$4 sm:$0xff]   ;;  %v2917_v26 = vld [vmem:[%s5090_s0 + $0x1d0] ss:$12 sps:$4 sm:$0xff]  }
  0x4a   :  { %925 = vmatprep.mubr.bf16.mxu0 %v2830_v27  ;;  %1117 = vmatprep.mubr.bf16.mxu1 %v2832_v28  ;;  %v2918_v27 = vld [vmem:[%s5090_s0 + $0x1b4] ss:$12 sps:$4 sm:$0xff]  }
  0x4b   :  { %v2920_v28 = vld [vmem:[%s5090_s0 + $0x1e8] ss:$12 sps:$4 sm:$0xff]  }
  0x51   :  { %926 = vmatmul.mubr.bf16.gmra.mrb[8].mxu0 %v2834_v29  ;;  %1118 = vmatmul.mubr.bf16.gmra.mrb[8].mxu1 %v2835_v30  ;;  %v2921_v29 = vld [vmem:[%s5090_s0 + $0x1b0] ss:$12 sps:$4 sm:$0xff]   ;;  %v2922_v30 = vld [vmem:[%s5090_s0 + $0x200] ss:$12 sps:$4 sm:$0xff]  }
  0x52   :  { %933 = vmatprep.mubr.bf16.mxu0 %v2836_v31  ;;  %1125 = vmatprep.mubr.bf16.mxu1 %v2838_v32  ;;  %v2923_v31 = vld [vmem:[%s5090_s0 + $0x1cc] ss:$12 sps:$4 sm:$0xff]  }
  0x53   :  { %v2925_v32 = vld [vmem:[%s5090_s0 + $0x218] ss:$12 sps:$4 sm:$0xff]  }
  0x59   :  { %934 = vmatmul.mubr.bf16.gmra.mrb[12].mxu0 %v2840_v33  ;;  %1126 = vmatmul.mubr.bf16.gmra.mrb[12].mxu1 %v2841_v34  ;;  %v2926_v33 = vld [vmem:[%s5090_s0 + $0x1c8] ss:$12 sps:$4 sm:$0xff]   ;;  %v2927_v34 = vld [vmem:[%s5090_s0 + $0x230] ss:$12 sps:$4 sm:$0xff]  }
  0x5a   :  { %941 = vmatprep.mubr.bf16.mxu0 %v2843_v35  ;;  %1133 = vmatprep.mubr.bf16.mxu1 %v2845_v36  ;;  %v2928_v35 = vld [vmem:[%s5090_s0 + $0x1e4] ss:$12 sps:$4 sm:$0xff]   ;;  %v2930_v36 = vld [vmem:[%s5090_s0 + $0x248] ss:$12 sps:$4 sm:$0xff]  }
  0x61   :  { %942 = vmatmul.mubr.bf16.gmra.mrb[16].mxu0 %v2847_v37  ;;  %1134 = vmatmul.mubr.bf16.gmra.mrb[16].mxu1 %v2848_v38  ;;  %v2931_v37 = vld [vmem:[%s5090_s0 + $0x1e0] ss:$12 sps:$4 sm:$0xff]  }
  0x62   :  { %949 = vmatprep.mubr.bf16.mxu0 %v2849_v39  ;;  %1141 = vmatprep.mubr.bf16.mxu1 %v2851_v40  ;;  %v2932_v38 = vld [vmem:[%s5090_s0 + $0x260] ss:$12 sps:$4 sm:$0xff]   ;;  %v2933_v39 = vld [vmem:[%s5090_s0 + $0x1fc] ss:$12 sps:$4 sm:$0xff]   ;;  %v2935_v40 = vld [vmem:[%s5090_s0 + $0x278] ss:$12 sps:$4 sm:$0xff]  }
  0x69   :  { %950 = vmatmul.mubr.bf16.gmra.mrb[20].mxu0 %v2853_v41  ;;  %1142 = vmatmul.mubr.bf16.gmra.mrb[20].mxu1 %v2854_v42  ;;  %v2936_v41 = vld [vmem:[%s5090_s0 + $0x1f8] ss:$12 sps:$4 sm:$0xff]   ;;  %v2937_v42 = vld [vmem:[%s5090_s0 + $0x290] ss:$12 sps:$4 sm:$0xff]  }
  0x6a   :  { %957 = vmatprep.mubr.bf16.mxu0 %v2855_v43  ;;  %1149 = vmatprep.mubr.bf16.mxu1 %v2857_v44  ;;  %v2938_v43 = vld [vmem:[%s5090_s0 + $0x214] ss:$12 sps:$4 sm:$0xff]  }
  0x6b   :  { %v2940_v44 = vld [vmem:[%s5090_s0 + $0x2a8] ss:$12 sps:$4 sm:$0xff]  }
  0x71   :  { %958 = vmatmul.mubr.bf16.gmra.mrb[24].mxu0 %v2859_v45  ;;  %1150 = vmatmul.mubr.bf16.gmra.mrb[24].mxu1 %v2860_v46  ;;  %v2941_v45 = vld [vmem:[%s5090_s0 + $0x210] ss:$12 sps:$4 sm:$0xff]   ;;  %v2942_v46 = vld [vmem:[%s5090_s0 + $0x2c0] ss:$12 sps:$4 sm:$0xff]  }
  0x72   :  { %965 = vmatprep.mubr.bf16.mxu0 %v2861_v47  ;;  %1157 = vmatprep.mubr.bf16.mxu1 %v2863_v48  ;;  %v2943_v47 = vld [vmem:[%s5090_s0 + $0x22c] ss:$12 sps:$4 sm:$0xff]  }
  0x73   :  { %v2945_v48 = vld [vmem:[%s5090_s0 + $0x2d8] ss:$12 sps:$4 sm:$0xff]  }
  0x79   :  { %966 = vmatmul.mubr.bf16.gmra.mrb[28].mxu0 %v2865_v49  ;;  %1158 = vmatmul.mubr.bf16.gmra.mrb[28].mxu1 %v2866_v50  ;;  %v2946_v49 = vld [vmem:[%s5090_s0 + $0x228] ss:$12 sps:$4 sm:$0xff]   ;;  %v2947_v50 = vld [vmem:[%s5090_s0 + $0x2f0] ss:$12 sps:$4 sm:$0xff]  }
  0x7a   :  { %973 = vmatprep.mubr.bf16.mxu0 %v2868_v51  ;;  %2699 = vmatprep.mubr.msk.bf16.mxu1 %vm780_vm0, %v2870_v52 }
  0x81   :  { %974 = vmatmul.mubr.bf16.gmra.mrb[32].mxu0 %v2871_v53  ;;  %2700 = vmatmul.mubr.msk.bf16.vlgmr.msra.gmra.mrb[32].mxu1 %vm780_vm0, %v2872_v54 }
  0x82   :  { %981 = vmatprep.mubr.bf16.mxu0 %v2873_v55  ;;  %2703 = vmatprep.mubr.msk.bf16.mxu1 %vm780_vm0, %v2875_v56 }
  0x89   :  { %982 = vmatmul.mubr.bf16.gmra.mrb[36].mxu0 %v2876_v57  ;;  %2704 = vmatmul.mubr.msk.bf16.gmra.mrb[36].mxu1 %vm780_vm0, %v2877_v58 }
  0x8a   :  { %989 = vmatprep.mubr.bf16.mxu0 %v2878_v59  ;;  %2707 = vmatprep.mubr.msk.bf16.mxu1 %vm780_vm0, %v2880_v60 }
  0x91   :  { %990 = vmatmul.mubr.bf16.gmra.mrb[40].mxu0 %v2881_v61  ;;  %2708 = vmatmul.mubr.msk.bf16.gmra.mrb[40].mxu1 %vm780_vm0, %v2882_v62 }
  0x92   :  { %997 = vmatprep.mubr.bf16.mxu0 %v2883_v63  ;;  %2711 = vmatprep.mubr.msk.bf16.mxu1 %vm780_vm0, %v2885_v0 }
  0x99   :  { %998 = vmatmul.mubr.bf16.gmra.mrb[44].mxu0 %v2886_v1  ;;  %2712 = vmatmul.mubr.msk.bf16.gmra.mrb[44].mxu1 %vm780_vm0, %v2887_v2 }
  0x9a   :  { %1005 = vmatprep.mubr.bf16.mxu0 %v2888_v3  ;;  %2715 = vmatprep.mubr.msk.bf16.mxu1 %vm780_vm0, %v2890_v4 }
  0xa1   :  { %1006 = vmatmul.mubr.bf16.gmra.mrb[48].mxu0 %v2891_v5  ;;  %2716 = vmatmul.mubr.msk.bf16.gmra.mrb[48].mxu1 %vm780_vm0, %v2892_v6 }
  0xa2   :  { %1013 = vmatprep.mubr.bf16.mxu0 %v2893_v7  ;;  %2719 = vmatprep.mubr.msk.bf16.mxu1 %vm780_vm0, %v2895_v8 }
  0xa9   :  { %1014 = vmatmul.mubr.bf16.gmra.mrb[52].mxu0 %v2896_v9  ;;  %2720 = vmatmul.mubr.msk.bf16.gmra.mrb[52].mxu1 %vm780_vm0, %v2897_v10 }
  0xaa   :  { %1021 = vmatprep.mubr.bf16.mxu0 %v2898_v11  ;;  %2723 = vmatprep.mubr.msk.bf16.mxu1 %vm780_vm0, %v2900_v12 }
  0xb1   :  { %1022 = vmatmul.mubr.bf16.gmra.mrb[56].mxu0 %v2901_v13  ;;  %2724 = vmatmul.mubr.msk.bf16.gmra.mrb[56].mxu1 %vm780_vm0, %v2902_v14 }
  0xb2   :  { %1029 = vmatprep.mubr.bf16.mxu0 %v2903_v15  ;;  %2727 = vmatprep.mubr.msk.bf16.mxu1 %vm780_vm0, %v2905_v16 }
  0xb9   :  { %1030 = vmatmul.mubr.bf16.gmra.mrb[60].mxu0 %v2906_v17  ;;  %2728 = vmatmul.mubr.msk.bf16.gmra.mrb[60].mxu1 %vm780_vm0, %v2907_v18 }
  0xba   :  { %1037 = vmatprep.mubr.bf16.mxu0 %v2908_v19  ;;  %2731 = vmatprep.mubr.msk.bf16.mxu1 %vm780_vm0, %v2910_v20 }
  0xc1   :  { %1038 = vmatmul.mubr.bf16.gmra.mrb[64].mxu0 %v2911_v21  ;;  %2732 = vmatmul.mubr.msk.bf16.gmra.mrb[64].mxu1 %vm780_vm0, %v2912_v22 }
  0xc2   :  { %1045 = vmatprep.mubr.bf16.mxu0 %v2913_v23  ;;  %2735 = vmatprep.mubr.msk.bf16.mxu1 %vm780_vm0, %v2915_v24 }
  0xc9   :  { %1046 = vmatmul.mubr.bf16.gmra.mrb[68].mxu0 %v2916_v25  ;;  %2736 = vmatmul.mubr.msk.bf16.gmra.mrb[68].mxu1 %vm780_vm0, %v2917_v26 }
  0xca   :  { %1053 = vmatprep.mubr.bf16.mxu0 %v2918_v27  ;;  %2739 = vmatprep.mubr.msk.bf16.mxu1 %vm780_vm0, %v2920_v28 }
  0xd1   :  { %1054 = vmatmul.mubr.bf16.gmra.mrb[72].mxu0 %v2921_v29  ;;  %2740 = vmatmul.mubr.msk.bf16.gmra.mrb[72].mxu1 %vm780_vm0, %v2922_v30 }
  0xd2   :  { %1061 = vmatprep.mubr.bf16.mxu0 %v2923_v31  ;;  %2743 = vmatprep.mubr.msk.bf16.mxu1 %vm780_vm0, %v2925_v32 }
  0xd9   :  { %1062 = vmatmul.mubr.bf16.gmra.mrb[76].mxu0 %v2926_v33  ;;  %2744 = vmatmul.mubr.msk.bf16.gmra.mrb[76].mxu1 %vm780_vm0, %v2927_v34 }
  0xda   :  { %1069 = vmatprep.mubr.bf16.mxu0 %v2928_v35  ;;  %2747 = vmatprep.mubr.msk.bf16.mxu1 %vm780_vm0, %v2930_v36 }
  0xe1   :  { %1070 = vmatmul.mubr.bf16.gmra.mrb[80].mxu0 %v2931_v37  ;;  %2748 = vmatmul.mubr.msk.bf16.gmra.mrb[80].mxu1 %vm780_vm0, %v2932_v38 }
  0xe2   :  { %1077 = vmatprep.mubr.bf16.mxu0 %v2933_v39  ;;  %2751 = vmatprep.mubr.msk.bf16.mxu1 %vm780_vm0, %v2935_v40 }
  0xe9   :  { %1078 = vmatmul.mubr.bf16.gmra.mrb[84].mxu0 %v2936_v41  ;;  %2752 = vmatmul.mubr.msk.bf16.gmra.mrb[84].mxu1 %vm780_vm0, %v2937_v42 }
  0xea   :  { %1085 = vmatprep.mubr.bf16.mxu0 %v2938_v43  ;;  %2755 = vmatprep.mubr.msk.bf16.mxu1 %vm780_vm0, %v2940_v44 }
  0xf1   :  { %1086 = vmatmul.mubr.bf16.gmra.mrb[88].mxu0 %v2941_v45  ;;  %2756 = vmatmul.mubr.msk.bf16.gmra.mrb[88].mxu1 %vm780_vm0, %v2942_v46 }
  0xf2   :  { %1093 = vmatprep.mubr.bf16.mxu0 %v2943_v47  ;;  %2759 = vmatprep.mubr.msk.bf16.mxu1 %vm780_vm0, %v2945_v48 }
  0xf9   :  { %1094 = vmatmul.mubr.bf16.gmra.mrb[92].mxu0 %v2946_v49  ;;  %2760 = vmatmul.mubr.msk.bf16.gmra.mrb[92].mxu1 %vm780_vm0, %v2947_v50 }
 0x114   :  { %v3393_v51 = vpop.f32.mrb[0].mxu0  ;;  %v3395_v52 = vpop.f32.mrb[0].mxu1 }
 0x115   :  { %v913_v53 = vpop.f32.mrb[1].mxu0  ;;  %v1105_v54 = vpop.f32.mrb[1].mxu1 }
 0x116   :  { %v3397_v55 = vpop.f32.mrb[2].mxu0  ;;  %v3399_v56 = vpop.f32.mrb[2].mxu1  ;;  %v3456_v53 = vld [vmem:[%s5091_s2] ss:$0 sm:$0xff]  ;;  %s2951_s2 = smov 80  }
 0x117   :  { %v916_v57 = vpop.f32.mrb[3].mxu0  ;;  %v1108_v58 = vpop.f32.mrb[3].mxu1 }
 0x118   :  { %v912_v57 = vadd.f32 %v3456_v53, %v3393_v51 }
 0x11c   :  { %v919_v59 = vpop.f32.mrb[4].mxu0  ;;  %v3401_v60 = vpop.f32.mrb[4].mxu1 }
 0x11d   :  { %v921_v61 = vpop.f32.mrb[5].mxu0  ;;  %v1113_v62 = vpop.f32.mrb[5].mxu1  ;;  %v920_v54 = vadd.f32 %v3456_v53, %v919_v59 }
 0x11e   :  { %v922_v63 = vpop.f32.mrb[6].mxu0  ;;  %v3403_v0 = vpop.f32.mrb[6].mxu1 }
 0x11f   :  { %v924_v1 = vpop.f32.mrb[7].mxu0  ;;  %v1116_v2 = vpop.f32.mrb[7].mxu1  ;;  %v923_v62 = vadd.f32 %v3456_v53, %v922_v63 }
 0x124   :  { %v3405_v3 = vpop.f32.mrb[8].mxu0  ;;  %v3407_v4 = vpop.f32.mrb[8].mxu1 }
 0x125   :  { %v929_v5 = vpop.f32.mrb[9].mxu0  ;;  %v1121_v6 = vpop.f32.mrb[9].mxu1 }
 0x126   :  { %v3409_v7 = vpop.f32.mrb[10].mxu0  ;;  %v3411_v8 = vpop.f32.mrb[10].mxu1  ;;  %v915_v6 = vadd.f32 %v3456_v53, %v3397_v55 }
 0x127   :  { %v932_v9 = vpop.f32.mrb[11].mxu0  ;;  %v1124_v10 = vpop.f32.mrb[11].mxu1 }
 0x12c   :  { %v3413_v11 = vpop.f32.mrb[12].mxu0  ;;  %v3415_v12 = vpop.f32.mrb[12].mxu1 }
 0x12d   :  { %v937_v13 = vpop.f32.mrb[13].mxu0  ;;  %v1129_v14 = vpop.f32.mrb[13].mxu1 }
 0x12e   :  { %v3417_v15 = vpop.f32.mrb[14].mxu0  ;;  %v3419_v16 = vpop.f32.mrb[14].mxu1 }
 0x12f   :  { %v940_v17 = vpop.f32.mrb[15].mxu0  ;;  %v1132_v18 = vpop.f32.mrb[15].mxu1 }
 0x134   :  { %v3421_v19 = vpop.f32.mrb[16].mxu0  ;;  %v3423_v20 = vpop.f32.mrb[16].mxu1 }
 0x135   :  { %v945_v21 = vpop.f32.mrb[17].mxu0  ;;  %v1137_v22 = vpop.f32.mrb[17].mxu1 }
 0x136   :  { %v3425_v23 = vpop.f32.mrb[18].mxu0  ;;  %v3427_v24 = vpop.f32.mrb[18].mxu1 }
 0x137   :  { %v948_v25 = vpop.f32.mrb[19].mxu0  ;;  %v1140_v26 = vpop.f32.mrb[19].mxu1 }
 0x138   :  { %v928_v25 = vadd.f32 %v3456_v53, %v3405_v3  ;;  %v936_v26 = vadd.f32 %v3456_v53, %v3413_v11 }
 0x13c   :  { %v3429_v27 = vpop.f32.mrb[20].mxu0  ;;  %v3431_v28 = vpop.f32.mrb[20].mxu1 }
 0x13d   :  { %v953_v29 = vpop.f32.mrb[21].mxu0  ;;  %v1145_v30 = vpop.f32.mrb[21].mxu1 }
 0x13e   :  { %v3433_v31 = vpop.f32.mrb[22].mxu0  ;;  %v3435_v32 = vpop.f32.mrb[22].mxu1 }
 0x13f   :  { %v956_v33 = vpop.f32.mrb[23].mxu0  ;;  %v1148_v34 = vpop.f32.mrb[23].mxu1 }
 0x144   :  { %v3437_v35 = vpop.f32.mrb[24].mxu0  ;;  %v3439_v36 = vpop.f32.mrb[24].mxu1 }
 0x145   :  { %v961_v37 = vpop.f32.mrb[25].mxu0  ;;  %v1153_v38 = vpop.f32.mrb[25].mxu1 }
 0x146   :  { %v3441_v39 = vpop.f32.mrb[26].mxu0  ;;  %v3443_v40 = vpop.f32.mrb[26].mxu1 }
 0x147   :  { %v964_v41 = vpop.f32.mrb[27].mxu0  ;;  %v1156_v42 = vpop.f32.mrb[27].mxu1 }
 0x14c   :  { %v3445_v43 = vpop.f32.mrb[28].mxu0  ;;  %v3447_v44 = vpop.f32.mrb[28].mxu1 }
 0x14d   :  { %v969_v45 = vpop.f32.mrb[29].mxu0  ;;  %v1161_v46 = vpop.f32.mrb[29].mxu1 }
 0x14e   :  { %v3449_v47 = vpop.f32.mrb[30].mxu0  ;;  %v3451_v48 = vpop.f32.mrb[30].mxu1 }
 0x14f   :  { %v972_v49 = vpop.f32.mrb[31].mxu0  ;;  %v1164_v50 = vpop.f32.mrb[31].mxu1 }
 0x150   :  { %v939_v49 = vadd.f32 %v3456_v53, %v3417_v15 }
 0x154   :  { %v3461_v58 = vpop.f32.mrb[32].mxu0  ;;  %v2701_v61 = vpop.f32.mrb[32].mxu1 }
 0x155   :  { %v3464_v1 = vadd.f32 %v2701_v61, %v920_v54  ;;  %v977_v2 = vpop.f32.mrb[33].mxu0  ;;  %v1200_v5 = vpop.f32.mrb[33].mxu1 }
 0x156   :  { %v3468_v9 = vadd.f32 %v1200_v5, %v912_v57  ;;  %v3470_v10 = vpop.f32.mrb[34].mxu0  ;;  %v2702_v59 = vpop.f32.mrb[34].mxu1  ;;  %v931_v2 = vadd.f32 %v3456_v53, %v3409_v7  ;;  %v952_v7 = vadd.f32 %v3456_v53, %v3429_v27 }
 0x157   :  { %v3472_v13 = vadd.f32 %v2702_v59, %v923_v62  ;;  %v980_v51 = vpop.f32.mrb[35].mxu0  ;;  %v1203_v14 = vpop.f32.mrb[35].mxu1  ;;  %v1591_v18 = vmul.f32 %v3464_v1, %v3464_v1  ;;  %v1459_v30 = vsel %vm1455_vm1, %v3464_v1, 0.0 }
 0x158   :  { %v1589_v63 = vmul.f32 %v3468_v9, %v3468_v9  ;;  %v3476_v17 = vadd.f32 %v1203_v14, %v915_v6  ;;  %v1456_v55 = vsel %vm1455_vm1, %v3468_v9, 0.0 }
 0x159   :  { %v1592_v34 = vmul.f32 %v3472_v13, %v3472_v13  ;;  %v1656_v50 = vsel %vm1455_vm1, %v1591_v18, 0.0  ;;  %v1461_v54 = vsel %vm1455_vm1, %v3472_v13, 0.0 }
 0x15a   :  { %v1457_v21 = vsel %vm1455_vm1, %v3476_v17, 0.0  ;;  %v1590_v22 = vmul.f32 %v3476_v17, %v3476_v17  ;;  %v1653_v33 = vsel %vm1455_vm1, %v1589_v63, 0.0 }
 0x15b   :  { %v1458_v29 = vadd.f32 %v1457_v21, %v1456_v55  ;;  %v1658_v14 = vsel %vm1455_vm1, %v1592_v34, 0.0  ;;  %v944_v34 = vadd.f32 %v3456_v53, %v3421_v19 }
 0x15c   :  { %v1654_v37 = vsel %vm1455_vm1, %v1590_v22, 0.0  ;;  %v3496_v38 = vpop.f32.mrb[36].mxu0  ;;  %v2705_v41 = vpop.f32.mrb[36].mxu1 }
 0x15d   :  { %v1460_v42 = vadd.f32 %v1459_v30, %v1458_v29  ;;  %v1655_v45 = vadd.f32 %v1654_v37, %v1653_v33  ;;  %v3498_v3 = vadd.f32 %v2705_v41, %v936_v26  ;;  %v985_v46 = vpop.f32.mrb[37].mxu0  ;;  %v1216_v11 = vpop.f32.mrb[37].mxu1  ;;  %v955_v37 = vadd.f32 %v3456_v53, %v3433_v31 }
 0x15e   :  { %v3505_v57 = vadd.f32 %v1216_v11, %v928_v25  ;;  %v3507_v61 = vpop.f32.mrb[38].mxu0  ;;  %v2706_v62 = vpop.f32.mrb[38].mxu1 }
 0x15f   :  { %v1657_v5 = vadd.f32 %v1656_v50, %v1655_v45  ;;  %v1462_v6 = vadd.f32 %v1461_v54, %v1460_v42  ;;  %v988_v59 = vpop.f32.mrb[39].mxu0  ;;  %v1219_v51 = vpop.f32.mrb[39].mxu1  ;;  %v3516_v18 = vadd.f32 %v2706_v62, %v939_v49  ;;  %v1595_v26 = vmul.f32 %v3498_v3, %v3498_v3 }
 0x160   :  { %v1463_v15 = vsel %vm1455_vm1, %v3505_v57, 0.0  ;;  %v1593_v63 = vmul.f32 %v3505_v57, %v3505_v57  ;;  %v3518_v22 = vadd.f32 %v1219_v51, %v931_v2  ;;  %v1467_v45 = vsel %vm1455_vm1, %v3498_v3, 0.0 }
 0x161   :  { %v1464_v55 = vadd.f32 %v1463_v15, %v1462_v6  ;;  %v1659_v21 = vadd.f32 %v1658_v14, %v1657_v5  ;;  %v1596_v46 = vmul.f32 %v3516_v18, %v3516_v18  ;;  %v947_v6 = vadd.f32 %v3456_v53, %v3425_v23 }
 0x162   :  { %v1660_v25 = vsel %vm1455_vm1, %v1593_v63, 0.0  ;;  %v1465_v30 = vsel %vm1455_vm1, %v3518_v22, 0.0  ;;  %v1594_v33 = vmul.f32 %v3518_v22, %v3518_v22  ;;  %v1664_v59 = vsel %vm1455_vm1, %v1595_v26, 0.0 }
 0x163   :  { %v1661_v29 = vadd.f32 %v1660_v25, %v1659_v21  ;;  %v1466_v41 = vadd.f32 %v1465_v30, %v1464_v55  ;;  %v1469_v51 = vsel %vm1455_vm1, %v3516_v18, 0.0 }
 0x164   :  { %v3533_v27 = vpop.f32.mrb[40].mxu0  ;;  %v2709_v42 = vpop.f32.mrb[40].mxu1  ;;  %v1662_v11 = vsel %vm1455_vm1, %v1594_v33, 0.0 }
 0x165   :  { %v3540_v49 = vadd.f32 %v2709_v42, %v952_v7  ;;  %v993_v50 = vpop.f32.mrb[41].mxu0  ;;  %v1232_v54 = vpop.f32.mrb[41].mxu1  ;;  %v1468_v19 = vadd.f32 %v1467_v45, %v1466_v41  ;;  %v1663_v62 = vadd.f32 %v1662_v11, %v1661_v29  ;;  %v1666_v29 = vsel %vm1455_vm1, %v1596_v46, 0.0 }
 0x166   :  { %v3542_v2 = vadd.f32 %v1232_v54, %v944_v34  ;;  %v3544_v31 = vpop.f32.mrb[42].mxu0  ;;  %v2710_v5 = vpop.f32.mrb[42].mxu1  ;;  %v968_v34 = vadd.f32 %v3456_v53, %v3445_v43  ;;  %v960_v45 = vadd.f32 %v3456_v53, %v3437_v35  ;;  %v971_v46 = vadd.f32 %v3456_v53, %v3449_v47 }
 0x167   :  { %v3551_v14 = vadd.f32 %v2710_v5, %v955_v37  ;;  %v996_v15 = vpop.f32.mrb[43].mxu0  ;;  %v1235_v63 = vpop.f32.mrb[43].mxu1  ;;  %v1665_v55 = vadd.f32 %v1664_v59, %v1663_v62  ;;  %v1470_v21 = vadd.f32 %v1469_v51, %v1468_v19  ;;  %v1599_v37 = vmul.f32 %v3540_v49, %v3540_v49 }
 0x168   :  { %v1471_v7 = vsel %vm1455_vm1, %v3542_v2, 0.0  ;;  %v1597_v25 = vmul.f32 %v3542_v2, %v3542_v2  ;;  %v3558_v23 = vadd.f32 %v1235_v63, %v947_v6  ;;  %v1475_v19 = vsel %vm1455_vm1, %v3540_v49, 0.0 }
 0x169   :  { %v1472_v26 = vadd.f32 %v1471_v7, %v1470_v21  ;;  %v1667_v30 = vadd.f32 %v1666_v29, %v1665_v55  ;;  %v1600_v62 = vmul.f32 %v3551_v14, %v3551_v14  ;;  %v963_v21 = vadd.f32 %v3456_v53, %v3441_v39 }
 0x16a   :  { %v1668_v33 = vsel %vm1455_vm1, %v1597_v25, 0.0  ;;  %v1473_v41 = vsel %vm1455_vm1, %v3558_v23, 0.0  ;;  %v1598_v42 = vmul.f32 %v3558_v23, %v3558_v23  ;;  %v1672_v7 = vsel %vm1455_vm1, %v1599_v37, 0.0 }
 0x16b   :  { %v1669_v11 = vadd.f32 %v1668_v33, %v1667_v30  ;;  %v1474_v50 = vadd.f32 %v1473_v41, %v1472_v26  ;;  %v1477_v25 = vsel %vm1455_vm1, %v3551_v14, 0.0 }
 0x16c   :  { %v3573_v54 = vpop.f32.mrb[44].mxu0  ;;  %v2713_v43 = vpop.f32.mrb[44].mxu1  ;;  %v1670_v5 = vsel %vm1455_vm1, %v1598_v42, 0.0 }
 0x16d   :  { %v3580_v6 = vadd.f32 %v2713_v43, %v968_v34  ;;  %v1001_v59 = vpop.f32.mrb[45].mxu0  ;;  %v1248_v35 = vpop.f32.mrb[45].mxu1  ;;  %v1476_v51 = vadd.f32 %v1475_v19, %v1474_v50  ;;  %v1671_v15 = vadd.f32 %v1670_v5, %v1669_v11 }
 0x16e   :  { %v3582_v47 = vadd.f32 %v1248_v35, %v960_v45  ;;  %v1002_v63 = vpop.f32.mrb[46].mxu0  ;;  %v2714_v55 = vpop.f32.mrb[46].mxu1  ;;  %v1674_v45 = vsel %vm1455_vm1, %v1600_v62, 0.0  ;;  %v976_v62 = vadd.f32 %v3456_v53, %v3461_v58  ;;  %v987_v59 = vadd.f32 %v3456_v53, %v3507_v61 }
 0x16f   :  { %v3589_v29 = vadd.f32 %v2714_v55, %v971_v46  ;;  %v1004_v26 = vpop.f32.mrb[47].mxu0  ;;  %v1251_v30 = vpop.f32.mrb[47].mxu1  ;;  %v1673_v33 = vadd.f32 %v1672_v7, %v1671_v15  ;;  %v1478_v34 = vadd.f32 %v1477_v25, %v1476_v51  ;;  %v984_v46 = vadd.f32 %v3456_v53, %v3496_v38 }
 0x170   :  { %v1479_v41 = vsel %vm1455_vm1, %v3582_v47, 0.0  ;;  %v1601_v42 = vmul.f32 %v3582_v47, %v3582_v47  ;;  %v3596_v39 = vadd.f32 %v1251_v30, %v963_v21  ;;  %v1603_v43 = vmul.f32 %v3580_v6, %v3580_v6 }
 0x171   :  { %v1480_v37 = vadd.f32 %v1479_v41, %v1478_v34  ;;  %v1675_v11 = vadd.f32 %v1674_v45, %v1673_v33  ;;  %v1483_v55 = vsel %vm1455_vm1, %v3580_v6, 0.0  ;;  %v1604_v21 = vmul.f32 %v3589_v29, %v3589_v29 }
 0x172   :  { %v1676_v50 = vsel %vm1455_vm1, %v1601_v42, 0.0  ;;  %v1481_v19 = vsel %vm1455_vm1, %v3596_v39, 0.0  ;;  %v1602_v5 = vmul.f32 %v3596_v39, %v3596_v39  ;;  %v979_v42 = vadd.f32 %v3456_v53, %v3470_v10 }
 0x173   :  { %v1677_v35 = vadd.f32 %v1676_v50, %v1675_v11  ;;  %v1482_v51 = vadd.f32 %v1481_v19, %v1480_v37  ;;  %v1680_v45 = vsel %vm1455_vm1, %v1603_v43, 0.0  ;;  %v1485_v37 = vsel %vm1455_vm1, %v3589_v29, 0.0 }
 0x174   :  { %v3611_v15 = vpop.f32.mrb[48].mxu0  ;;  %v2717_v38 = vpop.f32.mrb[48].mxu1  ;;  %v1678_v7 = vsel %vm1455_vm1, %v1602_v5, 0.0 }
 0x175   :  { %v3618_v25 = vadd.f32 %v2717_v38, %v984_v46  ;;  %v1009_v26 = vpop.f32.mrb[49].mxu0  ;;  %v1264_v58 = vpop.f32.mrb[49].mxu1  ;;  %v1484_v30 = vadd.f32 %v1483_v55, %v1482_v51  ;;  %v1679_v33 = vadd.f32 %v1678_v7, %v1677_v35  ;;  %v1682_v51 = vsel %vm1455_vm1, %v1604_v21, 0.0 }
 0x176   :  { %v3620_v61 = vadd.f32 %v1264_v58, %v976_v62  ;;  %v3622_v34 = vpop.f32.mrb[50].mxu0  ;;  %v2718_v41 = vpop.f32.mrb[50].mxu1  ;;  %v992_v21 = vadd.f32 %v3456_v53, %v3533_v27 }
 0x177   :  { %5136 = vst [vmem:[#allocation2_spill] sm:$0xff] %v3618_v25  ;;  %v3629_v11 = vadd.f32 %v2718_v41, %v987_v59  ;;  %v1012_v50 = vpop.f32.mrb[51].mxu0  ;;  %v1267_v46 = vpop.f32.mrb[51].mxu1  ;;  %v1681_v19 = vadd.f32 %v1680_v45, %v1679_v33  ;;  %v1486_v5 = vadd.f32 %v1485_v37, %v1484_v30  ;;  %v1000_v59 = vadd.f32 %v3456_v53, %v3573_v54 }
 0x178   :  { %5137 = vst [vmem:[#allocation3_spill] sm:$0xff] %v3620_v61  ;;  %v1487_v62 = vsel %vm1455_vm1, %v3620_v61, 0.0  ;;  %v1605_v35 = vmul.f32 %v3620_v61, %v3620_v61  ;;  %v3636_v10 = vadd.f32 %v1267_v46, %v979_v42  ;;  %v1607_v7 = vmul.f32 %v3618_v25, %v3618_v25 }
 0x179   :  { %5138 = vst [vmem:[#allocation4_spill] sm:$0xff] %v3629_v11  ;;  %v1488_v43 = vadd.f32 %v1487_v62, %v1486_v5  ;;  %v1683_v38 = vadd.f32 %v1682_v51, %v1681_v19  ;;  %v1003_v30 = vadd.f32 %v3456_v53, %v1002_v63  ;;  %v1491_v54 = vsel %vm1455_vm1, %v3618_v25, 0.0 }
 0x17a   :  { %5139 = vst [vmem:[#allocation5_spill] sm:$0xff] %v3636_v10  ;;  %v1684_v55 = vsel %vm1455_vm1, %v1605_v35, 0.0  ;;  %v1489_v26 = vsel %vm1455_vm1, %v3636_v10, 0.0  ;;  %v1606_v58 = vmul.f32 %v3636_v10, %v3636_v10  ;;  %v1608_v37 = vmul.f32 %v3629_v11, %v3629_v11 }
 0x17b   :  { %v1685_v33 = vadd.f32 %v1684_v55, %v1683_v38  ;;  %v1490_v41 = vadd.f32 %v1489_v26, %v1488_v43  ;;  %v995_v43 = vadd.f32 %v3456_v53, %v3544_v31  ;;  %v1688_v38 = vsel %vm1455_vm1, %v1607_v7, 0.0 }
 0x17c   :  { %v1015_v42 = vpop.f32.mrb[52].mxu0  ;;  %v2721_v45 = vpop.f32.mrb[52].mxu1  ;;  %v1686_v50 = vsel %vm1455_vm1, %v1606_v58, 0.0  ;;  %v1493_v55 = vsel %vm1455_vm1, %v3629_v11, 0.0 }
 0x17d   :  { %v3655_v46 = vadd.f32 %v2721_v45, %v1000_v59  ;;  %v1017_v19 = vpop.f32.mrb[53].mxu0  ;;  %v1280_v5 = vpop.f32.mrb[53].mxu1  ;;  %v1492_v62 = vadd.f32 %v1491_v54, %v1490_v41  ;;  %v1687_v27 = vadd.f32 %v1686_v50, %v1685_v33  ;;  %v1690_v41 = vsel %vm1455_vm1, %v1608_v37, 0.0 }
 0x17e   :  { %v3657_v35 = vadd.f32 %v1280_v5, %v992_v21  ;;  %v1018_v63 = vpop.f32.mrb[54].mxu0  ;;  %v2722_v51 = vpop.f32.mrb[54].mxu1  ;;  %v1008_v37 = vadd.f32 %v3456_v53, %v3611_v15 }
 0x17f   :  { %5140 = vst [vmem:[#allocation6_spill] sm:$0xff] %v3655_v46  ;;  %v3664_v26 = vadd.f32 %v2722_v51, %v1003_v30  ;;  %v1020_v59 = vpop.f32.mrb[55].mxu0  ;;  %v1283_v58 = vpop.f32.mrb[55].mxu1  ;;  %v1689_v45 = vadd.f32 %v1688_v38, %v1687_v27  ;;  %v1494_v19 = vadd.f32 %v1493_v55, %v1492_v62  ;;  %v1016_v30 = vadd.f32 %v3456_v53, %v1015_v42 }
 0x180   :  { %5141 = vst [vmem:[#allocation7_spill] sm:$0xff] %v3657_v35  ;;  %v1495_v21 = vsel %vm1455_vm1, %v3657_v35, 0.0  ;;  %v1609_v33 = vmul.f32 %v3657_v35, %v3657_v35  ;;  %v3671_v31 = vadd.f32 %v1283_v58, %v995_v43  ;;  %v1611_v5 = vmul.f32 %v3655_v46, %v3655_v46 }
 0x181   :  { %5142 = vst [vmem:[#allocation8_spill] sm:$0xff] %v3664_v26  ;;  %v1496_v7 = vadd.f32 %v1495_v21, %v1494_v19  ;;  %v1691_v54 = vadd.f32 %v1690_v41, %v1689_v45  ;;  %v1499_v51 = vsel %vm1455_vm1, %v3655_v46, 0.0  ;;  %v1019_v42 = vadd.f32 %v3456_v53, %v1018_v63 }
 0x182   :  { %5143 = vst [vmem:[#allocation9_spill] sm:$0xff] %v3671_v31  ;;  %v1692_v50 = vsel %vm1455_vm1, %v1609_v33, 0.0  ;;  %v1497_v62 = vsel %vm1455_vm1, %v3671_v31, 0.0  ;;  %v1610_v27 = vmul.f32 %v3671_v31, %v3671_v31  ;;  %v1612_v58 = vmul.f32 %v3664_v26, %v3664_v26 }
 0x183   :  { %v1693_v43 = vadd.f32 %v1692_v50, %v1691_v54  ;;  %v1498_v38 = vadd.f32 %v1497_v62, %v1496_v7  ;;  %v1011_v7 = vadd.f32 %v3456_v53, %v3622_v34  ;;  %v1696_v63 = vsel %vm1455_vm1, %v1611_v5, 0.0 }
 0x184   :  { %v1023_v55 = vpop.f32.mrb[56].mxu0  ;;  %v2725_v59 = vpop.f32.mrb[56].mxu1  ;;  %v1694_v45 = vsel %vm1455_vm1, %v1610_v27, 0.0  ;;  %v1501_v50 = vsel %vm1455_vm1, %v3664_v26, 0.0 }
 0x185   :  { %v3689_v19 = vadd.f32 %v2725_v59, %v1016_v30  ;;  %v1025_v21 = vpop.f32.mrb[57].mxu0  ;;  %v1296_v33 = vpop.f32.mrb[57].mxu1  ;;  %v1500_v41 = vadd.f32 %v1499_v51, %v1498_v38  ;;  %v1695_v15 = vadd.f32 %v1694_v45, %v1693_v43  ;;  %v1698_v43 = vsel %vm1455_vm1, %v1612_v58, 0.0 }
 0x186   :  { %v3691_v31 = vadd.f32 %v1296_v33, %v1008_v37  ;;  %v1026_v46 = vpop.f32.mrb[58].mxu0  ;;  %v2726_v54 = vpop.f32.mrb[58].mxu1 }
 0x187   :  { %5144 = vst [vmem:[#allocation10_spill] sm:$0xff] %v3689_v19  ;;  %v3698_v62 = vadd.f32 %v2726_v54, %v1019_v42  ;;  %v1028_v30 = vpop.f32.mrb[59].mxu0  ;;  %v1299_v27 = vpop.f32.mrb[59].mxu1  ;;  %v1697_v59 = vadd.f32 %v1696_v63, %v1695_v15  ;;  %v1502_v21 = vadd.f32 %v1501_v50, %v1500_v41  ;;  %v1024_v41 = vadd.f32 %v3456_v53, %v1023_v55 }
 0x188   :  { %5145 = vst [vmem:[#allocation11_spill] sm:$0xff] %v3691_v31  ;;  %v1503_v37 = vsel %vm1455_vm1, %v3691_v31, 0.0  ;;  %v1613_v51 = vmul.f32 %v3691_v31, %v3691_v31  ;;  %v3705_v34 = vadd.f32 %v1299_v27, %v1011_v7  ;;  %v1615_v58 = vmul.f32 %v3689_v19, %v3689_v19 }
 0x189   :  { %5146 = vst [vmem:[#allocation12_spill] sm:$0xff] %v3698_v62  ;;  %v1504_v5 = vadd.f32 %v1503_v37, %v1502_v21  ;;  %v1699_v38 = vadd.f32 %v1698_v43, %v1697_v59  ;;  %v1507_v55 = vsel %vm1455_vm1, %v3689_v19, 0.0 }
 0x18a   :  { %5147 = vst [vmem:[#allocation13_spill] sm:$0xff] %v3705_v34  ;;  %v1700_v45 = vsel %vm1455_vm1, %v1613_v51, 0.0  ;;  %v1505_v42 = vsel %vm1455_vm1, %v3705_v34, 0.0  ;;  %v1614_v33 = vmul.f32 %v3705_v34, %v3705_v34 }
 0x18b   :  { %v1701_v15 = vadd.f32 %v1700_v45, %v1699_v38  ;;  %v1506_v54 = vadd.f32 %v1505_v42, %v1504_v5  ;;  %v1027_v5 = vadd.f32 %v3456_v53, %v1026_v46  ;;  %v1509_v46 = vsel %vm1455_vm1, %v3698_v62, 0.0 }
 0x18c   :  { %v1031_v63 = vpop.f32.mrb[60].mxu0  ;;  %v2729_v50 = vpop.f32.mrb[60].mxu1  ;;  %v1702_v7 = vsel %vm1455_vm1, %v1614_v33, 0.0 }
 0x18d   :  { %v1032_v30 = vadd.f32 %v3456_v53, %v1031_v63  ;;  %v1033_v27 = vpop.f32.mrb[61].mxu0  ;;  %v1312_v59 = vpop.f32.mrb[61].mxu1  ;;  %v1703_v21 = vadd.f32 %v1702_v7, %v1701_v15  ;;  %v1508_v34 = vadd.f32 %v1507_v55, %v1506_v54  ;;  %v1704_v63 = vsel %vm1455_vm1, %v1615_v58, 0.0 }
 0x18e   :  { %v3717_v37 = vadd.f32 %v1312_v59, %v1024_v41  ;;  %v1034_v51 = vpop.f32.mrb[62].mxu0  ;;  %v2730_v43 = vpop.f32.mrb[62].mxu1  ;;  %v1616_v41 = vmul.f32 %v3698_v62, %v3698_v62 }
 0x18f   :  { %v3722_v38 = vadd.f32 %v2729_v50, %v1032_v30  ;;  %v1035_v45 = vadd.f32 %v3456_v53, %v1034_v51  ;;  %v1036_v42 = vpop.f32.mrb[63].mxu0  ;;  %v1315_v33 = vpop.f32.mrb[63].mxu1  ;;  %v1705_v27 = vadd.f32 %v1704_v63, %v1703_v21  ;;  %v1510_v30 = vadd.f32 %v1509_v46, %v1508_v34 }
 0x190   :  { %5148 = vst [vmem:[#allocation14_spill] sm:$0xff] %v3717_v37  ;;  %v3730_v7 = vadd.f32 %v1315_v33, %v1027_v5  ;;  %v1617_v50 = vmul.f32 %v3717_v37, %v3717_v37  ;;  %v1706_v54 = vsel %vm1455_vm1, %v1616_v41, 0.0  ;;  %v1511_v58 = vsel %vm1455_vm1, %v3717_v37, 0.0 }
 0x191   :  { %5149 = vst [vmem:[#allocation15_spill] sm:$0xff] %v3722_v38  ;;  %v3728_v15 = vadd.f32 %v2730_v43, %v1035_v45  ;;  %v1707_v45 = vadd.f32 %v1706_v54, %v1705_v27  ;;  %v1512_v19 = vadd.f32 %v1511_v58, %v1510_v30  ;;  %v1619_v26 = vmul.f32 %v3722_v38, %v3722_v38 }
 0x192   :  { %5151 = vst [vmem:[#allocation17_spill] sm:$0xff] %v3730_v7  ;;  %v1708_v33 = vsel %vm1455_vm1, %v1617_v50, 0.0  ;;  %v1618_v63 = vmul.f32 %v3730_v7, %v3730_v7 }
 0x193   :  { %5150 = vst [vmem:[#allocation16_spill] sm:$0xff] %v3728_v15  ;;  %v1709_v27 = vadd.f32 %v1708_v33, %v1707_v45 }
 0x194   :  { %v1039_v59 = vpop.f32.mrb[64].mxu0  ;;  %v2733_v51 = vpop.f32.mrb[64].mxu1  ;;  %v1710_v54 = vsel %vm1455_vm1, %v1618_v63, 0.0 }
 0x195   :  { %v1040_v43 = vadd.f32 %v3456_v53, %v1039_v59  ;;  %v1041_v55 = vpop.f32.mrb[65].mxu0  ;;  %v1328_v5 = vpop.f32.mrb[65].mxu1  ;;  %v1513_v59 = vsel %vm1455_vm1, %v3730_v7, 0.0 }
 0x196   :  { %v1042_v21 = vpop.f32.mrb[66].mxu0  ;;  %v2734_v42 = vpop.f32.mrb[66].mxu1  ;;  %v1514_v37 = vadd.f32 %v1513_v59, %v1512_v19  ;;  %v1712_v59 = vsel %vm1455_vm1, %v1619_v26, 0.0 }
 0x197   :  { %v1043_v34 = vadd.f32 %v3456_v53, %v1042_v21  ;;  %v3744_v46 = vadd.f32 %v1328_v5, %v1040_v43  ;;  %v1044_v41 = vpop.f32.mrb[67].mxu0  ;;  %v1331_v62 = vpop.f32.mrb[67].mxu1 }
 0x198   :  { %v1711_v41 = vadd.f32 %v1710_v54, %v1709_v27  ;;  %v1517_v54 = vsel %vm1455_vm1, %v3728_v15, 0.0 }
 0x199   :  { %5152 = vst [vmem:[#allocation18_spill] sm:$0xff] %v3744_v46  ;;  %v3748_v55 = vadd.f32 %v1331_v62, %v1043_v34  ;;  %v1515_v62 = vsel %vm1455_vm1, %v3722_v38, 0.0  ;;  %v1519_v26 = vsel %vm1455_vm1, %v3744_v46, 0.0 }
 0x19a   :  { %v1516_v63 = vadd.f32 %v1515_v62, %v1514_v37  ;;  %v1713_v27 = vadd.f32 %v1712_v59, %v1711_v41 }
 0x19b   :  { %5153 = vst [vmem:[#allocation19_spill] sm:$0xff] %v3748_v55 }
 0x19c   :  { %v1047_v50 = vpop.f32.mrb[68].mxu0  ;;  %v2737_v31 = vpop.f32.mrb[68].mxu1 }
 0x19d   :  { %v1048_v43 = vadd.f32 %v3456_v53, %v1047_v50  ;;  %v1049_v5 = vpop.f32.mrb[69].mxu0  ;;  %v1344_v21 = vpop.f32.mrb[69].mxu1  ;;  %v1620_v50 = vmul.f32 %v3728_v15, %v3728_v15 }
 0x19e   :  { %v1050_v30 = vpop.f32.mrb[70].mxu0  ;;  %v2738_v58 = vpop.f32.mrb[70].mxu1 }
 0x19f   :  { %v3756_v34 = vadd.f32 %v2733_v51, %v1048_v43  ;;  %v1051_v45 = vadd.f32 %v3456_v53, %v1050_v30  ;;  %v1052_v19 = vpop.f32.mrb[71].mxu0  ;;  %v1347_v33 = vpop.f32.mrb[71].mxu1  ;;  %v1621_v51 = vmul.f32 %v3744_v46, %v3744_v46  ;;  %v1518_v43 = vadd.f32 %v1517_v54, %v1516_v63 }
 0x1a0   :  { %v1714_v37 = vsel %vm1455_vm1, %v1620_v50, 0.0  ;;  %v1622_v63 = vmul.f32 %v3748_v55, %v3748_v55 }
 0x1a1   :  { %5154 = vst [vmem:[#allocation20_spill] sm:$0xff] %v3756_v34  ;;  %v3762_v5 = vadd.f32 %v2734_v42, %v1051_v45  ;;  %v1715_v41 = vadd.f32 %v1714_v37, %v1713_v27  ;;  %v1716_v15 = vsel %vm1455_vm1, %v1621_v51, 0.0  ;;  %v1520_v46 = vadd.f32 %v1519_v26, %v1518_v43 }
 0x1a2   :  { %v1623_v27 = vmul.f32 %v3756_v34, %v3756_v34  ;;  %v1718_v51 = vsel %vm1455_vm1, %v1622_v63, 0.0  ;;  %v1523_v11 = vsel %vm1455_vm1, %v3756_v34, 0.0 }
 0x1a3   :  { %5155 = vst [vmem:[#allocation21_spill] sm:$0xff] %v3762_v5  ;;  %v1624_v26 = vmul.f32 %v3762_v5, %v3762_v5 }
 0x1a4   :  { %v1055_v38 = vpop.f32.mrb[72].mxu0  ;;  %v3768_v30 = vpop.f32.mrb[72].mxu1  ;;  %v1720_v43 = vsel %vm1455_vm1, %v1623_v27, 0.0 }
 0x1a5   :  { %v1056_v62 = vadd.f32 %v3456_v53, %v1055_v38  ;;  %v1057_v42 = vpop.f32.mrb[73].mxu0  ;;  %v1360_v45 = vpop.f32.mrb[73].mxu1  ;;  %v1521_v38 = vsel %vm1455_vm1, %v3748_v55, 0.0 }
 0x1a6   :  { %v1058_v19 = vpop.f32.mrb[74].mxu0  ;;  %v3774_v59 = vpop.f32.mrb[74].mxu1  ;;  %v1717_v42 = vadd.f32 %v1716_v15, %v1715_v41 }
 0x1a7   :  { %v1059_v54 = vadd.f32 %v3456_v53, %v1058_v19  ;;  %v3780_v7 = vadd.f32 %v1344_v21, %v1056_v62  ;;  %v1060_v50 = vpop.f32.mrb[75].mxu0  ;;  %v1363_v35 = vpop.f32.mrb[75].mxu1  ;;  %v1522_v19 = vadd.f32 %v1521_v38, %v1520_v46  ;;  %v1525_v46 = vsel %vm1455_vm1, %v3762_v5, 0.0 }
 0x1a8   :  { %v1719_v15 = vadd.f32 %v1718_v51, %v1717_v42  ;;  %v1722_v42 = vsel %vm1455_vm1, %v1624_v26, 0.0  ;;  %v1112_v5 = vadd.f32 %v3456_v53, %v3401_v60 }
 0x1a9   :  { %5156 = vst [vmem:[#allocation22_spill] sm:$0xff] %v3780_v7  ;;  %v3786_v37 = vadd.f32 %v1347_v33, %v1059_v54  ;;  %v1524_v41 = vadd.f32 %v1523_v11, %v1522_v19  ;;  %v1625_v38 = vmul.f32 %v3780_v7, %v3780_v7  ;;  %v1527_v11 = vsel %vm1455_vm1, %v3780_v7, 0.0 }
 0x1aa   :  { %v1107_v7 = vadd.f32 %v3456_v53, %v3399_v56 }
 0x1ab   :  { %5157 = vst [vmem:[#allocation23_spill] sm:$0xff] %v3786_v37  ;;  %v1526_v19 = vadd.f32 %v1525_v46, %v1524_v41 }
 0x1ac   :  { %v1063_v21 = vpop.f32.mrb[76].mxu0  ;;  %v3791_v62 = vpop.f32.mrb[76].mxu1 }
 0x1ad   :  { %v1064_v50 = vadd.f32 %v3456_v53, %v1063_v21  ;;  %v1065_v55 = vpop.f32.mrb[77].mxu0  ;;  %v3797_v33 = vpop.f32.mrb[77].mxu1 }
 0x1ae   :  { %v1066_v63 = vpop.f32.mrb[78].mxu0  ;;  %v3799_v54 = vpop.f32.mrb[78].mxu1  ;;  %v1721_v55 = vadd.f32 %v1720_v43, %v1719_v15  ;;  %v1528_v43 = vadd.f32 %v1527_v11, %v1526_v19 }
 0x1af   :  { %v3805_v27 = vadd.f32 %v2737_v31, %v1064_v50  ;;  %v1067_v34 = vadd.f32 %v3456_v53, %v1066_v63  ;;  %v1068_v25 = vpop.f32.mrb[79].mxu0  ;;  %v3808_v21 = vpop.f32.mrb[79].mxu1  ;;  %v1724_v31 = vsel %vm1455_vm1, %v1625_v38, 0.0  ;;  %v1626_v50 = vmul.f32 %v3786_v37, %v3786_v37 }
 0x1b0   :  { %v1104_v25 = vadd.f32 %v3456_v53, %v3395_v52  ;;  %v1723_v15 = vadd.f32 %v1722_v42, %v1721_v55  ;;  %v1115_v52 = vadd.f32 %v3456_v53, %v3403_v0 }
 0x1b1   :  { %v3813_v51 = vadd.f32 %v2738_v58, %v1067_v34  ;;  %v1529_v58 = vsel %vm1455_vm1, %v3786_v37, 0.0  ;;  %v1627_v34 = vmul.f32 %v3805_v27, %v3805_v27  ;;  %v1726_v37 = vsel %vm1455_vm1, %v1626_v50, 0.0 }
 0x1b2   :  { %v1725_v55 = vadd.f32 %v1724_v31, %v1723_v15  ;;  %v1530_v56 = vadd.f32 %v1529_v58, %v1528_v43 }
 0x1b3   :  { %v1728_v31 = vsel %vm1455_vm1, %v1627_v34, 0.0 }
 0x1b4   :  { %v1071_v26 = vpop.f32.mrb[80].mxu0  ;;  %v2749_v63 = vpop.f32.mrb[80].mxu1  ;;  %v1727_v15 = vadd.f32 %v1726_v37, %v1725_v55 }
 0x1b5   :  { %v1072_v60 = vadd.f32 %v3456_v53, %v1071_v26  ;;  %v3827_v41 = vadd.f32 %v2749_v63, %v1112_v5  ;;  %v1073_v46 = vpop.f32.mrb[81].mxu0  ;;  %v1392_v38 = vpop.f32.mrb[81].mxu1  ;;  %v1531_v26 = vsel %vm1455_vm1, %v3805_v27, 0.0 }
 0x1b6   :  { %v3833_v42 = vadd.f32 %v1392_v38, %v1104_v25  ;;  %v1074_v11 = vpop.f32.mrb[82].mxu0  ;;  %v2750_v19 = vpop.f32.mrb[82].mxu1  ;;  %v1628_v25 = vmul.f32 %v3813_v51, %v3813_v51  ;;  %v1532_v38 = vadd.f32 %v1531_v26, %v1530_v56 }
 0x1b7   :  { %v3838_v5 = vadd.f32 %v1360_v45, %v1072_v60  ;;  %v1075_v63 = vadd.f32 %v3456_v53, %v1074_v11  ;;  %v1076_v46 = vpop.f32.mrb[83].mxu0  ;;  %v1395_v10 = vpop.f32.mrb[83].mxu1  ;;  %v3841_v61 = vadd.f32 %v2750_v19, %v1115_v52  ;;  %v1128_v45 = vadd.f32 %v3456_v53, %v3415_v12 }
 0x1b8   :  { %v3843_v0 = vadd.f32 %v1395_v10, %v1107_v7  ;;  %v1533_v60 = vsel %vm1455_vm1, %v3813_v51, 0.0  ;;  %v1120_v10 = vadd.f32 %v3456_v53, %v3407_v4  ;;  %v1729_v7 = vadd.f32 %v1728_v31, %v1727_v15 }
 0x1b9   :  { %v3848_v50 = vadd.f32 %v1363_v35, %v1075_v63  ;;  %v1629_v43 = vmul.f32 %v3838_v5, %v3838_v5  ;;  %v1730_v35 = vsel %vm1455_vm1, %v1628_v25, 0.0  ;;  %v1535_v37 = vsel %vm1455_vm1, %v3838_v5, 0.0 }
 0x1ba   :  { %v1123_v19 = vadd.f32 %v3456_v53, %v3411_v8  ;;  %v1131_v4 = vadd.f32 %v3456_v53, %v3419_v16  ;;  %v1534_v26 = vadd.f32 %v1533_v60, %v1532_v38 }
 0x1bb   :  { %v1732_v31 = vsel %vm1455_vm1, %v1629_v43, 0.0  ;;  %v1630_v25 = vmul.f32 %v3848_v50, %v3848_v50  ;;  %v1537_v60 = vsel %vm1455_vm1, %v3848_v50, 0.0 }
 0x1bc   :  { %v1079_v58 = vpop.f32.mrb[84].mxu0  ;;  %v2753_v34 = vpop.f32.mrb[84].mxu1 }
 0x1bd   :  { %v1080_v52 = vadd.f32 %v3456_v53, %v1079_v58  ;;  %v3862_v12 = vadd.f32 %v2753_v34, %v1128_v45  ;;  %v1081_v55 = vpop.f32.mrb[85].mxu0  ;;  %v1408_v11 = vpop.f32.mrb[85].mxu1  ;;  %v1731_v34 = vadd.f32 %v1730_v35, %v1729_v7  ;;  %v1734_v7 = vsel %vm1455_vm1, %v1630_v25, 0.0 }
 0x1be   :  { %v3868_v63 = vadd.f32 %v1408_v11, %v1120_v10  ;;  %v1082_v46 = vpop.f32.mrb[86].mxu0  ;;  %v2754_v56 = vpop.f32.mrb[86].mxu1  ;;  %v1536_v55 = vadd.f32 %v1535_v37, %v1534_v26  ;;  %v1136_v37 = vadd.f32 %v3456_v53, %v3423_v20  ;;  %v1139_v11 = vadd.f32 %v3456_v53, %v3427_v24 }
 0x1bf   :  { %v3874_v15 = vadd.f32 %v3768_v30, %v1080_v52  ;;  %v1083_v45 = vadd.f32 %v3456_v53, %v1082_v46  ;;  %v1084_v58 = vpop.f32.mrb[87].mxu0  ;;  %v1411_v8 = vpop.f32.mrb[87].mxu1  ;;  %v3877_v16 = vadd.f32 %v2754_v56, %v1131_v4  ;;  %v1733_v30 = vadd.f32 %v1732_v31, %v1731_v34 }
 0x1c0   :  { %v3879_v38 = vadd.f32 %v1411_v8, %v1123_v19  ;;  %v1144_v52 = vadd.f32 %v3456_v53, %v3431_v28  ;;  %v1538_v19 = vadd.f32 %v1537_v60, %v1536_v55  ;;  %v1147_v20 = vadd.f32 %v3456_v53, %v3435_v32 }
 0x1c1   :  { %v1631_v43 = vmul.f32 %v3874_v15, %v3874_v15  ;;  %v3886_v10 = vadd.f32 %v3774_v59, %v1083_v45  ;;  %v1539_v35 = vsel %vm1455_vm1, %v3874_v15, 0.0  ;;  %v1735_v45 = vadd.f32 %v1734_v7, %v1733_v30 }
 0x1c2   :  { %v1540_v58 = vadd.f32 %v1539_v35, %v1538_v19  ;;  %v1160_v19 = vadd.f32 %v3456_v53, %v3447_v44 }
 0x1c3   :  { %v1736_v59 = vsel %vm1455_vm1, %v1631_v43, 0.0  ;;  %v1632_v46 = vmul.f32 %v3886_v10, %v3886_v10  ;;  %v1541_v55 = vsel %vm1455_vm1, %v3886_v10, 0.0 }
 0x1c4   :  { %v1087_v4 = vpop.f32.mrb[88].mxu0  ;;  %v2757_v26 = vpop.f32.mrb[88].mxu1 }
 0x1c5   :  { %v1088_v28 = vadd.f32 %v3456_v53, %v1087_v4  ;;  %v3901_v56 = vadd.f32 %v2757_v26, %v1144_v52  ;;  %v1089_v31 = vpop.f32.mrb[89].mxu0  ;;  %v1424_v25 = vpop.f32.mrb[89].mxu1  ;;  %v1737_v26 = vadd.f32 %v1736_v59, %v1735_v45  ;;  %v1738_v30 = vsel %vm1455_vm1, %v1632_v46, 0.0 }
 0x1c6   :  { %v3905_v24 = vadd.f32 %v1424_v25, %v1136_v37  ;;  %v1090_v8 = vpop.f32.mrb[90].mxu0  ;;  %v2758_v34 = vpop.f32.mrb[90].mxu1  ;;  %v1542_v37 = vadd.f32 %v1541_v55, %v1540_v58  ;;  %v1152_v46 = vadd.f32 %v3456_v53, %v3439_v36  ;;  %v1155_v55 = vadd.f32 %v3456_v53, %v3443_v40 }
 0x1c7   :  { %v3910_v60 = vadd.f32 %v3797_v33, %v1088_v28  ;;  %v1091_v43 = vadd.f32 %v3456_v53, %v1090_v8  ;;  %v1092_v52 = vpop.f32.mrb[91].mxu0  ;;  %v1427_v4 = vpop.f32.mrb[91].mxu1  ;;  %v3913_v31 = vadd.f32 %v2758_v34, %v1147_v20  ;;  %v1739_v28 = vadd.f32 %v1738_v30, %v1737_v26 }
 0x1c8   :  { %v3915_v32 = vadd.f32 %v1427_v4, %v1139_v11 }
 0x1c9   :  { %v1543_v7 = vsel %vm1455_vm1, %v3910_v60, 0.0  ;;  %v1633_v35 = vmul.f32 %v3910_v60, %v3910_v60  ;;  %v3923_v33 = vadd.f32 %v3808_v21, %v1091_v43  ;;  %v1163_v43 = vadd.f32 %v3456_v53, %v3451_v48 }
 0x1ca   :  { %v1544_v25 = vadd.f32 %v1543_v7, %v1542_v37 }
 0x1cb   :  { %v1740_v59 = vsel %vm1455_vm1, %v1633_v35, 0.0  ;;  %v1634_v11 = vmul.f32 %v3923_v33, %v3923_v33  ;;  %v1545_v21 = vsel %vm1455_vm1, %v3923_v33, 0.0 }
 0x1cc   :  { %v1095_v20 = vpop.f32.mrb[92].mxu0  ;;  %v2761_v45 = vpop.f32.mrb[92].mxu1  ;;  %v1741_v36 = vadd.f32 %v1740_v59, %v1739_v28 }
 0x1cd   :  { %v1096_v58 = vadd.f32 %v3456_v53, %v1095_v20  ;;  %v3935_v8 = vadd.f32 %v2761_v45, %v1160_v19  ;;  %v1097_v44 = vpop.f32.mrb[93].mxu0  ;;  %v1440_v34 = vpop.f32.mrb[93].mxu1  ;;  %v1742_v30 = vsel %vm1455_vm1, %v1634_v11, 0.0  ;;  %v1546_v20 = vadd.f32 %v1545_v21, %v1544_v25 }
 0x1ce   :  { %v3941_v52 = vadd.f32 %v1440_v34, %v1152_v46  ;;  %v1098_v4 = vpop.f32.mrb[94].mxu0  ;;  %v2762_v26 = vpop.f32.mrb[94].mxu1  ;;  %v1551_v34 = vsel %vm1455_vm1, %v3833_v42, 0.0 }
 0x1cf   :  { %v3945_v7 = vadd.f32 %v3791_v62, %v1096_v58  ;;  %v1099_v35 = vadd.f32 %v3456_v53, %v1098_v4  ;;  %v1100_v37 = vpop.f32.mrb[95].mxu0  ;;  %v1443_v19 = vpop.f32.mrb[95].mxu1  ;;  %v3948_v45 = vadd.f32 %v2762_v26, %v1163_v43  ;;  %v1743_v62 = vadd.f32 %v1742_v30, %v1741_v36 }
 0x1d0   :  { %v3950_v40 = vadd.f32 %v1443_v19, %v1155_v55  ;;  %v1637_v53 = vmul.f32 %v3833_v42, %v3833_v42  ;;  %v1639_v4 = vmul.f32 %v3827_v41, %v3827_v41  ;;  %v1553_v30 = vsel %vm1455_vm1, %v3843_v0, 0.0 }
 0x1d1   :  { %v1547_v48 = vsel %vm1455_vm1, %v3945_v7, 0.0  ;;  %v1635_v59 = vmul.f32 %v3945_v7, %v3945_v7  ;;  %v3957_v11 = vadd.f32 %v3799_v54, %v1099_v35  ;;  %v1638_v54 = vmul.f32 %v3843_v0, %v3843_v0 }
 0x1d2   :  { %v1548_v46 = vadd.f32 %v1547_v48, %v1546_v20  ;;  %v1748_v26 = vsel %vm1455_vm1, %v1637_v53, 0.0  ;;  %v1555_v19 = vsel %vm1455_vm1, %v3827_v41, 0.0  ;;  %v1640_v20 = vmul.f32 %v3841_v61, %v3841_v61 }
 0x1d3   :  { %v1744_v28 = vsel %vm1455_vm1, %v1635_v59, 0.0  ;;  %v1549_v25 = vsel %vm1455_vm1, %v3957_v11, 0.0  ;;  %v1636_v21 = vmul.f32 %v3957_v11, %v3957_v11  ;;  %v1750_v48 = vsel %vm1455_vm1, %v1638_v54, 0.0 }
 0x1d4   :  { %v1745_v58 = vadd.f32 %v1744_v28, %v1743_v62  ;;  %v1550_v44 = vadd.f32 %v1549_v25, %v1548_v46  ;;  %v1752_v46 = vsel %vm1455_vm1, %v1639_v4, 0.0  ;;  %v1557_v53 = vsel %vm1455_vm1, %v3841_v61, 0.0 }
 0x1d5   :  { %v1746_v55 = vsel %vm1455_vm1, %v1636_v21, 0.0  ;;  %v1641_v28 = vmul.f32 %v3868_v63, %v3868_v63  ;;  %v1561_v4 = vsel %vm1455_vm1, %v3879_v38, 0.0 }
 0x1d6   :  { %v1552_v43 = vadd.f32 %v1551_v34, %v1550_v44  ;;  %v1747_v36 = vadd.f32 %v1746_v55, %v1745_v58  ;;  %v1754_v58 = vsel %vm1455_vm1, %v1640_v20, 0.0  ;;  %v1559_v44 = vsel %vm1455_vm1, %v3868_v63, 0.0 }
 0x1d7   :  { %v1642_v34 = vmul.f32 %v3879_v38, %v3879_v38 }
 0x1d8   :  { %v1554_v35 = vadd.f32 %v1553_v30, %v1552_v43  ;;  %v1749_v37 = vadd.f32 %v1748_v26, %v1747_v36  ;;  %v1643_v43 = vmul.f32 %v3862_v12, %v3862_v12  ;;  %v1756_v36 = vsel %vm1455_vm1, %v1641_v28, 0.0 }
 0x1da   :  { %v1556_v59 = vadd.f32 %v1555_v19, %v1554_v35  ;;  %v1751_v62 = vadd.f32 %v1750_v48, %v1749_v37  ;;  %v1563_v35 = vsel %vm1455_vm1, %v3862_v12, 0.0  ;;  %v1644_v37 = vmul.f32 %v3877_v16, %v3877_v16 }
 0x1db   :  { %v1758_v19 = vsel %vm1455_vm1, %v1642_v34, 0.0 }
 0x1dc   :  { %v1558_v25 = vadd.f32 %v1557_v53, %v1556_v59  ;;  %v1753_v21 = vadd.f32 %v1752_v46, %v1751_v62  ;;  %v1760_v59 = vsel %vm1455_vm1, %v1643_v43, 0.0  ;;  %v1565_v62 = vsel %vm1455_vm1, %v3877_v16, 0.0 }
 0x1dd   :  { %v1645_v46 = vmul.f32 %v3905_v24, %v3905_v24  ;;  %v1569_v43 = vsel %vm1455_vm1, %v3915_v32, 0.0 }
 0x1de   :  { %v1560_v54 = vadd.f32 %v1559_v44, %v1558_v25  ;;  %v1755_v55 = vadd.f32 %v1754_v58, %v1753_v21  ;;  %v1762_v25 = vsel %vm1455_vm1, %v1644_v37, 0.0  ;;  %v1567_v21 = vsel %vm1455_vm1, %v3905_v24, 0.0 }
 0x1df   :  { %v1646_v58 = vmul.f32 %v3915_v32, %v3915_v32 }
 0x1e0   :  { %v1562_v26 = vadd.f32 %v1561_v4, %v1560_v54  ;;  %v1757_v30 = vadd.f32 %v1756_v36, %v1755_v55  ;;  %v1647_v54 = vmul.f32 %v3901_v56, %v3901_v56  ;;  %v1764_v55 = vsel %vm1455_vm1, %v1645_v46, 0.0 }
 0x1e2   :  { %v1759_v20 = vadd.f32 %v1758_v19, %v1757_v30  ;;  %v1564_v48 = vadd.f32 %v1563_v35, %v1562_v26  ;;  %v1571_v26 = vsel %vm1455_vm1, %v3901_v56, 0.0  ;;  %v1648_v30 = vmul.f32 %v3913_v31, %v3913_v31 }
 0x1e3   :  { %v1766_v35 = vsel %vm1455_vm1, %v1646_v58, 0.0 }
 0x1e4   :  { %v1566_v53 = vadd.f32 %v1565_v62, %v1564_v48  ;;  %v1761_v28 = vadd.f32 %v1760_v59, %v1759_v20  ;;  %v1768_v20 = vsel %vm1455_vm1, %v1647_v54, 0.0  ;;  %v1573_v48 = vsel %vm1455_vm1, %v3913_v31, 0.0 }
 0x1e5   :  { %v1649_v59 = vmul.f32 %v3941_v52, %v3941_v52  ;;  %v1577_v54 = vsel %vm1455_vm1, %v3950_v40, 0.0 }
 0x1e6   :  { %v1568_v44 = vadd.f32 %v1567_v21, %v1566_v53  ;;  %v1763_v34 = vadd.f32 %v1762_v25, %v1761_v28  ;;  %v1770_v53 = vsel %vm1455_vm1, %v1648_v30, 0.0  ;;  %v1575_v28 = vsel %vm1455_vm1, %v3941_v52, 0.0 }
 0x1e7   :  { %v1650_v25 = vmul.f32 %v3950_v40, %v3950_v40 }
 0x1e8   :  { %v1570_v36 = vadd.f32 %v1569_v43, %v1568_v44  ;;  %v1765_v4 = vadd.f32 %v1764_v55, %v1763_v34  ;;  %v1651_v44 = vmul.f32 %v3935_v8, %v3935_v8  ;;  %v1772_v34 = vsel %vm1455_vm1, %v1649_v59, 0.0 }
 0x1ea   :  { %v1572_v37 = vadd.f32 %v1571_v26, %v1570_v36  ;;  %v1767_v19 = vadd.f32 %v1766_v35, %v1765_v4  ;;  %v1579_v36 = vsel %vm1455_vm1, %v3935_v8, 0.0  ;;  %v1652_v4 = vmul.f32 %v3948_v45, %v3948_v45 }
 0x1eb   :  { %v1774_v26 = vsel %vm1455_vm1, %v1650_v25, 0.0 }
 0x1ec   :  { %v1574_v62 = vadd.f32 %v1573_v48, %v1572_v37  ;;  %v1769_v46 = vadd.f32 %v1768_v20, %v1767_v19  ;;  %v1776_v37 = vsel %vm1455_vm1, %v1651_v44, 0.0  ;;  %v1581_v19 = vsel %vm1455_vm1, %v3948_v45, 0.0 }
 0x1ed   :  { %v1778_v59 = vsel %vm1455_vm1, %v1652_v4, 0.0 }
 0x1ee   :  { %v1576_v21 = vadd.f32 %v1575_v28, %v1574_v62  ;;  %v1771_v58 = vadd.f32 %v1770_v53, %v1769_v46 }
 0x1f0   :  { %v1578_v55 = vadd.f32 %v1577_v54, %v1576_v21  ;;  %v1773_v43 = vadd.f32 %v1772_v34, %v1771_v58 }
 0x1f2   :  { %v1580_v30 = vadd.f32 %v1579_v36, %v1578_v55  ;;  %v1775_v35 = vadd.f32 %v1774_v26, %v1773_v43 }
 0x1f4   :  { %v1582_v20 = vadd.f32 %v1581_v19, %v1580_v30  ;;  %v1777_v48 = vadd.f32 %v1776_v37, %v1775_v35 }
 0x1f6   :  { %v1583_v62 = vrot.slane %v1582_v20, 4  ;;  %v1779_v46 = vadd.f32 %v1778_v59, %v1777_v48 }
 0x1f8   :  { %v1584_v53 = vadd.f32 %v1583_v62, %v1582_v20  ;;  %v1780_v28 = vrot.slane %v1779_v46, 4 }
 0x1fa   :  { %v1585_v21 = vrot.slane %v1584_v53, 2  ;;  %v1781_v58 = vadd.f32 %v1780_v28, %v1779_v46 }
 0x1fc   :  { %v1586_v34 = vadd.f32 %v1585_v21, %v1584_v53  ;;  %v1782_v54 = vrot.slane %v1781_v58, 2 }
 0x1fe   :  { %v1587_v25 = vrot.slane %v1586_v34, 1  ;;  %v1783_v55 = vadd.f32 %v1782_v54, %v1781_v58 }
 0x200   :  { %v1588_v43 = vadd.f32 %v1587_v25, %v1586_v34  ;;  %v1784_v36 = vrot.slane %v1783_v55, 1 }
 0x202   :  { %1795 = vrot.lane.b32.xlu1 %v1588_v43, %s2951_s2  ;;  %1787 = vrot.lane.b32.xlu0 %v1588_v43, %s2952_s15  ;;  %v1785_v44 = vadd.f32 %v1784_v36, %v1783_v55  ;;  %v1826_v55 = vlaneseq }
 0x204   :  { %v1827_v36 = vshrl.u32 %v1826_v55, 7 }
 0x206   :  { %1800 = vrot.lane.b32.xlu1 %v1785_v44, %s2952_s15  ;;  %1791 = vrot.lane.b32.xlu0 %v1588_v43, %s2953_s16 }
 0x20a   :  { %1808 = vrot.lane.b32.xlu1 %v1785_v44, %s2951_s2  ;;  %1804 = vrot.lane.b32.xlu0 %v1785_v44, %s2953_s16 }
 0x274   :  { %v1796_v4 = vpop.permute.xlu1 %1795  ;;  %v1788_v26 = vpop.permute.xlu0 %1787 }
 0x275   :  { %v1790_v30 = vadd.f32 %v1788_v26, %v1588_v43  ;;  %v1818_v43 = vld [vmem:[%s5092_s3] sm:$0x1]  ;;  %v4048_v26 = vsub.s32 0, %v1827_v36 }
 0x278   :  { %v1801_v35 = vpop.permute.xlu1 %1800  ;;  %v1792_v37 = vpop.permute.xlu0 %1791 }
 0x279   :  { %v1794_v19 = vadd.f32 %v1792_v37, %v1790_v30  ;;  %v1803_v20 = vadd.f32 %v1801_v35, %v1785_v44  ;;  %v1822_v30 = vld [vmem:[%s5093_s4] sm:$0x1] }
 0x27b   :  { %v1798_v48 = vadd.f32 %v1796_v4, %v1794_v19 }
 0x27c   :  { %v1805_v59 = vpop.permute.xlu0 %1804  ;;  %v1809_v53 = vpop.permute.xlu1 %1808 }
 0x27d   :  { %v1813_v62 = vmul.f32 0.00048828125, %v1798_v48  ;;  %v1807_v46 = vadd.f32 %v1805_v59, %v1803_v20 }
 0x27f   :  { %v1811_v28 = vadd.f32 %v1809_v53, %v1807_v46  ;;  %v1815_v21 = vmul.f32 %v1813_v62, %v1813_v62 }
 0x281   :  { %v1814_v58 = vmul.f32 0.00048828125, %v1811_v28 }
 0x283   :  { %v1816_v34 = vsub.f32 %v1814_v58, %v1815_v21 }
 0x285   :  { %v1817_v54 = vmax.f32 %v1816_v34, 0.0 }
 0x287   :  { %v1819_v25 = vadd.f32 1e-05, %v1817_v54 }
 0x289   :  { %2948 = vrsqrt.f32 %v1819_v25 }
 0x293   :  { %v2949_v44 = vpop.eup %2948 }
 0x294   :  { %v1821_v4 = vmul.f32 %v2949_v44, %v1818_v43  ;;  %v5158_v44 = vld [vmem:[#allocation3_spill] sm:$0xff] }
 0x296   :  { %v1829_v35 = vrot.slane %v1821_v4, %v4048_v26  ;;  %v1823_v37 = vmul.f32 %v1821_v4, %v1813_v62 }
 0x298   :  { %1833 = vrot.lane.b32.xlu1 %v1829_v35, %s2954_s21  ;;  %1830 = vrot.lane.b32.xlu0 %v1829_v35, %s2955_s22  ;;  %v1824_v19 = vsub.f32 %v1822_v30, %v1823_v37  ;;  %v5160_v30 = vld [vmem:[#allocation2_spill] sm:$0xff]  ;;  %v5162_v37 = vld [vmem:[#allocation7_spill] sm:$0xff] }
 0x29a   :  { %v1848_v20 = vrot.slane %v1824_v19, %v4048_v26 }
 0x29c   :  { %1836 = vrot.lane.b32.xlu0 %v1829_v35, %s2956_s1  ;;  %1849 = vrot.lane.b32.xlu1 %v1848_v20, %s2955_s22  ;;  %v5161_v35 = vld [vmem:[#allocation4_spill] sm:$0xff] }
 0x2a0   :  { %1852 = vrot.lane.b32.xlu0 %v1848_v20, %s2954_s21  ;;  %1855 = vrot.lane.b32.xlu1 %v1848_v20, %s2956_s1 }
 0x30a   :  { %v1831_v48 = vpop.permute.xlu0 %1830  ;;  %v1834_v59 = vpop.permute.xlu1 %1833 }
 0x30b   :  { %v1840_v46 = vsel %vm1839_vm2, %v1821_v4, %v1831_v48  ;;  %v5159_v4 = vld [vmem:[#allocation5_spill] sm:$0xff]  ;;  %v5164_v48 = vld [vmem:[#allocation6_spill] sm:$0xff] }
 0x30c   :  { %v1841_v53 = vsel %vm780_vm0, %v1840_v46, %v1834_v59  ;;  %v5165_v46 = vld [vmem:[#allocation8_spill] sm:$0xff] }
 0x30e   :  { %v1837_v62 = vpop.permute.xlu0 %1836  ;;  %v1850_v58 = vpop.permute.xlu1 %1849 }
 0x30f   :  { %v1843_v28 = vsel %vm1842_vm3, %v1841_v53, %v1837_v62  ;;  %v1858_v55 = vsel %vm1839_vm2, %v1824_v19, %v1850_v58  ;;  %v5163_v19 = vld [vmem:[#allocation9_spill] sm:$0xff]  ;;  %v5166_v62 = vld [vmem:[#allocation11_spill] sm:$0xff] }
 0x310   :  { %v4058_v21 = vrot.slane %v1843_v28, %v4048_v26  ;;  %v5168_v58 = vld [vmem:[#allocation13_spill] sm:$0xff] }
 0x312   :  { %v4062_v34 = vmul.f32 %v4058_v21, %v3468_v9  ;;  %v4066_v54 = vmul.f32 %v4058_v21, %v3476_v17  ;;  %v4070_v25 = vmul.f32 %v4058_v21, %v3464_v1  ;;  %v4074_v36 = vmul.f32 %v4058_v21, %v3472_v13 }
 0x313   :  { %v4078_v43 = vmul.f32 %v4058_v21, %v3505_v57  ;;  %v4082_v9 = vmul.f32 %v4058_v21, %v3518_v22  ;;  %v4086_v17 = vmul.f32 %v4058_v21, %v3498_v3  ;;  %v4090_v1 = vmul.f32 %v4058_v21, %v3516_v18 }
 0x314   :  { %v4094_v13 = vmul.f32 %v4058_v21, %v3542_v2  ;;  %v4098_v57 = vmul.f32 %v4058_v21, %v3558_v23  ;;  %v4102_v22 = vmul.f32 %v4058_v21, %v3540_v49  ;;  %v4106_v3 = vmul.f32 %v4058_v21, %v3551_v14 }
 0x315   :  { %v4110_v18 = vmul.f32 %v4058_v21, %v3582_v47  ;;  %v4114_v2 = vmul.f32 %v4058_v21, %v3596_v39  ;;  %v4118_v23 = vmul.f32 %v4058_v21, %v3580_v6  ;;  %v4122_v49 = vmul.f32 %v4058_v21, %v3589_v29 }
 0x316   :  { %v4126_v14 = vmul.f32 %v4058_v21, %v5158_v44  ;;  %v4130_v47 = vmul.f32 %v4058_v21, %v5159_v4  ;;  %v4134_v39 = vmul.f32 %v4058_v21, %v5160_v30  ;;  %v4138_v6 = vmul.f32 %v4058_v21, %v5161_v35  ;;  %v5170_v4 = vld [vmem:[#allocation10_spill] sm:$0xff]  ;;  %v5172_v35 = vld [vmem:[#allocation12_spill] sm:$0xff] }
 0x317   :  { %v4142_v29 = vmul.f32 %v4058_v21, %v5162_v37  ;;  %v4146_v20 = vmul.f32 %v4058_v21, %v5163_v19  ;;  %v4150_v59 = vmul.f32 %v4058_v21, %v5164_v48  ;;  %v4154_v53 = vmul.f32 %v4058_v21, %v5165_v46  ;;  %v5174_v19 = vld [vmem:[#allocation14_spill] sm:$0xff]  ;;  %v5176_v46 = vld [vmem:[#allocation17_spill] sm:$0xff] }
 0x318   :  { %v4158_v28 = vmul.f32 %v4058_v21, %v5166_v62  ;;  %v4162_v44 = vmul.f32 %v4058_v21, %v5168_v58  ;;  %v4166_v30 = vmul.f32 %v4058_v21, %v5170_v4  ;;  %v4170_v37 = vmul.f32 %v4058_v21, %v5172_v35 }
 0x319   :  { %v4174_v48 = vmul.f32 %v4058_v21, %v5174_v19  ;;  %v4178_v62 = vmul.f32 %v4058_v21, %v5176_v46 }
 0x31a   :  { %5167 = vst [vmem:[#allocation3_spill] sm:$0xff] %v4158_v28  ;;  %5169 = vst [vmem:[#allocation5_spill] sm:$0xff] %v4162_v44  ;;  %v5178_v28 = vld [vmem:[#allocation15_spill] sm:$0xff]  ;;  %v5180_v44 = vld [vmem:[#allocation16_spill] sm:$0xff] }
 0x31b   :  { %5171 = vst [vmem:[#allocation2_spill] sm:$0xff] %v4166_v30  ;;  %5173 = vst [vmem:[#allocation4_spill] sm:$0xff] %v4170_v37  ;;  %v4182_v58 = vmul.f32 %v4058_v21, %v5178_v28  ;;  %v4186_v4 = vmul.f32 %v4058_v21, %v5180_v44  ;;  %v5182_v30 = vld [vmem:[#allocation18_spill] sm:$0xff]  ;;  %v5183_v37 = vld [vmem:[#allocation19_spill] sm:$0xff] }
 0x31c   :  { %5175 = vst [vmem:[#allocation7_spill] sm:$0xff] %v4174_v48  ;;  %5177 = vst [vmem:[#allocation9_spill] sm:$0xff] %v4178_v62  ;;  %v4190_v35 = vmul.f32 %v4058_v21, %v5182_v30  ;;  %v4194_v19 = vmul.f32 %v4058_v21, %v5183_v37  ;;  %v5184_v48 = vld [vmem:[#allocation20_spill] sm:$0xff]  ;;  %v5185_v62 = vld [vmem:[#allocation21_spill] sm:$0xff]  ;;  %v4214_v37 = vmul.f32 %v4058_v21, %v3805_v27 }
 0x31d   :  { %5179 = vst [vmem:[#allocation6_spill] sm:$0xff] %v4182_v58  ;;  %5181 = vst [vmem:[#allocation8_spill] sm:$0xff] %v4186_v4  ;;  %v4198_v46 = vmul.f32 %v4058_v21, %v5184_v48  ;;  %v4202_v28 = vmul.f32 %v4058_v21, %v5185_v62  ;;  %v5186_v58 = vld [vmem:[#allocation22_spill] sm:$0xff]  ;;  %v5187_v4 = vld [vmem:[#allocation23_spill] sm:$0xff]  ;;  %v4218_v48 = vmul.f32 %v4058_v21, %v3813_v51 }
 0x31e   :  { %v4206_v44 = vmul.f32 %v4058_v21, %v5186_v58  ;;  %v4210_v30 = vmul.f32 %v4058_v21, %v5187_v4  ;;  %v4222_v62 = vmul.f32 %v4058_v21, %v3838_v5  ;;  %v4226_v58 = vmul.f32 %v4058_v21, %v3848_v50 }
 0x31f   :  { %v4230_v4 = vmul.f32 %v4058_v21, %v3874_v15  ;;  %v4234_v27 = vmul.f32 %v4058_v21, %v3886_v10  ;;  %v4238_v51 = vmul.f32 %v4058_v21, %v3910_v60  ;;  %v4242_v5 = vmul.f32 %v4058_v21, %v3923_v33 }
 0x320   :  { %5188 = vst [vmem:[#allocation11_spill] sm:$0xff] %v4210_v30  ;;  %5189 = vst [vmem:[#allocation13_spill] sm:$0xff] %v4226_v58  ;;  %v1853_v30 = vpop.permute.xlu0 %1852  ;;  %v4246_v50 = vmul.f32 %v4058_v21, %v3945_v7  ;;  %v1856_v58 = vpop.permute.xlu1 %1855  ;;  %v4250_v15 = vmul.f32 %v4058_v21, %v3957_v11  ;;  %v4254_v10 = vmul.f32 %v4058_v21, %v3833_v42 }
 0x321   :  { %v4258_v60 = vmul.f32 %v4058_v21, %v3843_v0  ;;  %v4262_v33 = vmul.f32 %v4058_v21, %v3827_v41  ;;  %v4266_v7 = vmul.f32 %v4058_v21, %v3841_v61  ;;  %v4270_v11 = vmul.f32 %v4058_v21, %v3868_v63 }
 0x322   :  { %5190 = vst [vmem:[#allocation10_spill] sm:$0xff] %v4254_v10  ;;  %v4274_v42 = vmul.f32 %v4058_v21, %v3879_v38  ;;  %v1859_v10 = vsel %vm780_vm0, %v1858_v55, %v1853_v30  ;;  %v4279_v0 = vmul.f32 %v4058_v21, %v3862_v12  ;;  %v4283_v41 = vmul.f32 %v4058_v21, %v3877_v16 }
 0x323   :  { %v4287_v61 = vmul.f32 %v4058_v21, %v3905_v24  ;;  %v1860_v63 = vsel %vm1842_vm3, %v1859_v10, %v1856_v58  ;;  %v4292_v38 = vmul.f32 %v4058_v21, %v3915_v32  ;;  %v4296_v55 = vmul.f32 %v4058_v21, %v3901_v56  ;;  %v5199_v58 = vld [vmem:[#allocation2_spill] sm:$0xff]  ;;  %v5200_v10 = vld [vmem:[#allocation4_spill] sm:$0xff] }
 0x324   :  { %v4300_v12 = vmul.f32 %v4058_v21, %v3913_v31  ;;  %v4303_v16 = vrot.slane %v1860_v63, %v4048_v26  ;;  %v4307_v24 = vmul.f32 %v4058_v21, %v3941_v52  ;;  %v4311_v30 = vmul.f32 %v4058_v21, %v3950_v40  ;;  %v5201_v63 = vld [vmem:[#allocation7_spill] sm:$0xff] }
 0x325   :  { %v4315_v32 = vmul.f32 %v4058_v21, %v3935_v8  ;;  %v4319_v56 = vmul.f32 %v4058_v21, %v3948_v45 }
 0x326   :  { %v4323_v31 = vadd.f32 %v4303_v16, %v4062_v34  ;;  %v4327_v52 = vadd.f32 %v4303_v16, %v4066_v54  ;;  %v4331_v40 = vadd.f32 %v4303_v16, %v4070_v25  ;;  %v4335_v8 = vadd.f32 %v4303_v16, %v4074_v36 }
 0x327   :  { %v4339_v45 = vadd.f32 %v4303_v16, %v4078_v43  ;;  %v4343_v26 = vadd.f32 %v4303_v16, %v4082_v9  ;;  %v4347_v21 = vadd.f32 %v4303_v16, %v4086_v17  ;;  %v4351_v34 = vadd.f32 %v4303_v16, %v4090_v1 }
 0x328   :  { %v4355_v54 = vadd.f32 %v4303_v16, %v4094_v13  ;;  %v4359_v25 = vadd.f32 %v4303_v16, %v4098_v57  ;;  %v4363_v36 = vadd.f32 %v4303_v16, %v4102_v22  ;;  %v4367_v43 = vadd.f32 %v4303_v16, %v4106_v3 }
 0x329   :  { %v4371_v9 = vadd.f32 %v4303_v16, %v4110_v18  ;;  %v4375_v17 = vadd.f32 %v4303_v16, %v4114_v2  ;;  %v4379_v1 = vadd.f32 %v4303_v16, %v4118_v23  ;;  %v4383_v13 = vadd.f32 %v4303_v16, %v4122_v49 }
 0x32a   :  { %v4387_v57 = vadd.f32 %v4303_v16, %v4126_v14  ;;  %v4391_v22 = vadd.f32 %v4303_v16, %v4130_v47  ;;  %v4395_v3 = vadd.f32 %v4303_v16, %v4134_v39  ;;  %v4399_v18 = vadd.f32 %v4303_v16, %v4138_v6  ;;  %v5195_v47 = vld [vmem:[#allocation3_spill] sm:$0xff]  ;;  %v5197_v6 = vld [vmem:[#allocation5_spill] sm:$0xff] }
 0x32b   :  { %5191 = vst [vmem:[#allocation12_spill] sm:$0xff] %v4375_v17  ;;  %5192 = vst [vmem:[#allocation14_spill] sm:$0xff] %v4379_v1  ;;  %v4403_v2 = vadd.f32 %v4303_v16, %v4142_v29  ;;  %v4407_v23 = vadd.f32 %v4303_v16, %v4146_v20  ;;  %v4411_v49 = vadd.f32 %v4303_v16, %v4150_v59 }
 0x32c   :  { %v4415_v14 = vadd.f32 %v4303_v16, %v4154_v53  ;;  %v4419_v39 = vadd.f32 %v4303_v16, %v5195_v47  ;;  %v4423_v29 = vadd.f32 %v4303_v16, %v5197_v6  ;;  %v4427_v20 = vadd.f32 %v4303_v16, %v5199_v58 }
 0x32d   :  { %5193 = vst [vmem:[#allocation17_spill] sm:$0xff] %v4407_v23  ;;  %v4431_v59 = vadd.f32 %v4303_v16, %v5200_v10  ;;  %v4435_v53 = vadd.f32 %v4303_v16, %v5201_v63  ;;  %v4451_v10 = vadd.f32 %v4303_v16, %v4190_v35  ;;  %v4455_v63 = vadd.f32 %v4303_v16, %v4194_v19 }
 0x32e   :  { %5194 = vst [vmem:[#allocation15_spill] sm:$0xff] %v4415_v14  ;;  %5196 = vst [vmem:[#allocation16_spill] sm:$0xff] %v4419_v39  ;;  %v5202_v14 = vld [vmem:[#allocation9_spill] sm:$0xff]  ;;  %v5203_v39 = vld [vmem:[#allocation6_spill] sm:$0xff]  ;;  %v4475_v19 = vadd.f32 %v4303_v16, %v4214_v37  ;;  %v4495_v37 = vadd.f32 %v4303_v16, %v4234_v27 }
 0x32f   :  { %5198 = vst [vmem:[#allocation18_spill] sm:$0xff] %v4423_v29  ;;  %v4439_v47 = vadd.f32 %v4303_v16, %v5202_v14  ;;  %v4443_v6 = vadd.f32 %v4303_v16, %v5203_v39  ;;  %v5204_v29 = vld [vmem:[#allocation8_spill] sm:$0xff]  ;;  %v4459_v14 = vadd.f32 %v4303_v16, %v4198_v46  ;;  %v4463_v39 = vadd.f32 %v4303_v16, %v4202_v28 }
 0x330   :  { %v4447_v58 = vadd.f32 %v4303_v16, %v5204_v29  ;;  %v4467_v29 = vadd.f32 %v4303_v16, %v4206_v44  ;;  %v4479_v46 = vadd.f32 %v4303_v16, %v4218_v48  ;;  %v4483_v28 = vadd.f32 %v4303_v16, %v4222_v62 }
 0x331   :  { %5206 = vst [vmem:[#allocation20_spill] sm:$0xff] %v4463_v39  ;;  %v5208_v39 = vld [vmem:[#allocation13_spill] sm:$0xff]  ;;  %v4499_v48 = vadd.f32 %v4303_v16, %v4238_v51  ;;  %v4503_v62 = vadd.f32 %v4303_v16, %v4242_v5  ;;  %v4519_v51 = vadd.f32 %v4303_v16, %v4258_v60  ;;  %v4523_v5 = vadd.f32 %v4303_v16, %v4262_v33 }
 0x332   :  { %5205 = vst [vmem:[#allocation19_spill] sm:$0xff] %v4447_v58  ;;  %v5207_v58 = vld [vmem:[#allocation11_spill] sm:$0xff]  ;;  %v4487_v44 = vadd.f32 %v4303_v16, %v5208_v39  ;;  %v4507_v39 = vadd.f32 %v4303_v16, %v4246_v50  ;;  %v4527_v50 = vadd.f32 %v4303_v16, %v4266_v7  ;;  %v4539_v60 = vadd.f32 %v4303_v16, %v4279_v0 }
 0x333   :  { %v4471_v35 = vadd.f32 %v4303_v16, %v5207_v58  ;;  %v4491_v58 = vadd.f32 %v4303_v16, %v4230_v4  ;;  %v4511_v4 = vadd.f32 %v4303_v16, %v4250_v15  ;;  %5213 = vst [vmem:[#allocation3_spill] sm:$0xff] %v4519_v51  ;;  %5214 = vst [vmem:[#allocation5_spill] sm:$0xff] %v4523_v5 }
 0x334   :  { %5215 = vst [vmem:[#allocation2_spill] sm:$0xff] %v4527_v50  ;;  %v4531_v15 = vadd.f32 %v4303_v16, %v4270_v11  ;;  %v4543_v33 = vadd.f32 %v4303_v16, %v4283_v41  ;;  %v4547_v7 = vadd.f32 %v4303_v16, %v4287_v61  ;;  %v4551_v11 = vadd.f32 %v4303_v16, %v4292_v38 }
 0x335   :  { %5209 = vst [vmem:[#allocation21_spill] sm:$0xff] %v4491_v58  ;;  %5210 = vst [vmem:[#allocation22_spill] sm:$0xff] %v4511_v4  ;;  %v5211_v58 = vld [vmem:[#allocation10_spill] sm:$0xff]  ;;  %v4559_v0 = vadd.f32 %v4303_v16, %v4300_v12  ;;  %v4563_v41 = vadd.f32 %v4303_v16, %v4307_v24  ;;  %v4567_v61 = vadd.f32 %v4303_v16, %v4311_v30  ;;  %v5222_v17 = vld [vmem:[#allocation16_spill] sm:$0xff] }
 0x336   :  { %v4515_v27 = vadd.f32 %v4303_v16, %v5211_v58  ;;  %v4535_v58 = vadd.f32 %v4303_v16, %v4274_v42  ;;  %v4555_v42 = vadd.f32 %v4303_v16, %v4296_v55  ;;  %v4571_v38 = vadd.f32 %v4303_v16, %v4315_v32 }
 0x337   :  { %5217 = vst [vmem:[#allocation7_spill] sm:$0xff] %v4559_v0  ;;  %5218 = vst [vmem:[#allocation9_spill] sm:$0xff] %v4563_v41  ;;  %v4575_v55 = vadd.f32 %v4303_v16, %v4319_v56  ;;  %v5229_v51 = vmov %v4563_v41  ;;  %v5230_v5 = vmov %v4567_v61  ;;  %v5232_v41 = vmax.f32 %v4323_v31, 0.0 }
 0x338   :  { %5212 = vst [vmem:[#allocation23_spill] sm:$0xff] %v4515_v27  ;;  %5216 = vst [vmem:[#allocation4_spill] sm:$0xff] %v4555_v42  ;;  %v5221_v42 = vld [vmem:[#allocation15_spill] sm:$0xff]  ;;  %v5225_v30 = vld [vmem:[#allocation20_spill] sm:$0xff]  ;;  %v5228_v27 = vmov %v4559_v0  ;;  %v5231_v50 = vmov %v4571_v38  ;;  %v5235_v56 = vmax.f32 %v4335_v8, 0.0  ;;  %v5236_v0 = vmax.f32 %v4339_v45, 0.0 }
 0x339   :  { %5219 = vst [vmem:[#allocation6_spill] sm:$0xff] %v4567_v61  ;;  %5220 = vst [vmem:[#allocation8_spill] sm:$0xff] %v4571_v38  ;;  %v2597_v1 = vpack.c.bf16 %v5232_v41, %v5232_v41  ;;  %v5233_v61 = vmax.f32 %v4327_v52, 0.0  ;;  %v5234_v38 = vmax.f32 %v4331_v40, 0.0  ;;  %v5237_v31 = vmax.f32 %v4343_v26, 0.0 }
 0x33a   :  { %v2600_v23 = vpack.c.bf16 %v5235_v56, %v5235_v56  ;;  %v2601_v24 = vpack.c.bf16 %v5236_v0, %v5236_v0  ;;  %v5238_v52 = vmax.f32 %v4347_v21, 0.0  ;;  %v5239_v40 = vmax.f32 %v4351_v34, 0.0 }
 0x33b   :  { %v2598_v32 = vpack.c.bf16 %v5233_v61, %v5233_v61  ;;  %v2599_v16 = vpack.c.bf16 %v5234_v38, %v5234_v38  ;;  %v2602_v41 = vpack.c.bf16 %v5237_v31, %v5237_v31  ;;  %v5240_v8 = vmax.f32 %v4355_v54, 0.0  ;;  %2318 = vst.msk [vmem:[%s5094_s5] sm:$0xf] %vm2317_vm4, %v2597_v1  ;;  %v5247_v1 = vld [vmem:[#allocation14_spill] sm:$0xff] }
 0x33c   :  { %v5226_v12 = vld [vmem:[#allocation21_spill] sm:$0xff]  ;;  %v2603_v61 = vpack.c.bf16 %v5238_v52, %v5238_v52  ;;  %v2604_v38 = vpack.c.bf16 %v5239_v40, %v5239_v40  ;;  %v5241_v45 = vmax.f32 %v4359_v25, 0.0  ;;  %v5242_v26 = vmax.f32 %v4363_v36, 0.0  ;;  %2321 = vst.msk [vmem:[%s5094_s5 + $0xc] sm:$0xf] %vm2317_vm4, %v2600_v23  ;;  %v5245_v25 = vld [vmem:[#allocation12_spill] sm:$0xff] }
 0x33d   :  { %v2605_v56 = vpack.c.bf16 %v5240_v8, %v5240_v8  ;;  %v5243_v21 = vmax.f32 %v4367_v43, 0.0  ;;  %2319 = vst.msk [vmem:[%s5094_s5 + $0x4] sm:$0xf] %vm2317_vm4, %v2598_v32  ;;  %2320 = vst.msk [vmem:[%s5094_s5 + $0x8] sm:$0xf] %vm2317_vm4, %v2599_v16  ;;  %v5244_v34 = vmax.f32 %v4371_v9, 0.0 }
 0x33e   :  { %v2606_v0 = vpack.c.bf16 %v5241_v45, %v5241_v45  ;;  %v2607_v31 = vpack.c.bf16 %v5242_v26, %v5242_v26  ;;  %v5246_v36 = vmax.f32 %v5245_v25, 0.0  ;;  %v5248_v32 = vmax.f32 %v5247_v1, 0.0  ;;  %2322 = vst.msk [vmem:[%s5094_s5 + $0x10] sm:$0xf] %vm2317_vm4, %v2601_v24  ;;  %2323 = vst.msk [vmem:[%s5094_s5 + $0x14] sm:$0xf] %vm2317_vm4, %v2602_v41 }
 0x33f   :  { %v5227_v4 = vld [vmem:[#allocation4_spill] sm:$0xff]  ;;  %v2608_v52 = vpack.c.bf16 %v5243_v21, %v5243_v21  ;;  %v2609_v54 = vpack.c.bf16 %v5244_v34, %v5244_v34  ;;  %v5249_v8 = vmax.f32 %v4383_v13, 0.0  ;;  %2324 = vst.msk [vmem:[%s5094_s5 + $0x18] sm:$0xf] %vm2317_vm4, %v2603_v61  ;;  %2325 = vst.msk [vmem:[%s5094_s5 + $0x1c] sm:$0xf] %vm2317_vm4, %v2604_v38 }
 0x340   :  { %v2610_v43 = vpack.c.bf16 %v5246_v36, %v5246_v36  ;;  %v2611_v40 = vpack.c.bf16 %v5248_v32, %v5248_v32  ;;  %v5250_v9 = vmax.f32 %v4387_v57, 0.0  ;;  %v5251_v23 = vmax.f32 %v4391_v22, 0.0  ;;  %2326 = vst.msk [vmem:[%s5094_s5 + $0x20] sm:$0xf] %vm2317_vm4, %v2605_v56  ;;  %2327 = vst.msk [vmem:[%s5094_s5 + $0x24] sm:$0xf] %vm2317_vm4, %v2606_v0 }
 0x341   :  { %v2612_v16 = vpack.c.bf16 %v5249_v8, %v5249_v8  ;;  %v5252_v41 = vmax.f32 %v4395_v3, 0.0  ;;  %v5253_v26 = vmax.f32 %v4399_v18, 0.0  ;;  %2328 = vst.msk [vmem:[%s5094_s5 + $0x28] sm:$0xf] %vm2317_vm4, %v2607_v31  ;;  %2329 = vst.msk [vmem:[%s5094_s5 + $0x2c] sm:$0xf] %vm2317_vm4, %v2608_v52 }
 0x342   :  { %v2613_v13 = vpack.c.bf16 %v5250_v9, %v5250_v9  ;;  %v2614_v24 = vpack.c.bf16 %v5251_v23, %v5251_v23  ;;  %v5254_v57 = vmax.f32 %v4403_v2, 0.0  ;;  %v5255_v3 = vld [vmem:[#allocation17_spill] sm:$0xff]  ;;  %v5257_v56 = vmax.f32 %v4411_v49, 0.0  ;;  %2330 = vst.msk [vmem:[%s5094_s5 + $0x30] sm:$0xf] %vm2317_vm4, %v2609_v54  ;;  %v5267_v8 = vld [vmem:[#allocation19_spill] sm:$0xff] }
 0x343   :  { %v2615_v45 = vpack.c.bf16 %v5252_v41, %v5252_v41  ;;  %v2616_v61 = vpack.c.bf16 %v5253_v26, %v5253_v26  ;;  %v5256_v18 = vmax.f32 %v5255_v3, 0.0  ;;  %v5258_v21 = vmax.f32 %v5221_v42, 0.0  ;;  %2331 = vst.msk [vmem:[%s5094_s5 + $0x34] sm:$0xf] %vm2317_vm4, %v2610_v43  ;;  %2332 = vst.msk [vmem:[%s5094_s5 + $0x38] sm:$0xf] %vm2317_vm4, %v2611_v40 }
 0x344   :  { %v2617_v22 = vpack.c.bf16 %v5254_v57, %v5254_v57  ;;  %v2619_v0 = vpack.c.bf16 %v5257_v56, %v5257_v56  ;;  %2333 = vst.msk [vmem:[%s5094_s5 + $0x3c] sm:$0xf] %vm2317_vm4, %v2612_v16  ;;  %v5259_v2 = vmax.f32 %v5222_v17, 0.0  ;;  %v5260_v42 = vld [vmem:[#allocation18_spill] sm:$0xff]  ;;  %v5262_v54 = vmax.f32 %v4427_v20, 0.0 }
 0x345   :  { %v2618_v38 = vpack.c.bf16 %v5256_v18, %v5256_v18  ;;  %v2620_v31 = vpack.c.bf16 %v5258_v21, %v5258_v21  ;;  %v5261_v52 = vmax.f32 %v5260_v42, 0.0  ;;  %v5263_v36 = vmax.f32 %v4431_v59, 0.0  ;;  %2334 = vst.msk [vmem:[%s5094_s5 + $0x40] sm:$0xf] %vm2317_vm4, %v2613_v13  ;;  %2335 = vst.msk [vmem:[%s5094_s5 + $0x44] sm:$0xf] %vm2317_vm4, %v2614_v24 }
 0x346   :  { %v2621_v49 = vpack.c.bf16 %v5259_v2, %v5259_v2  ;;  %v2623_v25 = vpack.c.bf16 %v5262_v54, %v5262_v54  ;;  %2336 = vst.msk [vmem:[%s5094_s5 + $0x48] sm:$0xf] %vm2317_vm4, %v2615_v45  ;;  %2337 = vst.msk [vmem:[%s5094_s5 + $0x4c] sm:$0xf] %vm2317_vm4, %v2616_v61  ;;  %v5264_v17 = vmax.f32 %v4435_v53, 0.0  ;;  %v5265_v59 = vmax.f32 %v4439_v47, 0.0 }
 0x347   :  { %v2622_v34 = vpack.c.bf16 %v5261_v52, %v5261_v52  ;;  %v2624_v43 = vpack.c.bf16 %v5263_v36, %v5263_v36  ;;  %v5266_v32 = vmax.f32 %v4443_v6, 0.0  ;;  %v5268_v16 = vmax.f32 %v5267_v8, 0.0  ;;  %2338 = vst.msk [vmem:[%s5094_s5 + $0x50] sm:$0xf] %vm2317_vm4, %v2617_v22  ;;  %2339 = vst.msk [vmem:[%s5094_s5 + $0x54] sm:$0xf] %vm2317_vm4, %v2618_v38 }
 0x348   :  { %v2625_v20 = vpack.c.bf16 %v5264_v17, %v5264_v17  ;;  %v2626_v1 = vpack.c.bf16 %v5265_v59, %v5265_v59  ;;  %2340 = vst.msk [vmem:[%s5094_s5 + $0x58] sm:$0xf] %vm2317_vm4, %v2619_v0  ;;  %2341 = vst.msk [vmem:[%s5094_s5 + $0x5c] sm:$0xf] %vm2317_vm4, %v2620_v31  ;;  %v5269_v53 = vmax.f32 %v4451_v10, 0.0  ;;  %v5270_v6 = vmax.f32 %v4455_v63, 0.0 }
 0x349   :  { %v2627_v40 = vpack.c.bf16 %v5266_v32, %v5266_v32  ;;  %v2628_v9 = vpack.c.bf16 %v5268_v16, %v5268_v16  ;;  %v5271_v23 = vmax.f32 %v4459_v14, 0.0  ;;  %v5272_v41 = vmax.f32 %v5225_v30, 0.0  ;;  %2342 = vst.msk [vmem:[%s5094_s5 + $0x60] sm:$0xf] %vm2317_vm4, %v2621_v49  ;;  %2343 = vst.msk [vmem:[%s5094_s5 + $0x64] sm:$0xf] %vm2317_vm4, %v2622_v34 }
 0x34a   :  { %v2629_v47 = vpack.c.bf16 %v5269_v53, %v5269_v53  ;;  %v2630_v13 = vpack.c.bf16 %v5270_v6, %v5270_v6  ;;  %2344 = vst.msk [vmem:[%s5094_s5 + $0x68] sm:$0xf] %vm2317_vm4, %v2623_v25  ;;  %2345 = vst.msk [vmem:[%s5094_s5 + $0x6c] sm:$0xf] %vm2317_vm4, %v2624_v43  ;;  %v5273_v10 = vmax.f32 %v4467_v29, 0.0  ;;  %v5274_v14 = vmax.f32 %v4471_v35, 0.0 }
 0x34b   :  { %v2631_v24 = vpack.c.bf16 %v5271_v23, %v5271_v23  ;;  %v2632_v45 = vpack.c.bf16 %v5272_v41, %v5272_v41  ;;  %v5275_v26 = vmax.f32 %v4475_v19, 0.0  ;;  %v5276_v57 = vmax.f32 %v4479_v46, 0.0  ;;  %2346 = vst.msk [vmem:[%s5094_s5 + $0x70] sm:$0xf] %vm2317_vm4, %v2625_v20  ;;  %2347 = vst.msk [vmem:[%s5094_s5 + $0x74] sm:$0xf] %vm2317_vm4, %v2626_v1 }
 0x34c   :  { %v2633_v63 = vpack.c.bf16 %v5273_v10, %v5273_v10  ;;  %v2634_v30 = vpack.c.bf16 %v5274_v14, %v5274_v14  ;;  %2348 = vst.msk [vmem:[%s5094_s5 + $0x78] sm:$0xf] %vm2317_vm4, %v2627_v40  ;;  %2349 = vst.msk [vmem:[%s5094_s5 + $0x7c] sm:$0xf] %vm2317_vm4, %v2628_v9  ;;  %v5277_v29 = vmax.f32 %v4483_v28, 0.0  ;;  %v5278_v19 = vmax.f32 %v4487_v44, 0.0 }
 0x34d   :  { %v2635_v61 = vpack.c.bf16 %v5275_v26, %v5275_v26  ;;  %v2636_v22 = vpack.c.bf16 %v5276_v57, %v5276_v57  ;;  %v5279_v3 = vmax.f32 %v5226_v12, 0.0  ;;  %v5280_v38 = vmax.f32 %v4495_v37, 0.0  ;;  %2350 = vst.msk [vmem:[%s5094_s5 + $0x80] sm:$0xf] %vm2317_vm4, %v2629_v47  ;;  %2351 = vst.msk [vmem:[%s5094_s5 + $0x84] sm:$0xf] %vm2317_vm4, %v2630_v13 }
 0x34e   :  { %v2637_v35 = vpack.c.bf16 %v5277_v29, %v5277_v29  ;;  %v2638_v46 = vpack.c.bf16 %v5278_v19, %v5278_v19  ;;  %2352 = vst.msk [vmem:[%s5094_s5 + $0x88] sm:$0xf] %vm2317_vm4, %v2631_v24  ;;  %2353 = vst.msk [vmem:[%s5094_s5 + $0x8c] sm:$0xf] %vm2317_vm4, %v2632_v45  ;;  %v5281_v28 = vmax.f32 %v4499_v48, 0.0  ;;  %v5282_v37 = vmax.f32 %v4503_v62, 0.0 }
 0x34f   :  { %v2639_v18 = vpack.c.bf16 %v5279_v3, %v5279_v3  ;;  %v2640_v56 = vpack.c.bf16 %v5280_v38, %v5280_v38  ;;  %v5283_v0 = vmax.f32 %v4507_v39, 0.0  ;;  %v5284_v31 = vld [vmem:[#allocation22_spill] sm:$0xff]  ;;  %2354 = vst.msk [vmem:[%s5094_s5 + $0x90] sm:$0xf] %vm2317_vm4, %v2633_v63  ;;  %2355 = vst.msk [vmem:[%s5094_s5 + $0x94] sm:$0xf] %vm2317_vm4, %v2634_v30 }
 0x350   :  { %v2641_v44 = vpack.c.bf16 %v5281_v28, %v5281_v28  ;;  %v2642_v12 = vpack.c.bf16 %v5282_v37, %v5282_v37  ;;  %v5285_v2 = vmax.f32 %v5284_v31, 0.0  ;;  %2356 = vst.msk [vmem:[%s5094_s5 + $0x98] sm:$0xf] %vm2317_vm4, %v2635_v61  ;;  %2357 = vst.msk [vmem:[%s5094_s5 + $0x9c] sm:$0xf] %vm2317_vm4, %v2636_v22  ;;  %v5286_v48 = vld [vmem:[#allocation23_spill] sm:$0xff] }
 0x351   :  { %v2643_v21 = vpack.c.bf16 %v5283_v0, %v5283_v0  ;;  %v5287_v62 = vmax.f32 %v5286_v48, 0.0  ;;  %v5288_v42 = vld [vmem:[#allocation3_spill] sm:$0xff]  ;;  %v5290_v54 = vld [vmem:[#allocation5_spill] sm:$0xff]  ;;  %v5292_v43 = vld [vmem:[#allocation2_spill] sm:$0xff]  ;;  %2358 = vst.msk [vmem:[%s5094_s5 + $0xa0] sm:$0xf] %vm2317_vm4, %v2637_v35 }
 0x352   :  { %v2644_v49 = vpack.c.bf16 %v5285_v2, %v5285_v2  ;;  %v5289_v52 = vmax.f32 %v5288_v42, 0.0  ;;  %v5291_v25 = vmax.f32 %v5290_v54, 0.0  ;;  %v5293_v17 = vmax.f32 %v5292_v43, 0.0  ;;  %2359 = vst.msk [vmem:[%s5094_s5 + $0xa4] sm:$0xf] %vm2317_vm4, %v2638_v46 }
 0x353   :  { %v2645_v39 = vpack.c.bf16 %v5287_v62, %v5287_v62  ;;  %2360 = vst.msk [vmem:[%s5094_s5 + $0xa8] sm:$0xf] %vm2317_vm4, %v2639_v18  ;;  %2361 = vst.msk [vmem:[%s5094_s5 + $0xac] sm:$0xf] %vm2317_vm4, %v2640_v56  ;;  %v5294_v59 = vmax.f32 %v4531_v15, 0.0  ;;  %v5295_v32 = vmax.f32 %v4535_v58, 0.0 }
 0x354   :  { %v2646_v34 = vpack.c.bf16 %v5289_v52, %v5289_v52  ;;  %v2647_v36 = vpack.c.bf16 %v5291_v25, %v5291_v25  ;;  %v2648_v20 = vpack.c.bf16 %v5293_v17, %v5293_v17  ;;  %v5296_v8 = vmax.f32 %v4539_v60, 0.0  ;;  %2362 = vst.msk [vmem:[%s5094_s5 + $0xb0] sm:$0xf] %vm2317_vm4, %v2641_v44  ;;  %2363 = vst.msk [vmem:[%s5094_s5 + $0xb4] sm:$0xf] %vm2317_vm4, %v2642_v12 }
 0x355   :  { %v2649_v1 = vpack.c.bf16 %v5294_v59, %v5294_v59  ;;  %v2650_v40 = vpack.c.bf16 %v5295_v32, %v5295_v32  ;;  %v5297_v9 = vmax.f32 %v4543_v33, 0.0  ;;  %2364 = vst.msk [vmem:[%s5094_s5 + $0xb8] sm:$0xf] %vm2317_vm4, %v2643_v21  ;;  %2365 = vst.msk [vmem:[%s5094_s5 + $0xbc] sm:$0xf] %vm2317_vm4, %v2644_v49  ;;  %v5298_v15 = vmax.f32 %v4547_v7, 0.0 }
 0x356   :  { %v2651_v16 = vpack.c.bf16 %v5296_v8, %v5296_v8  ;;  %v5299_v60 = vmax.f32 %v4551_v11, 0.0  ;;  %v5300_v47 = vmax.f32 %v5227_v4, 0.0  ;;  %v5301_v13 = vmax.f32 %v5228_v27, 0.0  ;;  %2366 = vst.msk [vmem:[%s5094_s5 + $0xc0] sm:$0xf] %vm2317_vm4, %v2645_v39 }
 0x357   :  { %v2652_v53 = vpack.c.bf16 %v5297_v9, %v5297_v9  ;;  %v2653_v58 = vpack.c.bf16 %v5298_v15, %v5298_v15  ;;  %2367 = vst.msk [vmem:[%s5094_s5 + $0xc4] sm:$0xf] %vm2317_vm4, %v2646_v34  ;;  %2368 = vst.msk [vmem:[%s5094_s5 + $0xc8] sm:$0xf] %vm2317_vm4, %v2647_v36  ;;  %v5302_v4 = vmax.f32 %v5229_v51, 0.0  ;;  %v5303_v7 = vmax.f32 %v5230_v5, 0.0 }
 0x358   :  { %v2654_v33 = vpack.c.bf16 %v5299_v60, %v5299_v60  ;;  %v2655_v6 = vpack.c.bf16 %v5300_v47, %v5300_v47  ;;  %v2656_v23 = vpack.c.bf16 %v5301_v13, %v5301_v13  ;;  %2369 = vst.msk [vmem:[%s5094_s5 + $0xcc] sm:$0xf] %vm2317_vm4, %v2648_v20  ;;  %v5304_v24 = vmax.f32 %v5231_v50, 0.0  ;;  %2370 = vst.msk [vmem:[%s5094_s5 + $0xd0] sm:$0xf] %vm2317_vm4, %v2649_v1 }
 0x359   :  { %v2657_v27 = vpack.c.bf16 %v5302_v4, %v5302_v4  ;;  %v2658_v11 = vpack.c.bf16 %v5303_v7, %v5303_v7  ;;  %v5305_v45 = vmax.f32 %v4575_v55, 0.0  ;;  %2371 = vst.msk [vmem:[%s5094_s5 + $0xd4] sm:$0xf] %vm2317_vm4, %v2650_v40  ;;  %2372 = vst.msk [vmem:[%s5094_s5 + $0xd8] sm:$0xf] %vm2317_vm4, %v2651_v16 }
 0x35a   :  { %v2659_v41 = vpack.c.bf16 %v5304_v24, %v5304_v24  ;;  %2373 = vst.msk [vmem:[%s5094_s5 + $0xdc] sm:$0xf] %vm2317_vm4, %v2652_v53  ;;  %2374 = vst.msk [vmem:[%s5094_s5 + $0xe0] sm:$0xf] %vm2317_vm4, %v2653_v58 }
 0x35b   :  { %v2660_v10 = vpack.c.bf16 %v5305_v45, %v5305_v45  ;;  %2375 = vst.msk [vmem:[%s5094_s5 + $0xe4] sm:$0xf] %vm2317_vm4, %v2654_v33  ;;  %2376 = vst.msk [vmem:[%s5094_s5 + $0xe8] sm:$0xf] %vm2317_vm4, %v2655_v6 }
 0x35c   :  { %2377 = vst.msk [vmem:[%s5094_s5 + $0xec] sm:$0xf] %vm2317_vm4, %v2656_v23  ;;  %2378 = vst.msk [vmem:[%s5094_s5 + $0xf0] sm:$0xf] %vm2317_vm4, %v2657_v27 }
 0x35d   :  { %2379 = vst.msk [vmem:[%s5094_s5 + $0xf4] sm:$0xf] %vm2317_vm4, %v2658_v11  ;;  %2380 = vst.msk [vmem:[%s5094_s5 + $0xf8] sm:$0xf] %vm2317_vm4, %v2659_v41 }
 0x35e   :  { %2381 = vst.msk [vmem:[%s5094_s5 + $0xfc] sm:$0xf] %vm2317_vm4, %v2660_v10 }

// kernel: generator_forward.9
= control target key start
LH: loop header
LB: loop body
LE: loop exit
PB: predicated region body
PF: predicated region fallthrough
CT: control target
= control target key end

     0   :  { %s1587_s12 = smov 0   ;;  %s1871_s0 = inlined_call_operand.vmem [shape: bf16[2048,144], index: 0, kind: input, shape index: {}]   ;;  %s1872_s1 = inlined_call_operand.vmem [shape: bf16[144,128], index: 1, kind: input, shape index: {}]   ;;  %s1873_s2 = inlined_call_operand.vmem [shape: f32[1,128], index: 2, kind: input, shape index: {}]   ;;  %s1874_s3 = inlined_call_operand.vmem [shape: f32[2048,128], index: 3, kind: output, shape index: {}]  }
   0x1 LB: > { %s1179_s13 = sadd.s32 4294967295, %s1564_s12   ;;  %p1183_p0 = scmp.ge.s32.totalorder %s1564_s12, 1  ;;  %s1564_s12 = sphi %s1587_s12, %s13_s12  }
   0x2   : > { %p139_p1 = scmp.lt.s32.totalorder %s1564_s12, 5 }
   0x4   : > { %p140_p2 = pnand %p1183_p0, %p139_p1 }
   0x5   : > { %v1325_v0 = vld [vmem:[%s1872_s1] sm:$0xff] (!%p140_p2)   ;;  %v1566_v1 = vmov (!%p140_p2), 0   ;;  %s1184_s16 = sshll.u32 (!%p140_p2), %s1179_s13, 6  ;;  %v1326_v2 = vld [vmem:[%s1872_s1 + $0x8] sm:$0xff] (!%p140_p2)   ;;  %v1327_v3 = vld [vmem:[%s1872_s1 + $0x10] sm:$0xff] (!%p140_p2)   ;;  %vm609_vm0 = vcmask (!%p140_p2), 130048  }
   0x6   : > { %143 = sbr.rel (%p140_p2) target bundleno = 391 (0x187), region = 32  ;;  %706 = vmatprep.subr.bf16.mxu0 (!%p140_p2), %v1566_v1  ;;  %1298 = vmatprep.subr.bf16.mxu1 (!%p140_p2), %v1566_v1  ;;  %p165_p3 = scmp.lt.s32.totalorder (!%p140_p2), %s1184_s16, 255  ;;  %v1328_v4 = vld [vmem:[%s1872_s1 + $0x18] sm:$0xff] (!%p140_p2)   ;;  %v1329_v7 = vld [vmem:[%s1872_s1 + $0x20] sm:$0xff] (!%p140_p2)   ;;  %v1330_v8 = vld [vmem:[%s1872_s1 + $0x28] sm:$0xff] (!%p140_p2)  }
   0x7   : > { %707 = vmatpush1.bf16.msra.mxu0 (!%p140_p2), %v1325_v0  ;;  %1307 = vmatpush1.bf16.msra.mxu1 (!%p140_p2), %v1325_v0  ;;  %v1331_v9 = vld [vmem:[%s1872_s1 + $0x30] sm:$0xff] (!%p140_p2)   ;;  %v1332_v10 = vld [vmem:[%s1872_s1 + $0x38] sm:$0xff] (!%p140_p2)   ;;  %v1333_v11 = vld [vmem:[%s1872_s1 + $0x40] sm:$0xff] (!%p140_p2)  }
   0x8   : > { %708 = vmatprep.subr.bf16.mxu0 (!%p140_p2), %v1566_v1  ;;  %1299 = vmatprep.subr.bf16.mxu1 (!%p140_p2), %v1566_v1 }
   0xb   : > { %709 = vmatpush1.bf16.msra.mxu0 (!%p140_p2), %v1326_v2  ;;  %1308 = vmatpush1.bf16.msra.mxu1 (!%p140_p2), %v1326_v2 }
   0xc   : > { %710 = vmatprep.subr.bf16.mxu0 (!%p140_p2), %v1566_v1  ;;  %1300 = vmatprep.subr.bf16.mxu1 (!%p140_p2), %v1566_v1 }
   0xd   : > { %s1876_s16 = smov (!%p165_p3, %s1184_s16), 255 }
   0xe   : > { %s1297_s21 = sshll.u32 %s1876_s16, 3 }
   0xf   : > { %s1612_s24 = scalar_lea.vmem %s1871_s0, %s1297_s21  ;;  %711 = vmatpush1.bf16.msra.mxu0 %v1327_v3  ;;  %1309 = vmatpush1.bf16.msra.mxu1 %v1327_v3  ;;  %s1744_s15 = scalar_lea.vmem %s1874_s3, %s1297_s21 }
  0x10   : > { %v1336_v5 = vld [vmem:[%s1612_s24 + $0x4] ss:$8 sps:$4 sm:$0xff]   ;;  %712 = vmatprep.subr.bf16.mxu0 %v1566_v1  ;;  %1301 = vmatprep.subr.bf16.mxu1 %v1566_v1  ;;  %v1334_v12 = vld [vmem:[%s1612_s24] ss:$8 sps:$4 sm:$0xff]   ;;  %v1340_v14 = vld [vmem:[%s1612_s24 + $0x14] ss:$8 sps:$4 sm:$0xff]  }
  0x11   : > { %v1339_v6 = vld [vmem:[%s1612_s24 + $0x104] ss:$8 sps:$4 sm:$0xff]   ;;  %1263 = vmatprep.mubr.msk.bf16.mxu0 %vm609_vm0, %v1336_v5  ;;  %v1337_v13 = vld [vmem:[%s1612_s24 + $0x100] ss:$8 sps:$4 sm:$0xff]   ;;  %v1342_v15 = vld [vmem:[%s1612_s24 + $0x114] ss:$8 sps:$4 sm:$0xff]  }
  0x12   : > { %1279 = vmatprep.mubr.msk.bf16.mxu1 %vm609_vm0, %v1339_v6  ;;  %v1344_v16 = vld [vmem:[%s1612_s24 + $0x10] ss:$8 sps:$4 sm:$0xff]   ;;  %v1346_v18 = vld [vmem:[%s1612_s24 + $0x24] ss:$8 sps:$4 sm:$0xff]   ;;  %v1350_v20 = vld [vmem:[%s1612_s24 + $0x20] ss:$8 sps:$4 sm:$0xff]  }
  0x13   : > { %713 = vmatpush1.bf16.msra.mxu0 %v1328_v4  ;;  %1310 = vmatpush1.bf16.msra.mxu1 %v1328_v4  ;;  %v1345_v17 = vld [vmem:[%s1612_s24 + $0x110] ss:$8 sps:$4 sm:$0xff]   ;;  %v1348_v19 = vld [vmem:[%s1612_s24 + $0x124] ss:$8 sps:$4 sm:$0xff]   ;;  %v1351_v21 = vld [vmem:[%s1612_s24 + $0x120] ss:$8 sps:$4 sm:$0xff]  }
  0x14   : > { %714 = vmatprep.subr.bf16.mxu0 %v1566_v1  ;;  %1302 = vmatprep.subr.bf16.mxu1 %v1566_v1  ;;  %v1352_v22 = vld [vmem:[%s1612_s24 + $0x34] ss:$8 sps:$4 sm:$0xff]   ;;  %v1356_v24 = vld [vmem:[%s1612_s24 + $0x30] ss:$8 sps:$4 sm:$0xff]   ;;  %v1358_v26 = vld [vmem:[%s1612_s24 + $0x44] ss:$8 sps:$4 sm:$0xff]  }
  0x15   : > { %v1354_v23 = vld [vmem:[%s1612_s24 + $0x134] ss:$8 sps:$4 sm:$0xff]   ;;  %v1357_v25 = vld [vmem:[%s1612_s24 + $0x130] ss:$8 sps:$4 sm:$0xff]   ;;  %v1360_v27 = vld [vmem:[%s1612_s24 + $0x144] ss:$8 sps:$4 sm:$0xff]  }
  0x16   : > { %v1362_v28 = vld [vmem:[%s1612_s24 + $0x40] ss:$8 sps:$4 sm:$0xff]   ;;  %v1364_v30 = vld [vmem:[%s1612_s24 + $0x54] ss:$8 sps:$4 sm:$0xff]   ;;  %v1368_v32 = vld [vmem:[%s1612_s24 + $0x50] ss:$8 sps:$4 sm:$0xff]  }
  0x17   : > { %715 = vmatpush1.bf16.msra.mxu0 %v1329_v7  ;;  %1311 = vmatpush1.bf16.msra.mxu1 %v1329_v7  ;;  %v1363_v29 = vld [vmem:[%s1612_s24 + $0x140] ss:$8 sps:$4 sm:$0xff]   ;;  %v1366_v31 = vld [vmem:[%s1612_s24 + $0x154] ss:$8 sps:$4 sm:$0xff]   ;;  %v1369_v33 = vld [vmem:[%s1612_s24 + $0x150] ss:$8 sps:$4 sm:$0xff]  }
  0x18   : > { %716 = vmatprep.subr.bf16.mxu0 %v1566_v1  ;;  %1303 = vmatprep.subr.bf16.mxu1 %v1566_v1  ;;  %v1370_v34 = vld [vmem:[%s1612_s24 + $0x64] ss:$8 sps:$4 sm:$0xff]   ;;  %v1374_v36 = vld [vmem:[%s1612_s24 + $0x60] ss:$8 sps:$4 sm:$0xff]   ;;  %v1376_v38 = vld [vmem:[%s1612_s24 + $0x74] ss:$8 sps:$4 sm:$0xff]  }
  0x19   : > { %v1372_v35 = vld [vmem:[%s1612_s24 + $0x164] ss:$8 sps:$4 sm:$0xff]   ;;  %v1375_v37 = vld [vmem:[%s1612_s24 + $0x160] ss:$8 sps:$4 sm:$0xff]   ;;  %v1378_v39 = vld [vmem:[%s1612_s24 + $0x174] ss:$8 sps:$4 sm:$0xff]  }
  0x1a   : > { %v1380_v40 = vld [vmem:[%s1612_s24 + $0x70] ss:$8 sps:$4 sm:$0xff]   ;;  %v1382_v42 = vld [vmem:[%s1612_s24 + $0x84] ss:$8 sps:$4 sm:$0xff]   ;;  %v1386_v44 = vld [vmem:[%s1612_s24 + $0x80] ss:$8 sps:$4 sm:$0xff]  }
  0x1b   : > { %717 = vmatpush1.bf16.msra.mxu0 %v1330_v8  ;;  %1312 = vmatpush1.bf16.msra.mxu1 %v1330_v8  ;;  %v1381_v41 = vld [vmem:[%s1612_s24 + $0x170] ss:$8 sps:$4 sm:$0xff]   ;;  %v1384_v43 = vld [vmem:[%s1612_s24 + $0x184] ss:$8 sps:$4 sm:$0xff]   ;;  %v1387_v45 = vld [vmem:[%s1612_s24 + $0x180] ss:$8 sps:$4 sm:$0xff]  }
  0x1c   : > { %718 = vmatprep.subr.bf16.mxu0 %v1566_v1  ;;  %1304 = vmatprep.subr.bf16.mxu1 %v1566_v1  ;;  %v1388_v46 = vld [vmem:[%s1612_s24 + $0x94] ss:$8 sps:$4 sm:$0xff]   ;;  %v1392_v48 = vld [vmem:[%s1612_s24 + $0x90] ss:$8 sps:$4 sm:$0xff]   ;;  %v1394_v50 = vld [vmem:[%s1612_s24 + $0xa4] ss:$8 sps:$4 sm:$0xff]  }
  0x1d   : > { %v1390_v47 = vld [vmem:[%s1612_s24 + $0x194] ss:$8 sps:$4 sm:$0xff]   ;;  %v1393_v49 = vld [vmem:[%s1612_s24 + $0x190] ss:$8 sps:$4 sm:$0xff]   ;;  %v1396_v51 = vld [vmem:[%s1612_s24 + $0x1a4] ss:$8 sps:$4 sm:$0xff]  }
  0x1e   : > { %v1398_v52 = vld [vmem:[%s1612_s24 + $0xa0] ss:$8 sps:$4 sm:$0xff]   ;;  %v1400_v54 = vld [vmem:[%s1612_s24 + $0xb4] ss:$8 sps:$4 sm:$0xff]   ;;  %v1404_v56 = vld [vmem:[%s1612_s24 + $0xb0] ss:$8 sps:$4 sm:$0xff]  }
  0x1f   : > { %719 = vmatpush1.bf16.msra.mxu0 %v1331_v9  ;;  %1313 = vmatpush1.bf16.msra.mxu1 %v1331_v9  ;;  %v1399_v53 = vld [vmem:[%s1612_s24 + $0x1a0] ss:$8 sps:$4 sm:$0xff]   ;;  %v1402_v55 = vld [vmem:[%s1612_s24 + $0x1b4] ss:$8 sps:$4 sm:$0xff]   ;;  %v1405_v57 = vld [vmem:[%s1612_s24 + $0x1b0] ss:$8 sps:$4 sm:$0xff]  }
  0x20   : > { %720 = vmatprep.subr.bf16.mxu0 %v1566_v1  ;;  %1305 = vmatprep.subr.bf16.mxu1 %v1566_v1  ;;  %v1406_v58 = vld [vmem:[%s1612_s24 + $0xc4] ss:$8 sps:$4 sm:$0xff]   ;;  %v1410_v60 = vld [vmem:[%s1612_s24 + $0xc0] ss:$8 sps:$4 sm:$0xff]   ;;  %v1412_v62 = vld [vmem:[%s1612_s24 + $0xd4] ss:$8 sps:$4 sm:$0xff]  }
  0x21   : > { %v1408_v59 = vld [vmem:[%s1612_s24 + $0x1c4] ss:$8 sps:$4 sm:$0xff]   ;;  %v1411_v61 = vld [vmem:[%s1612_s24 + $0x1c0] ss:$8 sps:$4 sm:$0xff]   ;;  %v1414_v63 = vld [vmem:[%s1612_s24 + $0x1d4] ss:$8 sps:$4 sm:$0xff]  }
  0x22   : > { %v1416_v0 = vld [vmem:[%s1612_s24 + $0xd0] ss:$8 sps:$4 sm:$0xff]   ;;  %v1418_v2 = vld [vmem:[%s1612_s24 + $0xe4] ss:$8 sps:$4 sm:$0xff]   ;;  %v1422_v4 = vld [vmem:[%s1612_s24 + $0xe0] ss:$8 sps:$4 sm:$0xff]  }
  0x23   : > { %721 = vmatpush1.bf16.msra.mxu0 %v1332_v10  ;;  %1314 = vmatpush1.bf16.msra.mxu1 %v1332_v10  ;;  %v1420_v3 = vld [vmem:[%s1612_s24 + $0x1e4] ss:$8 sps:$4 sm:$0xff]   ;;  %v1423_v5 = vld [vmem:[%s1612_s24 + $0x1e0] ss:$8 sps:$4 sm:$0xff]   ;;  %v1424_v6 = vld [vmem:[%s1612_s24 + $0xf4] ss:$8 sps:$4 sm:$0xff]  }
  0x24   : > { %722 = vmatprep.subr.bf16.mxu0 %v1566_v1  ;;  %1306 = vmatprep.subr.bf16.mxu1 %v1566_v1  ;;  %v1417_v1 = vld [vmem:[%s1612_s24 + $0x1d0] ss:$8 sps:$4 sm:$0xff]   ;;  %v1426_v7 = vld [vmem:[%s1612_s24 + $0x1f4] ss:$8 sps:$4 sm:$0xff]   ;;  %v1731_v10 = vld [vmem:[%s1873_s2] ss:$0 sm:$0xff] }
  0x25   : > { %v1428_v8 = vld [vmem:[%s1612_s24 + $0xf0] ss:$8 sps:$4 sm:$0xff]  }
  0x26   : > { %v1429_v9 = vld [vmem:[%s1612_s24 + $0x1f0] ss:$8 sps:$4 sm:$0xff]  }
  0x27   : > { %723 = vmatpush1.bf16.msra.mxu0 %v1333_v11  ;;  %1315 = vmatpush1.bf16.msra.mxu1 %v1333_v11 }
  0x2a   : > { %739 = vmatmul.mubr.bf16.vlgmr.msra.gmra.mrb[0].mxu0 %v1334_v12  ;;  %867 = vmatmul.mubr.bf16.vlgmr.msra.gmra.mrb[0].mxu1 %v1337_v13 }
  0x2b   : > { %1264 = vmatprep.mubr.msk.bf16.mxu0 %vm609_vm0, %v1340_v14  ;;  %1280 = vmatprep.mubr.msk.bf16.mxu1 %vm609_vm0, %v1342_v15 }
  0x32   : > { %747 = vmatmul.mubr.bf16.gmra.mrb[4].mxu0 %v1344_v16  ;;  %875 = vmatmul.mubr.bf16.gmra.mrb[4].mxu1 %v1345_v17 }
  0x33   : > { %1265 = vmatprep.mubr.msk.bf16.mxu0 %vm609_vm0, %v1346_v18  ;;  %1281 = vmatprep.mubr.msk.bf16.mxu1 %vm609_vm0, %v1348_v19 }
  0x3a   : > { %755 = vmatmul.mubr.bf16.gmra.mrb[8].mxu0 %v1350_v20  ;;  %883 = vmatmul.mubr.bf16.gmra.mrb[8].mxu1 %v1351_v21 }
  0x3b   : > { %1266 = vmatprep.mubr.msk.bf16.mxu0 %vm609_vm0, %v1352_v22  ;;  %1282 = vmatprep.mubr.msk.bf16.mxu1 %vm609_vm0, %v1354_v23 }
  0x42   : > { %763 = vmatmul.mubr.bf16.gmra.mrb[12].mxu0 %v1356_v24  ;;  %891 = vmatmul.mubr.bf16.gmra.mrb[12].mxu1 %v1357_v25 }
  0x43   : > { %1267 = vmatprep.mubr.msk.bf16.mxu0 %vm609_vm0, %v1358_v26  ;;  %1283 = vmatprep.mubr.msk.bf16.mxu1 %vm609_vm0, %v1360_v27 }
  0x4a   : > { %771 = vmatmul.mubr.bf16.gmra.mrb[16].mxu0 %v1362_v28  ;;  %899 = vmatmul.mubr.bf16.gmra.mrb[16].mxu1 %v1363_v29 }
  0x4b   : > { %1268 = vmatprep.mubr.msk.bf16.mxu0 %vm609_vm0, %v1364_v30  ;;  %1284 = vmatprep.mubr.msk.bf16.mxu1 %vm609_vm0, %v1366_v31 }
  0x52   : > { %779 = vmatmul.mubr.bf16.gmra.mrb[20].mxu0 %v1368_v32  ;;  %907 = vmatmul.mubr.bf16.gmra.mrb[20].mxu1 %v1369_v33 }
  0x53   : > { %1269 = vmatprep.mubr.msk.bf16.mxu0 %vm609_vm0, %v1370_v34  ;;  %1285 = vmatprep.mubr.msk.bf16.mxu1 %vm609_vm0, %v1372_v35 }
  0x5a   : > { %787 = vmatmul.mubr.bf16.gmra.mrb[24].mxu0 %v1374_v36  ;;  %915 = vmatmul.mubr.bf16.gmra.mrb[24].mxu1 %v1375_v37 }
  0x5b   : > { %1270 = vmatprep.mubr.msk.bf16.mxu0 %vm609_vm0, %v1376_v38  ;;  %1286 = vmatprep.mubr.msk.bf16.mxu1 %vm609_vm0, %v1378_v39 }
  0x62   : > { %795 = vmatmul.mubr.bf16.gmra.mrb[28].mxu0 %v1380_v40  ;;  %923 = vmatmul.mubr.bf16.gmra.mrb[28].mxu1 %v1381_v41 }
  0x63   : > { %1271 = vmatprep.mubr.msk.bf16.mxu0 %vm609_vm0, %v1382_v42  ;;  %1287 = vmatprep.mubr.msk.bf16.mxu1 %vm609_vm0, %v1384_v43 }
  0x6a   : > { %803 = vmatmul.mubr.bf16.gmra.mrb[32].mxu0 %v1386_v44  ;;  %931 = vmatmul.mubr.bf16.gmra.mrb[32].mxu1 %v1387_v45 }
  0x6b   : > { %1272 = vmatprep.mubr.msk.bf16.mxu0 %vm609_vm0, %v1388_v46  ;;  %1288 = vmatprep.mubr.msk.bf16.mxu1 %vm609_vm0, %v1390_v47 }
  0x72   : > { %811 = vmatmul.mubr.bf16.gmra.mrb[36].mxu0 %v1392_v48  ;;  %939 = vmatmul.mubr.bf16.gmra.mrb[36].mxu1 %v1393_v49 }
  0x73   : > { %1273 = vmatprep.mubr.msk.bf16.mxu0 %vm609_vm0, %v1394_v50  ;;  %1289 = vmatprep.mubr.msk.bf16.mxu1 %vm609_vm0, %v1396_v51 }
  0x7a   : > { %819 = vmatmul.mubr.bf16.gmra.mrb[40].mxu0 %v1398_v52  ;;  %947 = vmatmul.mubr.bf16.gmra.mrb[40].mxu1 %v1399_v53 }
  0x7b   : > { %1274 = vmatprep.mubr.msk.bf16.mxu0 %vm609_vm0, %v1400_v54  ;;  %1290 = vmatprep.mubr.msk.bf16.mxu1 %vm609_vm0, %v1402_v55 }
  0x82   : > { %827 = vmatmul.mubr.bf16.gmra.mrb[44].mxu0 %v1404_v56  ;;  %955 = vmatmul.mubr.bf16.gmra.mrb[44].mxu1 %v1405_v57 }
  0x83   : > { %1275 = vmatprep.mubr.msk.bf16.mxu0 %vm609_vm0, %v1406_v58  ;;  %1291 = vmatprep.mubr.msk.bf16.mxu1 %vm609_vm0, %v1408_v59 }
  0x8a   : > { %835 = vmatmul.mubr.bf16.gmra.mrb[48].mxu0 %v1410_v60  ;;  %963 = vmatmul.mubr.bf16.gmra.mrb[48].mxu1 %v1411_v61 }
  0x8b   : > { %1276 = vmatprep.mubr.msk.bf16.mxu0 %vm609_vm0, %v1412_v62  ;;  %1292 = vmatprep.mubr.msk.bf16.mxu1 %vm609_vm0, %v1414_v63 }
  0x92   : > { %843 = vmatmul.mubr.bf16.gmra.mrb[52].mxu0 %v1416_v0  ;;  %971 = vmatmul.mubr.bf16.gmra.mrb[52].mxu1 %v1417_v1 }
  0x93   : > { %1277 = vmatprep.mubr.msk.bf16.mxu0 %vm609_vm0, %v1418_v2  ;;  %1293 = vmatprep.mubr.msk.bf16.mxu1 %vm609_vm0, %v1420_v3 }
  0x9a   : > { %851 = vmatmul.mubr.bf16.gmra.mrb[56].mxu0 %v1422_v4  ;;  %979 = vmatmul.mubr.bf16.gmra.mrb[56].mxu1 %v1423_v5 }
  0x9b   : > { %1278 = vmatprep.mubr.msk.bf16.mxu0 %vm609_vm0, %v1424_v6  ;;  %1294 = vmatprep.mubr.msk.bf16.mxu1 %vm609_vm0, %v1426_v7 }
  0xa2   : > { %859 = vmatmul.mubr.bf16.gmra.mrb[60].mxu0 %v1428_v8  ;;  %987 = vmatmul.mubr.bf16.gmra.mrb[60].mxu1 %v1429_v9 }
  0xfd   : > { %v740_v11 = vpop.f32.mrb[0].mxu0  ;;  %v868_v12 = vpop.f32.mrb[0].mxu1 }
  0xfe   : > { %v741_v13 = vadd.f32 %v1731_v10, %v740_v11  ;;  %v869_v14 = vadd.f32 %v1731_v10, %v868_v12  ;;  %v742_v15 = vpop.f32.mrb[1].mxu0  ;;  %v870_v16 = vpop.f32.mrb[1].mxu1 }
  0xff   : > { %v743_v17 = vpop.f32.mrb[2].mxu0  ;;  %v871_v18 = vpop.f32.mrb[2].mxu1 }
 0x100   : > { %1430 = vtanh.f32 %v741_v13  ;;  %v744_v19 = vadd.f32 %v1731_v10, %v743_v17  ;;  %v872_v20 = vadd.f32 %v1731_v10, %v871_v18  ;;  %v745_v21 = vpop.f32.mrb[3].mxu0  ;;  %v873_v22 = vpop.f32.mrb[3].mxu1 }
 0x101   : > { %1432 = vtanh.f32 %v869_v14 }
 0x102   : > { %1434 = vtanh.f32 %v744_v19 }
 0x103   : > { %1436 = vtanh.f32 %v872_v20 }
 0x105   : > { %v748_v23 = vpop.f32.mrb[4].mxu0  ;;  %v876_v24 = vpop.f32.mrb[4].mxu1 }
 0x106   : > { %v749_v25 = vadd.f32 %v1731_v10, %v748_v23  ;;  %v877_v26 = vadd.f32 %v1731_v10, %v876_v24  ;;  %v750_v27 = vpop.f32.mrb[5].mxu0  ;;  %v878_v28 = vpop.f32.mrb[5].mxu1 }
 0x107   : > { %v751_v29 = vpop.f32.mrb[6].mxu0  ;;  %v879_v30 = vpop.f32.mrb[6].mxu1 }
 0x108   : > { %1438 = vtanh.f32 %v749_v25  ;;  %v752_v31 = vadd.f32 %v1731_v10, %v751_v29  ;;  %v880_v32 = vadd.f32 %v1731_v10, %v879_v30  ;;  %v753_v33 = vpop.f32.mrb[7].mxu0  ;;  %v881_v34 = vpop.f32.mrb[7].mxu1 }
 0x109   : > { %1440 = vtanh.f32 %v877_v26 }
 0x10a   : > { %v1431_v35 = vpop.eup %1430  ;;  %1442 = vtanh.f32 %v752_v31 }
 0x10b   : > { %v1433_v36 = vpop.eup %1432  ;;  %1059 = vst [vmem:[%s1744_s15] sm:$0xff] %v1431_v35  ;;  %1444 = vtanh.f32 %v880_v32 }
 0x10c   : > { %v1435_v37 = vpop.eup %1434  ;;  %1091 = vst [vmem:[%s1744_s15 + $0x100] sm:$0xff] %v1433_v36 }
 0x10d   : > { %v1437_v38 = vpop.eup %1436  ;;  %1060 = vst [vmem:[%s1744_s15 + $0x8] sm:$0xff] %v1435_v37  ;;  %v756_v39 = vpop.f32.mrb[8].mxu0 }
 0x10e   : > { %v884_v40 = vpop.f32.mrb[8].mxu1  ;;  %1092 = vst [vmem:[%s1744_s15 + $0x108] sm:$0xff] %v1437_v38  ;;  %v757_v41 = vadd.f32 %v1731_v10, %v756_v39  ;;  %v758_v43 = vpop.f32.mrb[9].mxu0 }
 0x10f   : > { %v885_v42 = vadd.f32 %v1731_v10, %v884_v40  ;;  %v886_v44 = vpop.f32.mrb[9].mxu1  ;;  %v759_v45 = vpop.f32.mrb[10].mxu0 }
 0x110   : > { %v887_v46 = vpop.f32.mrb[10].mxu1  ;;  %1446 = vtanh.f32 %v757_v41  ;;  %v760_v47 = vadd.f32 %v1731_v10, %v759_v45  ;;  %v761_v49 = vpop.f32.mrb[11].mxu0 }
 0x111   : > { %v888_v48 = vadd.f32 %v1731_v10, %v887_v46  ;;  %v889_v50 = vpop.f32.mrb[11].mxu1  ;;  %1448 = vtanh.f32 %v885_v42 }
 0x112   : > { %v1439_v51 = vpop.eup %1438  ;;  %1450 = vtanh.f32 %v760_v47 }
 0x113   : > { %v1441_v52 = vpop.eup %1440  ;;  %1061 = vst [vmem:[%s1744_s15 + $0x10] sm:$0xff] %v1439_v51  ;;  %1452 = vtanh.f32 %v888_v48 }
 0x114   : > { %v1443_v53 = vpop.eup %1442  ;;  %1093 = vst [vmem:[%s1744_s15 + $0x110] sm:$0xff] %v1441_v52 }
 0x115   : > { %v1445_v54 = vpop.eup %1444  ;;  %1062 = vst [vmem:[%s1744_s15 + $0x18] sm:$0xff] %v1443_v53  ;;  %v764_v55 = vpop.f32.mrb[12].mxu0 }
 0x116   : > { %v892_v56 = vpop.f32.mrb[12].mxu1  ;;  %1094 = vst [vmem:[%s1744_s15 + $0x118] sm:$0xff] %v1445_v54  ;;  %v765_v57 = vadd.f32 %v1731_v10, %v764_v55  ;;  %v766_v59 = vpop.f32.mrb[13].mxu0 }
 0x117   : > { %v893_v58 = vadd.f32 %v1731_v10, %v892_v56  ;;  %v894_v60 = vpop.f32.mrb[13].mxu1  ;;  %v767_v61 = vpop.f32.mrb[14].mxu0 }
 0x118   : > { %v895_v62 = vpop.f32.mrb[14].mxu1  ;;  %1454 = vtanh.f32 %v765_v57  ;;  %v768_v63 = vadd.f32 %v1731_v10, %v767_v61  ;;  %v769_v1 = vpop.f32.mrb[15].mxu0 }
 0x119   : > { %v896_v0 = vadd.f32 %v1731_v10, %v895_v62  ;;  %v897_v2 = vpop.f32.mrb[15].mxu1  ;;  %1456 = vtanh.f32 %v893_v58 }
 0x11a   : > { %v1447_v3 = vpop.eup %1446  ;;  %1458 = vtanh.f32 %v768_v63 }
 0x11b   : > { %v1449_v4 = vpop.eup %1448  ;;  %1063 = vst [vmem:[%s1744_s15 + $0x20] sm:$0xff] %v1447_v3  ;;  %1460 = vtanh.f32 %v896_v0 }
 0x11c   : > { %v1451_v5 = vpop.eup %1450  ;;  %1095 = vst [vmem:[%s1744_s15 + $0x120] sm:$0xff] %v1449_v4 }
 0x11d   : > { %v1453_v6 = vpop.eup %1452  ;;  %1064 = vst [vmem:[%s1744_s15 + $0x28] sm:$0xff] %v1451_v5  ;;  %v772_v7 = vpop.f32.mrb[16].mxu0 }
 0x11e   : > { %v900_v8 = vpop.f32.mrb[16].mxu1  ;;  %1096 = vst [vmem:[%s1744_s15 + $0x128] sm:$0xff] %v1453_v6  ;;  %v773_v9 = vadd.f32 %v1731_v10, %v772_v7  ;;  %v774_v12 = vpop.f32.mrb[17].mxu0 }
 0x11f   : > { %v901_v11 = vadd.f32 %v1731_v10, %v900_v8  ;;  %v902_v13 = vpop.f32.mrb[17].mxu1  ;;  %v775_v14 = vpop.f32.mrb[18].mxu0 }
 0x120   : > { %v903_v15 = vpop.f32.mrb[18].mxu1  ;;  %1462 = vtanh.f32 %v773_v9  ;;  %v776_v16 = vadd.f32 %v1731_v10, %v775_v14  ;;  %v777_v18 = vpop.f32.mrb[19].mxu0 }
 0x121   : > { %v904_v17 = vadd.f32 %v1731_v10, %v903_v15  ;;  %v905_v19 = vpop.f32.mrb[19].mxu1  ;;  %1464 = vtanh.f32 %v901_v11 }
 0x122   : > { %v1455_v20 = vpop.eup %1454  ;;  %1466 = vtanh.f32 %v776_v16 }
 0x123   : > { %v1457_v21 = vpop.eup %1456  ;;  %1065 = vst [vmem:[%s1744_s15 + $0x30] sm:$0xff] %v1455_v20  ;;  %1468 = vtanh.f32 %v904_v17 }
 0x124   : > { %v1459_v22 = vpop.eup %1458  ;;  %1097 = vst [vmem:[%s1744_s15 + $0x130] sm:$0xff] %v1457_v21 }
 0x125   : > { %v1461_v23 = vpop.eup %1460  ;;  %1066 = vst [vmem:[%s1744_s15 + $0x38] sm:$0xff] %v1459_v22  ;;  %v780_v24 = vpop.f32.mrb[20].mxu0 }
 0x126   : > { %v908_v25 = vpop.f32.mrb[20].mxu1  ;;  %1098 = vst [vmem:[%s1744_s15 + $0x138] sm:$0xff] %v1461_v23  ;;  %v781_v26 = vadd.f32 %v1731_v10, %v780_v24  ;;  %v782_v28 = vpop.f32.mrb[21].mxu0 }
 0x127   : > { %v909_v27 = vadd.f32 %v1731_v10, %v908_v25  ;;  %v910_v29 = vpop.f32.mrb[21].mxu1  ;;  %v783_v30 = vpop.f32.mrb[22].mxu0 }
 0x128   : > { %v911_v31 = vpop.f32.mrb[22].mxu1  ;;  %1470 = vtanh.f32 %v781_v26  ;;  %v784_v32 = vadd.f32 %v1731_v10, %v783_v30  ;;  %v785_v34 = vpop.f32.mrb[23].mxu0 }
 0x129   : > { %v912_v33 = vadd.f32 %v1731_v10, %v911_v31  ;;  %v913_v35 = vpop.f32.mrb[23].mxu1  ;;  %1472 = vtanh.f32 %v909_v27 }
 0x12a   : > { %v1463_v36 = vpop.eup %1462  ;;  %1474 = vtanh.f32 %v784_v32 }
 0x12b   : > { %v1465_v37 = vpop.eup %1464  ;;  %1067 = vst [vmem:[%s1744_s15 + $0x40] sm:$0xff] %v1463_v36  ;;  %1476 = vtanh.f32 %v912_v33 }
 0x12c   : > { %v1467_v38 = vpop.eup %1466  ;;  %1099 = vst [vmem:[%s1744_s15 + $0x140] sm:$0xff] %v1465_v37 }
 0x12d   : > { %v1469_v39 = vpop.eup %1468  ;;  %1068 = vst [vmem:[%s1744_s15 + $0x48] sm:$0xff] %v1467_v38  ;;  %v788_v40 = vpop.f32.mrb[24].mxu0 }
 0x12e   : > { %v916_v41 = vpop.f32.mrb[24].mxu1  ;;  %1100 = vst [vmem:[%s1744_s15 + $0x148] sm:$0xff] %v1469_v39  ;;  %v789_v42 = vadd.f32 %v1731_v10, %v788_v40  ;;  %v790_v44 = vpop.f32.mrb[25].mxu0 }
 0x12f   : > { %v917_v43 = vadd.f32 %v1731_v10, %v916_v41  ;;  %v918_v45 = vpop.f32.mrb[25].mxu1  ;;  %v791_v46 = vpop.f32.mrb[26].mxu0 }
 0x130   : > { %v919_v47 = vpop.f32.mrb[26].mxu1  ;;  %1478 = vtanh.f32 %v789_v42  ;;  %v792_v48 = vadd.f32 %v1731_v10, %v791_v46  ;;  %v793_v50 = vpop.f32.mrb[27].mxu0 }
 0x131   : > { %v920_v49 = vadd.f32 %v1731_v10, %v919_v47  ;;  %v921_v51 = vpop.f32.mrb[27].mxu1  ;;  %1480 = vtanh.f32 %v917_v43 }
 0x132   : > { %v1471_v52 = vpop.eup %1470  ;;  %1482 = vtanh.f32 %v792_v48 }
 0x133   : > { %v1473_v53 = vpop.eup %1472  ;;  %1069 = vst [vmem:[%s1744_s15 + $0x50] sm:$0xff] %v1471_v52  ;;  %1484 = vtanh.f32 %v920_v49 }
 0x134   : > { %v1475_v54 = vpop.eup %1474  ;;  %1101 = vst [vmem:[%s1744_s15 + $0x150] sm:$0xff] %v1473_v53 }
 0x135   : > { %v1477_v55 = vpop.eup %1476  ;;  %1070 = vst [vmem:[%s1744_s15 + $0x58] sm:$0xff] %v1475_v54  ;;  %v796_v56 = vpop.f32.mrb[28].mxu0 }
 0x136   : > { %v924_v57 = vpop.f32.mrb[28].mxu1  ;;  %1102 = vst [vmem:[%s1744_s15 + $0x158] sm:$0xff] %v1477_v55  ;;  %v797_v58 = vadd.f32 %v1731_v10, %v796_v56  ;;  %v798_v60 = vpop.f32.mrb[29].mxu0 }
 0x137   : > { %v925_v59 = vadd.f32 %v1731_v10, %v924_v57  ;;  %v926_v61 = vpop.f32.mrb[29].mxu1  ;;  %v799_v62 = vpop.f32.mrb[30].mxu0 }
 0x138   : > { %v927_v63 = vpop.f32.mrb[30].mxu1  ;;  %1486 = vtanh.f32 %v797_v58  ;;  %v800_v0 = vadd.f32 %v1731_v10, %v799_v62  ;;  %v801_v2 = vpop.f32.mrb[31].mxu0 }
 0x139   : > { %v928_v1 = vadd.f32 %v1731_v10, %v927_v63  ;;  %v929_v3 = vpop.f32.mrb[31].mxu1  ;;  %1488 = vtanh.f32 %v925_v59 }
 0x13a   : > { %v1479_v4 = vpop.eup %1478  ;;  %1490 = vtanh.f32 %v800_v0 }
 0x13b   : > { %v1481_v5 = vpop.eup %1480  ;;  %1071 = vst [vmem:[%s1744_s15 + $0x60] sm:$0xff] %v1479_v4  ;;  %1492 = vtanh.f32 %v928_v1 }
 0x13c   : > { %v1483_v6 = vpop.eup %1482  ;;  %1103 = vst [vmem:[%s1744_s15 + $0x160] sm:$0xff] %v1481_v5 }
 0x13d   : > { %v1485_v7 = vpop.eup %1484  ;;  %1072 = vst [vmem:[%s1744_s15 + $0x68] sm:$0xff] %v1483_v6  ;;  %v804_v8 = vpop.f32.mrb[32].mxu0 }
 0x13e   : > { %v932_v9 = vpop.f32.mrb[32].mxu1  ;;  %1104 = vst [vmem:[%s1744_s15 + $0x168] sm:$0xff] %v1485_v7  ;;  %v805_v11 = vadd.f32 %v1731_v10, %v804_v8  ;;  %v806_v13 = vpop.f32.mrb[33].mxu0 }
 0x13f   : > { %v933_v12 = vadd.f32 %v1731_v10, %v932_v9  ;;  %v934_v14 = vpop.f32.mrb[33].mxu1  ;;  %v807_v15 = vpop.f32.mrb[34].mxu0 }
 0x140   : > { %v935_v16 = vpop.f32.mrb[34].mxu1  ;;  %1494 = vtanh.f32 %v805_v11  ;;  %v808_v17 = vadd.f32 %v1731_v10, %v807_v15  ;;  %v809_v19 = vpop.f32.mrb[35].mxu0 }
 0x141   : > { %v936_v18 = vadd.f32 %v1731_v10, %v935_v16  ;;  %v937_v20 = vpop.f32.mrb[35].mxu1  ;;  %1496 = vtanh.f32 %v933_v12 }
 0x142   : > { %v1487_v21 = vpop.eup %1486  ;;  %1498 = vtanh.f32 %v808_v17 }
 0x143   : > { %v1489_v22 = vpop.eup %1488  ;;  %1073 = vst [vmem:[%s1744_s15 + $0x70] sm:$0xff] %v1487_v21  ;;  %1500 = vtanh.f32 %v936_v18 }
 0x144   : > { %v1491_v23 = vpop.eup %1490  ;;  %1105 = vst [vmem:[%s1744_s15 + $0x170] sm:$0xff] %v1489_v22 }
 0x145   : > { %v1493_v24 = vpop.eup %1492  ;;  %1074 = vst [vmem:[%s1744_s15 + $0x78] sm:$0xff] %v1491_v23  ;;  %v812_v25 = vpop.f32.mrb[36].mxu0 }
 0x146   : > { %v940_v26 = vpop.f32.mrb[36].mxu1  ;;  %1106 = vst [vmem:[%s1744_s15 + $0x178] sm:$0xff] %v1493_v24  ;;  %v813_v27 = vadd.f32 %v1731_v10, %v812_v25  ;;  %v814_v29 = vpop.f32.mrb[37].mxu0 }
 0x147   : > { %v941_v28 = vadd.f32 %v1731_v10, %v940_v26  ;;  %v942_v30 = vpop.f32.mrb[37].mxu1  ;;  %v815_v31 = vpop.f32.mrb[38].mxu0 }
 0x148   : > { %v943_v32 = vpop.f32.mrb[38].mxu1  ;;  %1502 = vtanh.f32 %v813_v27  ;;  %v816_v33 = vadd.f32 %v1731_v10, %v815_v31  ;;  %v817_v35 = vpop.f32.mrb[39].mxu0 }
 0x149   : > { %v944_v34 = vadd.f32 %v1731_v10, %v943_v32  ;;  %v945_v36 = vpop.f32.mrb[39].mxu1  ;;  %1504 = vtanh.f32 %v941_v28 }
 0x14a   : > { %v1495_v37 = vpop.eup %1494  ;;  %1506 = vtanh.f32 %v816_v33 }
 0x14b   : > { %v1497_v38 = vpop.eup %1496  ;;  %1075 = vst [vmem:[%s1744_s15 + $0x80] sm:$0xff] %v1495_v37  ;;  %1508 = vtanh.f32 %v944_v34 }
 0x14c   : > { %v1499_v39 = vpop.eup %1498  ;;  %1107 = vst [vmem:[%s1744_s15 + $0x180] sm:$0xff] %v1497_v38 }
 0x14d   : > { %v1501_v40 = vpop.eup %1500  ;;  %1076 = vst [vmem:[%s1744_s15 + $0x88] sm:$0xff] %v1499_v39  ;;  %v820_v41 = vpop.f32.mrb[40].mxu0 }
 0x14e   : > { %v948_v42 = vpop.f32.mrb[40].mxu1  ;;  %1108 = vst [vmem:[%s1744_s15 + $0x188] sm:$0xff] %v1501_v40  ;;  %v821_v43 = vadd.f32 %v1731_v10, %v820_v41  ;;  %v822_v45 = vpop.f32.mrb[41].mxu0 }
 0x14f   : > { %v949_v44 = vadd.f32 %v1731_v10, %v948_v42  ;;  %v950_v46 = vpop.f32.mrb[41].mxu1  ;;  %v823_v47 = vpop.f32.mrb[42].mxu0 }
 0x150   : > { %v951_v48 = vpop.f32.mrb[42].mxu1  ;;  %1510 = vtanh.f32 %v821_v43  ;;  %v824_v49 = vadd.f32 %v1731_v10, %v823_v47  ;;  %v825_v51 = vpop.f32.mrb[43].mxu0 }
 0x151   : > { %v952_v50 = vadd.f32 %v1731_v10, %v951_v48  ;;  %v953_v52 = vpop.f32.mrb[43].mxu1  ;;  %1512 = vtanh.f32 %v949_v44 }
 0x152   : > { %v1503_v53 = vpop.eup %1502  ;;  %1514 = vtanh.f32 %v824_v49 }
 0x153   : > { %v1505_v54 = vpop.eup %1504  ;;  %1077 = vst [vmem:[%s1744_s15 + $0x90] sm:$0xff] %v1503_v53  ;;  %1516 = vtanh.f32 %v952_v50 }
 0x154   : > { %v1507_v55 = vpop.eup %1506  ;;  %1109 = vst [vmem:[%s1744_s15 + $0x190] sm:$0xff] %v1505_v54 }
 0x155   : > { %v1509_v56 = vpop.eup %1508  ;;  %1078 = vst [vmem:[%s1744_s15 + $0x98] sm:$0xff] %v1507_v55  ;;  %v828_v57 = vpop.f32.mrb[44].mxu0 }
 0x156   : > { %v956_v58 = vpop.f32.mrb[44].mxu1  ;;  %1110 = vst [vmem:[%s1744_s15 + $0x198] sm:$0xff] %v1509_v56  ;;  %v829_v59 = vadd.f32 %v1731_v10, %v828_v57  ;;  %v830_v61 = vpop.f32.mrb[45].mxu0 }
 0x157   : > { %v957_v60 = vadd.f32 %v1731_v10, %v956_v58  ;;  %v958_v62 = vpop.f32.mrb[45].mxu1  ;;  %v831_v63 = vpop.f32.mrb[46].mxu0 }
 0x158   : > { %v959_v0 = vpop.f32.mrb[46].mxu1  ;;  %1518 = vtanh.f32 %v829_v59  ;;  %v832_v1 = vadd.f32 %v1731_v10, %v831_v63  ;;  %v833_v3 = vpop.f32.mrb[47].mxu0 }
 0x159   : > { %v960_v2 = vadd.f32 %v1731_v10, %v959_v0  ;;  %v961_v4 = vpop.f32.mrb[47].mxu1  ;;  %1520 = vtanh.f32 %v957_v60 }
 0x15a   : > { %v1511_v5 = vpop.eup %1510  ;;  %1522 = vtanh.f32 %v832_v1 }
 0x15b   : > { %v1513_v6 = vpop.eup %1512  ;;  %1079 = vst [vmem:[%s1744_s15 + $0xa0] sm:$0xff] %v1511_v5  ;;  %1524 = vtanh.f32 %v960_v2 }
 0x15c   : > { %v1515_v7 = vpop.eup %1514  ;;  %1111 = vst [vmem:[%s1744_s15 + $0x1a0] sm:$0xff] %v1513_v6 }
 0x15d   : > { %v1517_v8 = vpop.eup %1516  ;;  %1080 = vst [vmem:[%s1744_s15 + $0xa8] sm:$0xff] %v1515_v7  ;;  %v836_v9 = vpop.f32.mrb[48].mxu0 }
 0x15e   : > { %v964_v11 = vpop.f32.mrb[48].mxu1  ;;  %1112 = vst [vmem:[%s1744_s15 + $0x1a8] sm:$0xff] %v1517_v8  ;;  %v837_v12 = vadd.f32 %v1731_v10, %v836_v9  ;;  %v838_v14 = vpop.f32.mrb[49].mxu0 }
 0x15f   : > { %v965_v13 = vadd.f32 %v1731_v10, %v964_v11  ;;  %v966_v15 = vpop.f32.mrb[49].mxu1  ;;  %v839_v16 = vpop.f32.mrb[50].mxu0 }
 0x160   : > { %v967_v17 = vpop.f32.mrb[50].mxu1  ;;  %1526 = vtanh.f32 %v837_v12  ;;  %v840_v18 = vadd.f32 %v1731_v10, %v839_v16  ;;  %v841_v20 = vpop.f32.mrb[51].mxu0 }
 0x161   : > { %v968_v19 = vadd.f32 %v1731_v10, %v967_v17  ;;  %v969_v21 = vpop.f32.mrb[51].mxu1  ;;  %1528 = vtanh.f32 %v965_v13 }
 0x162   : > { %v1519_v22 = vpop.eup %1518  ;;  %1530 = vtanh.f32 %v840_v18 }
 0x163   : > { %v1521_v23 = vpop.eup %1520  ;;  %1081 = vst [vmem:[%s1744_s15 + $0xb0] sm:$0xff] %v1519_v22  ;;  %1532 = vtanh.f32 %v968_v19 }
 0x164   : > { %v1523_v24 = vpop.eup %1522  ;;  %1113 = vst [vmem:[%s1744_s15 + $0x1b0] sm:$0xff] %v1521_v23 }
 0x165   : > { %v1525_v25 = vpop.eup %1524  ;;  %1082 = vst [vmem:[%s1744_s15 + $0xb8] sm:$0xff] %v1523_v24  ;;  %v844_v26 = vpop.f32.mrb[52].mxu0 }
 0x166   : > { %v972_v27 = vpop.f32.mrb[52].mxu1  ;;  %1114 = vst [vmem:[%s1744_s15 + $0x1b8] sm:$0xff] %v1525_v25  ;;  %v845_v28 = vadd.f32 %v1731_v10, %v844_v26  ;;  %v846_v30 = vpop.f32.mrb[53].mxu0 }
 0x167   : > { %v973_v29 = vadd.f32 %v1731_v10, %v972_v27  ;;  %v974_v31 = vpop.f32.mrb[53].mxu1  ;;  %v847_v32 = vpop.f32.mrb[54].mxu0 }
 0x168   : > { %v975_v33 = vpop.f32.mrb[54].mxu1  ;;  %1534 = vtanh.f32 %v845_v28  ;;  %v848_v34 = vadd.f32 %v1731_v10, %v847_v32  ;;  %v849_v36 = vpop.f32.mrb[55].mxu0 }
 0x169   : > { %v976_v35 = vadd.f32 %v1731_v10, %v975_v33  ;;  %v977_v37 = vpop.f32.mrb[55].mxu1  ;;  %1536 = vtanh.f32 %v973_v29 }
 0x16a   : > { %v1527_v38 = vpop.eup %1526  ;;  %1538 = vtanh.f32 %v848_v34 }
 0x16b   : > { %v1529_v39 = vpop.eup %1528  ;;  %1083 = vst [vmem:[%s1744_s15 + $0xc0] sm:$0xff] %v1527_v38  ;;  %1540 = vtanh.f32 %v976_v35 }
 0x16c   : > { %v1531_v40 = vpop.eup %1530  ;;  %1115 = vst [vmem:[%s1744_s15 + $0x1c0] sm:$0xff] %v1529_v39 }
 0x16d   : > { %v1533_v41 = vpop.eup %1532  ;;  %1084 = vst [vmem:[%s1744_s15 + $0xc8] sm:$0xff] %v1531_v40  ;;  %v852_v42 = vpop.f32.mrb[56].mxu0 }
 0x16e   : > { %v980_v43 = vpop.f32.mrb[56].mxu1  ;;  %1116 = vst [vmem:[%s1744_s15 + $0x1c8] sm:$0xff] %v1533_v41  ;;  %v853_v44 = vadd.f32 %v1731_v10, %v852_v42  ;;  %v854_v46 = vpop.f32.mrb[57].mxu0 }
 0x16f   : > { %v981_v45 = vadd.f32 %v1731_v10, %v980_v43  ;;  %v982_v47 = vpop.f32.mrb[57].mxu1  ;;  %v855_v48 = vpop.f32.mrb[58].mxu0 }
 0x170   : > { %v983_v49 = vpop.f32.mrb[58].mxu1  ;;  %1542 = vtanh.f32 %v853_v44  ;;  %v856_v50 = vadd.f32 %v1731_v10, %v855_v48  ;;  %v857_v52 = vpop.f32.mrb[59].mxu0 }
 0x171   : > { %v984_v51 = vadd.f32 %v1731_v10, %v983_v49  ;;  %v985_v53 = vpop.f32.mrb[59].mxu1  ;;  %1544 = vtanh.f32 %v981_v45 }
 0x172   : > { %v1535_v54 = vpop.eup %1534  ;;  %1546 = vtanh.f32 %v856_v50 }
 0x173   : > { %v1537_v55 = vpop.eup %1536  ;;  %1085 = vst [vmem:[%s1744_s15 + $0xd0] sm:$0xff] %v1535_v54  ;;  %1548 = vtanh.f32 %v984_v51 }
 0x174   : > { %v1539_v56 = vpop.eup %1538  ;;  %1117 = vst [vmem:[%s1744_s15 + $0x1d0] sm:$0xff] %v1537_v55 }
 0x175   : > { %v1541_v57 = vpop.eup %1540  ;;  %1086 = vst [vmem:[%s1744_s15 + $0xd8] sm:$0xff] %v1539_v56  ;;  %v860_v58 = vpop.f32.mrb[60].mxu0 }
 0x176   : > { %v988_v59 = vpop.f32.mrb[60].mxu1  ;;  %1118 = vst [vmem:[%s1744_s15 + $0x1d8] sm:$0xff] %v1541_v57  ;;  %v861_v60 = vadd.f32 %v1731_v10, %v860_v58  ;;  %v862_v62 = vpop.f32.mrb[61].mxu0 }
 0x177   : > { %v989_v61 = vadd.f32 %v1731_v10, %v988_v59  ;;  %v990_v63 = vpop.f32.mrb[61].mxu1  ;;  %v863_v0 = vpop.f32.mrb[62].mxu0 }
 0x178   : > { %v991_v1 = vpop.f32.mrb[62].mxu1  ;;  %1550 = vtanh.f32 %v861_v60  ;;  %v864_v2 = vadd.f32 %v1731_v10, %v863_v0  ;;  %v865_v4 = vpop.f32.mrb[63].mxu0 }
 0x179   : > { %v992_v3 = vadd.f32 %v1731_v10, %v991_v1  ;;  %v993_v5 = vpop.f32.mrb[63].mxu1  ;;  %1552 = vtanh.f32 %v989_v61 }
 0x17a   : > { %v1543_v6 = vpop.eup %1542  ;;  %1554 = vtanh.f32 %v864_v2 }
 0x17b   : > { %v1545_v7 = vpop.eup %1544  ;;  %1087 = vst [vmem:[%s1744_s15 + $0xe0] sm:$0xff] %v1543_v6  ;;  %1556 = vtanh.f32 %v992_v3 }
 0x17c   : > { %v1547_v8 = vpop.eup %1546  ;;  %1119 = vst [vmem:[%s1744_s15 + $0x1e0] sm:$0xff] %v1545_v7 }
 0x17d   : > { %v1549_v9 = vpop.eup %1548  ;;  %1088 = vst [vmem:[%s1744_s15 + $0xe8] sm:$0xff] %v1547_v8 }
 0x17e   : > { %1120 = vst [vmem:[%s1744_s15 + $0x1e8] sm:$0xff] %v1549_v9 }
 0x182   : > { %v1551_v11 = vpop.eup %1550 }
 0x183   : > { %v1553_v12 = vpop.eup %1552  ;;  %1089 = vst [vmem:[%s1744_s15 + $0xf0] sm:$0xff] %v1551_v11 }
 0x184   : > { %v1555_v10 = vpop.eup %1554  ;;  %1121 = vst [vmem:[%s1744_s15 + $0x1f0] sm:$0xff] %v1553_v12 }
 0x185   : > { %v1557_v13 = vpop.eup %1556  ;;  %1090 = vst [vmem:[%s1744_s15 + $0xf8] sm:$0xff] %v1555_v10 }
 0x186   : > { %1122 = vst [vmem:[%s1744_s15 + $0x1f8] sm:$0xff] %v1557_v13 }
 0x187 PF: > { %s13_s12 = sadd.s32 1, %s1564_s12  }
 0x188   : > { %p10_p4 = scmp.ge.s32.totalorder %s13_s12, 6  }
 0x18a   :  { %12 = sbr.rel (!%p10_p4) target bundleno = 1 (0x1), region = 62 }

</bundles_post_ra>
